<compile_context>
chip_gen: v7x
topology: tpu7x:2x2x1
jax: 0.10.0
libtpu: 0.0.40
codegen_flags: <defaults>
</compile_context>

<pallas_src>
import functools

import jax
import jax.numpy as jnp
from jax.experimental import pallas as pl
from jax.experimental.pallas import tpu as pltpu

_BN_EPS = 1e-5
_NEG = -1e30
_A_TILE_BUDGET = 6 * 1024 * 1024   # bytes for one (TM, K) bf16 activation tile


# ---------------------------------------------------------------------------
# Pallas kernels
# ---------------------------------------------------------------------------
def _gemm_bias_kernel(a_ref, b_ref, c_ref, o_ref, *, relu):
    """o = act(a @ b + bias); a/b bf16, f32 accumulate."""
    acc = jnp.dot(a_ref[...], b_ref[...], preferred_element_type=jnp.float32)
    y = acc + c_ref[...]
    if relu:
        y = jnp.maximum(y, 0.0)
    o_ref[...] = y.astype(o_ref.dtype)


def _gemm_bias_add_kernel(a_ref, b_ref, c_ref, s_ref, o_ref, *, relu):
    """o = act(a @ b + bias + shortcut); fused residual add + ReLU epilogue."""
    acc = jnp.dot(a_ref[...], b_ref[...], preferred_element_type=jnp.float32)
    y = acc + c_ref[...] + s_ref[...].astype(jnp.float32)
    if relu:
        y = jnp.maximum(y, 0.0)
    o_ref[...] = y.astype(o_ref.dtype)


def _conv3x3_kernel(x_ref, w_ref, b_ref, o_ref, acc_ref, *, wp, th):
    """Fused 3x3/stride-1 conv + folded BN + ReLU.

    x_ref : (1, 1, flat, Cin)  flattened zero-padded NHWC rows (row-major, width wp)
    w_ref : (3, 3, Cin, TN)    resident across the whole (n, band) sweep
    o_ref : (1, 1, th*wp, TN)  th output rows laid out at stride wp (pad cols junk)
    """
    rows = th * wp
    first = True
    for dy in range(3):
        for dx in range(3):
            lhs = x_ref[0, 0, pl.ds(dy * wp + dx, rows), :]
            part = jnp.dot(lhs, w_ref[dy, dx], preferred_element_type=jnp.float32)
            if first:
                acc_ref[...] = part           # first tap assigns (no zero-init pass)
                first = False
            else:
                acc_ref[...] += part
    o_ref[0, 0] = jnp.maximum(acc_ref[...] + b_ref[...], 0.0).astype(o_ref.dtype)


def _maxpool_kernel(x0_ref, x1_ref, x2_ref, o_ref, *, w):
    """3-row vertical max + horizontal 3-window (stride-1) max of one output row."""
    r = jnp.maximum(jnp.maximum(x0_ref[0, 0], x1_ref[0, 0]), x2_ref[0, 0])
    m = jnp.maximum(jnp.maximum(r[0:w], r[1:w + 1]), r[2:w + 2])
    o_ref[0, 0] = m


def _avgpool_fc_kernel(x_ref, w_ref, b_ref, o_ref):
    """Fused global average pool + Linear(2048, 128) for one image."""
    pooled = jnp.mean(x_ref[0].astype(jnp.float32), axis=0, keepdims=True)   # (1, C)
    y = jnp.dot(pooled.astype(jnp.bfloat16), w_ref[...],
                preferred_element_type=jnp.float32) + b_ref[...]
    o_ref[0] = y


# ---------------------------------------------------------------------------
# Tile selection helpers
# ---------------------------------------------------------------------------
def _round_up(x, m):
    return ((x + m - 1) // m) * m


def _tile_m(m, k):
    """Largest M tile that fits the VMEM budget; prefers an unpadded divisor of M."""
    if m <= 2048 and 2 * m * k <= _A_TILE_BUDGET:
        return m                         # whole-M block (exempt from (8,128) rule)
    cap = min(1024, max(128, _A_TILE_BUDGET // (2 * k)))
    cap -= cap % 8
    for t in range(cap, 127, -8):        # largest sublane-aligned divisor of M
        if m % t == 0:
            return t
    return 128                           # rare fallback: caller pads M up to 128


def _tile_n(n_out, m_blocks):
    if n_out < 128:
        return n_out                     # e.g. Cout=64 -> full-dim lane block
    if n_out % 256 == 0:
        tn = 256
    elif n_out % 128 == 0:
        tn = 128
    else:
        tn = n_out
    # expose >=2 blocks along a parallel axis when M gives only one (megacore)
    if m_blocks == 1 and n_out // tn == 1 and n_out >= 256:
        tn = n_out // 2
    return tn


def _pick_th(oh):
    for t in range(min(oh, 32), 0, -1):
        if oh % t == 0:
            return t
    return 1


# ---------------------------------------------------------------------------
# Pallas-call builders (cached per shape)
# ---------------------------------------------------------------------------
@functools.lru_cache(maxsize=None)
def _build_gemm(mp, k, n_out, tm, tn, relu, has_sc, out_dtype_name):
    in_specs = [
        pl.BlockSpec((tm, k), lambda i, j: (i, 0)),      # A resident across j
        pl.BlockSpec((k, tn), lambda i, j: (0, j)),      # full-K weight tile
        pl.BlockSpec((1, tn), lambda i, j: (0, j)),      # bias
    ]
    if has_sc:
        in_specs.append(pl.BlockSpec((tm, tn), lambda i, j: (i, j)))
        kern = functools.partial(_gemm_bias_add_kernel, relu=relu)
    else:
        kern = functools.partial(_gemm_bias_kernel, relu=relu)
    return pl.pallas_call(
        kern,
        out_shape=jax.ShapeDtypeStruct((mp, n_out), jnp.dtype(out_dtype_name)),
        grid_spec=pltpu.PrefetchScalarGridSpec(
            num_scalar_prefetch=0,
            grid=(mp // tm, n_out // tn),
            in_specs=in_specs,
            out_specs=pl.BlockSpec((tm, tn), lambda i, j: (i, j)),
        ),
        compiler_params=pltpu.CompilerParams(
            dimension_semantics=("parallel", "parallel")),
    )


@functools.lru_cache(maxsize=None)
def _build_conv3x3(n, nb, flat_len, cin, cout, th, wp, tn):
    rows = th * wp
    kern = functools.partial(_conv3x3_kernel, wp=wp, th=th)
    return pl.pallas_call(
        kern,
        out_shape=jax.ShapeDtypeStruct((n, nb, rows, cout), jnp.bfloat16),
        grid_spec=pltpu.PrefetchScalarGridSpec(
            num_scalar_prefetch=0,
            grid=(cout // tn, n, nb),                    # j outermost -> weight resident
            in_specs=[
                pl.BlockSpec((1, 1, flat_len, cin), lambda j, i, b: (i, b, 0, 0)),
                pl.BlockSpec((3, 3, cin, tn), lambda j, i, b: (0, 0, 0, j)),
                pl.BlockSpec((1, tn), lambda j, i, b: (0, j)),
            ],
            out_specs=pl.BlockSpec((1, 1, rows, tn), lambda j, i, b: (i, b, 0, j)),
            scratch_shapes=[pltpu.VMEM((rows, tn), jnp.float32)],
        ),
        compiler_params=pltpu.CompilerParams(
            dimension_semantics=("arbitrary", "parallel", "parallel")),
    )


@functools.lru_cache(maxsize=None)
def _build_maxpool(n, hp, wp, c, oh, w):
    kern = functools.partial(_maxpool_kernel, w=w)

    def _in_spec(k):
        return pl.BlockSpec((1, 1, wp, c), lambda i, o: (i, 2 * o + k, 0, 0))

    return pl.pallas_call(
        kern,
        out_shape=jax.ShapeDtypeStruct((n, oh, w, c), jnp.bfloat16),
        grid_spec=pltpu.PrefetchScalarGridSpec(
            num_scalar_prefetch=0,
            grid=(n, oh),
            in_specs=[_in_spec(0), _in_spec(1), _in_spec(2)],
            out_specs=pl.BlockSpec((1, 1, w, c), lambda i, o: (i, o, 0, 0)),
        ),
        compiler_params=pltpu.CompilerParams(
            dimension_semantics=("parallel", "parallel")),
    )


@functools.lru_cache(maxsize=None)
def _build_avgpool_fc(n, hw, c, nout):
    return pl.pallas_call(
        _avgpool_fc_kernel,
        out_shape=jax.ShapeDtypeStruct((n, 1, nout), jnp.float32),
        grid_spec=pltpu.PrefetchScalarGridSpec(
            num_scalar_prefetch=0,
            grid=(n,),
            in_specs=[
                pl.BlockSpec((1, hw, c), lambda i: (i, 0, 0)),
                pl.BlockSpec((c, nout), lambda i: (0, 0)),   # FC weight resident
                pl.BlockSpec((1, nout), lambda i: (0, 0)),
            ],
            out_specs=pl.BlockSpec((1, 1, nout), lambda i: (i, 0, 0)),
        ),
        compiler_params=pltpu.CompilerParams(dimension_semantics=("parallel",)),
    )


# ---------------------------------------------------------------------------
# Wrappers (thin plain-JAX glue)
# ---------------------------------------------------------------------------
def gemm_bias(a, w, bias, *, relu, shortcut=None, out_dtype=jnp.bfloat16):
    m, k = a.shape
    n_out = w.shape[1]
    tm = _tile_m(m, k)
    mp = _round_up(m, tm)
    if mp != m:   # rare (no sublane-aligned divisor found); pad the activation only
        a = jnp.zeros((mp, k), a.dtype).at[:m].set(a)
        if shortcut is not None:
            shortcut = jnp.zeros((mp, n_out), shortcut.dtype).at[:m].set(shortcut)
    tn = _tile_n(n_out, mp // tm)
    fn = _build_gemm(mp, k, n_out, tm, tn, bool(relu),
                     shortcut is not None, jnp.dtype(out_dtype).name)
    out = fn(a, w, bias) if shortcut is None else fn(a, w, bias, shortcut)
    return out if mp == m else out[:m]


def conv1x1(x, p, *, stride=1, relu=True, shortcut=None, out_dtype=jnp.bfloat16):
    """1x1 conv + folded BN (+ReLU, + optional fused residual) -- no im2col."""
    if stride > 1:
        x = x[:, ::stride, ::stride, :]
    n, h, w, cin = x.shape
    a = x.reshape(n * h * w, cin)
    sc = None
    if shortcut is not None:
        sc = shortcut.reshape(n * h * w, shortcut.shape[-1])
    y = gemm_bias(a, p['wm'], p['b'], relu=relu, shortcut=sc, out_dtype=out_dtype)
    return y.reshape(n, h, w, -1)


def conv3x3_s1(x, p):
    """Fused 3x3/stride-1/pad-1 conv + folded BN + ReLU (no patch materialization)."""
    n, h, w, cin = x.shape
    cout = p['w4'].shape[-1]
    wp = w + 2
    th = _pick_th(h)
    nb = h // th
    xp = jnp.pad(x, ((0, 0), (1, 2), (1, 1), (0, 0)))          # zero pad (+tail row)
    flat = xp.reshape(n, (h + 3) * wp, cin)
    if nb == 1:
        flat_len = (h + 3) * wp
        xb = flat.reshape(n, 1, flat_len, cin)                  # no copy
    else:
        flat_len = (th + 2) * wp + 2
        bands = [flat[:, b * th * wp: b * th * wp + flat_len, :] for b in range(nb)]
        xb = jnp.stack(bands, axis=1)                           # ~1.1x input copy
    tn = cout if cout <= 256 else 256
    out = _build_conv3x3(n, nb, flat_len, cin, cout, th, wp, tn)(xb, p['w4'], p['b'])
    out = out.reshape(n, nb, th, wp, cout)[:, :, :, :w, :]      # drop pad columns
    return out.reshape(n, h, w, cout)


def _im2col(x, kh, kw, stride, pad):
    """NHWC(bf16) -> (N*OH*OW, kh*kw*C) patches (feature order (dy, dx, c))."""
    n, h, w, c = x.shape
    xp = jnp.pad(x, ((0, 0), (pad, pad), (pad, pad), (0, 0)))
    oh = (h + 2 * pad - kh) // stride + 1
    ow = (w + 2 * pad - kw) // stride + 1
    cols = []
    for dy in range(kh):
        for dx in range(kw):
            cols.append(xp[:, dy:dy + (oh - 1) * stride + 1:stride,
                           dx:dx + (ow - 1) * stride + 1:stride, :])
    patches = jnp.stack(cols, axis=3)
    return patches.reshape(n * oh * ow, kh * kw * c), oh, ow


def conv_im2col(x, p, kh, kw, stride, pad, relu):
    n = x.shape[0]
    patches, oh, ow = _im2col(x, kh, kw, stride, pad)
    y = gemm_bias(patches, p['wm'], p['b'], relu=relu)
    return y.reshape(n, oh, ow, -1)


def maxpool_3x3_s2(x):
    n, h, w, c = x.shape
    oh = h // 2
    xp = jnp.pad(x, ((0, 0), (1, 1), (1, 1), (0, 0)), constant_values=_NEG)
    out = _build_maxpool(n, h + 2, w + 2, c, oh, w)(xp, xp, xp)  # (n, oh, w, c)
    return out[:, :, ::2, :]                                     # stride-2 columns


def avgpool_fc(x, fc_w, fc_b):
    """Fused global average pool (over HxW) + Linear(2048, 128)."""
    n, h, w, c = x.shape
    out = _build_avgpool_fc(n, h * w, c, fc_w.shape[1])(x.reshape(n, h * w, c),
                                                        fc_w, fc_b)
    return out.reshape(n, fc_w.shape[1])


# ---------------------------------------------------------------------------
# ResNet-50 parameters (deterministic synthetic init, BN folded into weights)
# ---------------------------------------------------------------------------
def _conv_bn_params(key, kh, kw, cin, cout, layout):
    fan_in = kh * kw * cin
    w = jax.random.normal(key, (kh, kw, cin, cout), jnp.float32) * jnp.sqrt(2.0 / fan_in)
    gamma = jnp.ones((cout,), jnp.float32)
    beta = jnp.zeros((cout,), jnp.float32)
    r_mean = jnp.zeros((cout,), jnp.float32)
    r_var = jnp.ones((cout,), jnp.float32)
    scale = gamma / jnp.sqrt(r_var + _BN_EPS)
    bias = beta - r_mean * scale
    w = w * scale                                   # fold BN scale into weights
    p = {'b': bias.reshape(1, cout)}
    if layout == 'mat':
        p['wm'] = w.reshape(kh * kw * cin, cout).astype(jnp.bfloat16)
    else:
        p['w4'] = w.astype(jnp.bfloat16)
    return p


def init_resnet50(key):
    counter = [0]

    def nk():
        counter[0] += 1
        return jax.random.fold_in(key, counter[0])

    params = {'conv1': _conv_bn_params(nk(), 7, 7, 3, 64, 'mat')}
    cfg = [(64, 3, 1), (128, 4, 2), (256, 6, 2), (512, 3, 2)]
    in_ch = 64
    layers = []
    for width, nblocks, stride in cfg:
        blocks = []
        for b in range(nblocks):
            s = stride if b == 0 else 1
            out_ch = width * 4
            blk = {
                'c1': _conv_bn_params(nk(), 1, 1, in_ch, width, 'mat'),
                'c2': _conv_bn_params(nk(), 3, 3, width, width,
                                      'mat' if s != 1 else 'w4'),
                'c3': _conv_bn_params(nk(), 1, 1, width, out_ch, 'mat'),
                'stride': s,
            }
            if s != 1 or in_ch != out_ch:
                blk['ds'] = _conv_bn_params(nk(), 1, 1, in_ch, out_ch, 'mat')
            blocks.append(blk)
            in_ch = out_ch
        layers.append(blocks)
    params['layers'] = layers
    params['fc_w'] = (jax.random.normal(nk(), (2048, 128), jnp.float32)
                      * (1.0 / jnp.sqrt(2048.0))).astype(jnp.bfloat16)
    params['fc_b'] = jnp.zeros((1, 128), jnp.float32)
    return params


# ---------------------------------------------------------------------------
# Forward pass
# ---------------------------------------------------------------------------
def bottleneck(x, p):
    s = p['stride']
    out = conv1x1(x, p['c1'], relu=True)
    if s == 1:
        out = conv3x3_s1(out, p['c2'])
    else:
        out = conv_im2col(out, p['c2'], 3, 3, s, 1, relu=True)
    if 'ds' in p:
        sc = conv1x1(x, p['ds'], stride=s, relu=False)
    else:
        sc = x
    # residual add + ReLU fused into the c3 GEMM epilogue
    return conv1x1(out, p['c3'], relu=True, shortcut=sc)


def spatial_stream_resnet_forward(params, x_nchw):
    """x_nchw: (N, 3, H, W) float32  ->  (N, 128) float32."""
    x = jnp.transpose(x_nchw, (0, 2, 3, 1)).astype(jnp.bfloat16)   # NCHW -> NHWC bf16
    x = conv_im2col(x, params['conv1'], 7, 7, 2, 3, relu=True)
    x = maxpool_3x3_s2(x)
    for blocks in params['layers']:
        for blk in blocks:
            x = bottleneck(x, blk)
    # fused global average pool + Linear(2048, 128)
    return avgpool_fc(x, params['fc_w'], params['fc_b'])


# ---------------------------------------------------------------------------
if __name__ == "__main__":
    key = jax.random.PRNGKey(0)
    params = init_resnet50(key)

    # Small input consistent with the module: NCHW, 3 channels; 64x64 so every stage
    # (including the global average pool) does real work.
    x = jax.random.normal(jax.random.fold_in(key, 12345), (2, 3, 64, 64), jnp.float32)

    out = spatial_stream_resnet_forward(params, x)
    out = jax.block_until_ready(out)

    assert out.shape == (2, 128), out.shape
    assert out.dtype == jnp.float32
    assert bool(jnp.all(jnp.isfinite(out)))
    print("KERNEL_OK")
</pallas_src>

<mosaic_0001>
module attributes {stable_mosaic.version = 11 : i64} {
  func.func @_gemm_bias_kernel(%arg0: i32, %arg1: i32, %arg2: memref<2048x147xbf16, #tpu.memory_space<vmem>>, %arg3: memref<147x64xbf16, #tpu.memory_space<vmem>>, %arg4: memref<1x64xf32, #tpu.memory_space<vmem>>, %arg5: memref<2048x64xbf16, #tpu.memory_space<vmem>>) attributes {dimension_semantics = [#tpu.dimension_semantics<parallel>, #tpu.dimension_semantics<parallel>], iteration_bounds = array<i64: 1, 1>, scalar_prefetch = 0 : i64, scratch_operands = 0 : i64, tpu.core_type = #tpu.core_type<tc>, window_params = [{transform_indices = @transform_0, window_bounds = array<i64: 2048, 147>}, {transform_indices = @transform_1, window_bounds = array<i64: 147, 64>}, {transform_indices = @transform_2, window_bounds = array<i64: 1, 64>}, {transform_indices = @transform_3, window_bounds = array<i64: 2048, 64>}]} {
    %c0 = arith.constant 0 : index
    %c0_0 = arith.constant 0 : index
    %0 = vector.load %arg2[%c0, %c0_0] : memref<2048x147xbf16, #tpu.memory_space<vmem>>, vector<2048x147xbf16>
    %c0_1 = arith.constant 0 : index
    %c0_2 = arith.constant 0 : index
    %1 = vector.load %arg3[%c0_1, %c0_2] : memref<147x64xbf16, #tpu.memory_space<vmem>>, vector<147x64xbf16>
    %cst = arith.constant dense<0.000000e+00> : vector<2048x64xf32>
    %2 = tpu.matmul %0, %1, %cst {dimension_numbers = #tpu.dot_dimension_numbers<[1], [0], [0], [1], [0, 0, 1, 1], [], []>} : vector<2048x147xbf16>, vector<147x64xbf16>, vector<2048x64xf32> -> vector<2048x64xf32>
    %c0_3 = arith.constant 0 : index
    %c0_4 = arith.constant 0 : index
    %3 = vector.load %arg4[%c0_3, %c0_4] : memref<1x64xf32, #tpu.memory_space<vmem>>, vector<1x64xf32>
    %4 = vector.broadcast %3 : vector<1x64xf32> to vector<2048x64xf32>
    %5 = arith.addf %2, %4 : vector<2048x64xf32>
    %cst_5 = arith.constant 0.000000e+00 : f32
    %6 = vector.broadcast %cst_5 : f32 to vector<2048x64xf32>
    %7 = arith.maximumf %5, %6 : vector<2048x64xf32>
    %8 = arith.truncf %7 : vector<2048x64xf32> to vector<2048x64xbf16>
    %c0_6 = arith.constant 0 : index
    %c0_7 = arith.constant 0 : index
    %9 = vector.load %arg5[%c0_6, %c0_7] : memref<2048x64xbf16, #tpu.memory_space<vmem>>, vector<2048x64xbf16>
    tpu.vector_store %arg5[%c0_6, %c0_7], %8 {strides = array<i32>} : memref<2048x64xbf16, #tpu.memory_space<vmem>>, vector<2048x64xbf16>,
    return
  }
  func.func @transform_0(%arg0: i32, %arg1: i32) -> (i32, i32) {
    %c0_i32 = arith.constant 0 : i32
    %c0_i32_0 = arith.constant 0 : i32
    return %arg0, %c0_i32 : i32, i32
  }
  func.func @transform_1(%arg0: i32, %arg1: i32) -> (i32, i32) {
    %c0_i32 = arith.constant 0 : i32
    %c0_i32_0 = arith.constant 0 : i32
    return %c0_i32, %arg1 : i32, i32
  }
  func.func @transform_2(%arg0: i32, %arg1: i32) -> (i32, i32) {
    %c0_i32 = arith.constant 0 : i32
    %c0_i32_0 = arith.constant 0 : i32
    return %c0_i32, %arg1 : i32, i32
  }
  func.func @transform_3(%arg0: i32, %arg1: i32) -> (i32, i32) {
    %c0_i32 = arith.constant 0 : i32
    return %arg0, %arg1 : i32, i32
  }
}

</mosaic_0001>

<bundles_post_ra>
// kernel: tpu_custom_call.1
= control target key start
LH: loop header
LB: loop body
LE: loop exit
PB: predicated region body
PF: predicated region fallthrough
CT: control target
= control target key end

     0   :  { %v5822_v0 = vmov 0   ;;  %vm1506_vm0 = vcmask 154624   ;;  %vm1891_vm1 = vcmask 1040384   ;;  %vm1892_vm2 = vcmask 1041408   ;;  %s8070_s1 = inlined_call_operand.vmem [shape: bf16[147,64], index: 1, kind: input, shape index: {}]   ;;  %s8071_s0 = inlined_call_operand.vmem [shape: bf16[2048,147], index: 0, kind: input, shape index: {}]   ;;  %s8072_s2 = inlined_call_operand.vmem [shape: f32[1,64], index: 2, kind: input, shape index: {}]   ;;  %s8073_s3 = inlined_call_operand.vmem [shape: bf16[2048,64], index: 3, kind: output, shape index: {}]  }
   0x1   :  { %1898 = vmatprep.subr.bf16.mxu0 %v5822_v0  ;;  %5403 = vmatprep.subr.bf16.mxu1 %v5822_v0  ;;  %v5425_v1 = vld [vmem:[%s8070_s1] sm:$0xff]   ;;  %v5426_v2 = vld [vmem:[%s8070_s1 + $0x8] sm:$0xff]   ;;  %v5427_v3 = vld [vmem:[%s8070_s1 + $0x10] sm:$0xff]   ;;  %v5823_v11 = vmov 65535   ;;  %vm4235_vm3 = vcmask 519168  }
   0x2   :  { %1899 = vmatpush1.bf16.msra.mxu0 %v5425_v1  ;;  %5413 = vmatpush1.bf16.msra.mxu1 %v5425_v1  ;;  %v5428_v4 = vld [vmem:[%s8070_s1 + $0x18] sm:$0xff]   ;;  %v5437_v5 = vld [vmem:[%s8071_s0 + $0x4] ss:$8 sps:$4 sm:$0xff]   ;;  %v5431_v9 = vld [vmem:[%s8070_s1 + $0x30] sm:$0xff]   ;;  %v1893_v12 = vsel %vm1891_vm1, 4294967295, %v5823_v11 }
   0x3   :  { %1900 = vmatprep.subr.bf16.mxu0 %v5822_v0  ;;  %5404 = vmatprep.subr.bf16.mxu1 %v5822_v0  ;;  %v5440_v6 = vld [vmem:[%s8071_s0 + $0x404] ss:$8 sps:$4 sm:$0xff]   ;;  %v5432_v10 = vld [vmem:[%s8070_s1 + $0x38] sm:$0xff]   ;;  %v5434_v14 = vld [vmem:[%s8070_s1 + $0x48] ss:$0 sps:$4 sm:$0x33]  }
   0x4   :  { %4763 = vmatprep.mubr.msk.bf16.mxu0 %vm1506_vm0, %v5437_v5  ;;  %v5429_v7 = vld [vmem:[%s8070_s1 + $0x20] sm:$0xff]   ;;  %4827 = vmatprep.mubr.msk.bf16.mxu1 %vm1506_vm0, %v5440_v6  ;;  %v5430_v8 = vld [vmem:[%s8070_s1 + $0x28] sm:$0xff]   ;;  %v1894_v15 = vsel %vm1892_vm2, %v1893_v12, 0  ;;  %v5441_v19 = vld [vmem:[%s8071_s0 + $0x14] ss:$8 sps:$4 sm:$0xff]  }
   0x5   :  { %v5433_v13 = vld [vmem:[%s8070_s1 + $0x40] sm:$0xff]   ;;  %v1896_v16 = vand.u32 %v5434_v14, %v1894_v15  ;;  %v5443_v20 = vld [vmem:[%s8071_s0 + $0x414] ss:$8 sps:$4 sm:$0xff]   ;;  %v5445_v21 = vld [vmem:[%s8071_s0 + $0x10] ss:$8 sps:$4 sm:$0xff]  }
   0x6   :  { %1901 = vmatpush1.bf16.msra.mxu0 %v5426_v2  ;;  %5414 = vmatpush1.bf16.msra.mxu1 %v5426_v2  ;;  %v5435_v17 = vld [vmem:[%s8071_s0] ss:$8 sps:$4 sm:$0xff]   ;;  %v5446_v22 = vld [vmem:[%s8071_s0 + $0x410] ss:$8 sps:$4 sm:$0xff]   ;;  %v5447_v23 = vld [vmem:[%s8071_s0 + $0x24] ss:$8 sps:$4 sm:$0xff]  }
   0x7   :  { %1902 = vmatprep.subr.bf16.mxu0 %v5822_v0  ;;  %5405 = vmatprep.subr.bf16.mxu1 %v5822_v0  ;;  %v5438_v18 = vld [vmem:[%s8071_s0 + $0x400] ss:$8 sps:$4 sm:$0xff]   ;;  %v5449_v24 = vld [vmem:[%s8071_s0 + $0x424] ss:$8 sps:$4 sm:$0xff]   ;;  %v5453_v27 = vld [vmem:[%s8071_s0 + $0x34] ss:$8 sps:$4 sm:$0xff]  }
   0x8   :  { %v5451_v25 = vld [vmem:[%s8071_s0 + $0x20] ss:$8 sps:$4 sm:$0xff]   ;;  %v5455_v28 = vld [vmem:[%s8071_s0 + $0x434] ss:$8 sps:$4 sm:$0xff]   ;;  %v5457_v29 = vld [vmem:[%s8071_s0 + $0x30] ss:$8 sps:$4 sm:$0xff]  }
   0x9   :  { %v5452_v26 = vld [vmem:[%s8071_s0 + $0x420] ss:$8 sps:$4 sm:$0xff]   ;;  %v5458_v30 = vld [vmem:[%s8071_s0 + $0x430] ss:$8 sps:$4 sm:$0xff]   ;;  %v5459_v31 = vld [vmem:[%s8071_s0 + $0x44] ss:$8 sps:$4 sm:$0xff]  }
   0xa   :  { %1903 = vmatpush1.bf16.msra.mxu0 %v5427_v3  ;;  %5415 = vmatpush1.bf16.msra.mxu1 %v5427_v3  ;;  %v5461_v32 = vld [vmem:[%s8071_s0 + $0x444] ss:$8 sps:$4 sm:$0xff]   ;;  %v5463_v33 = vld [vmem:[%s8071_s0 + $0x40] ss:$8 sps:$4 sm:$0xff]   ;;  %v5465_v35 = vld [vmem:[%s8071_s0 + $0x54] ss:$8 sps:$4 sm:$0xff]  }
   0xb   :  { %1904 = vmatprep.subr.bf16.mxu0 %v5822_v0  ;;  %5406 = vmatprep.subr.bf16.mxu1 %v5822_v0  ;;  %v5464_v34 = vld [vmem:[%s8071_s0 + $0x440] ss:$8 sps:$4 sm:$0xff]   ;;  %v5467_v36 = vld [vmem:[%s8071_s0 + $0x454] ss:$8 sps:$4 sm:$0xff]   ;;  %v5469_v37 = vld [vmem:[%s8071_s0 + $0x50] ss:$8 sps:$4 sm:$0xff]  }
   0xc   :  { %v5470_v38 = vld [vmem:[%s8071_s0 + $0x450] ss:$8 sps:$4 sm:$0xff]   ;;  %v5471_v39 = vld [vmem:[%s8071_s0 + $0x64] ss:$8 sps:$4 sm:$0xff]   ;;  %v5475_v41 = vld [vmem:[%s8071_s0 + $0x60] ss:$8 sps:$4 sm:$0xff]  }
   0xd   :  { %v5473_v40 = vld [vmem:[%s8071_s0 + $0x464] ss:$8 sps:$4 sm:$0xff]   ;;  %v5476_v42 = vld [vmem:[%s8071_s0 + $0x460] ss:$8 sps:$4 sm:$0xff]   ;;  %v5477_v43 = vld [vmem:[%s8071_s0 + $0x74] ss:$8 sps:$4 sm:$0xff]  }
   0xe   :  { %1905 = vmatpush1.bf16.msra.mxu0 %v5428_v4  ;;  %5416 = vmatpush1.bf16.msra.mxu1 %v5428_v4  ;;  %v5479_v44 = vld [vmem:[%s8071_s0 + $0x474] ss:$8 sps:$4 sm:$0xff]   ;;  %v5481_v45 = vld [vmem:[%s8071_s0 + $0x70] ss:$8 sps:$4 sm:$0xff]   ;;  %v5483_v47 = vld [vmem:[%s8071_s0 + $0x84] ss:$8 sps:$4 sm:$0xff]  }
   0xf   :  { %1906 = vmatprep.subr.bf16.mxu0 %v5822_v0  ;;  %5407 = vmatprep.subr.bf16.mxu1 %v5822_v0  ;;  %v5482_v46 = vld [vmem:[%s8071_s0 + $0x470] ss:$8 sps:$4 sm:$0xff]   ;;  %v5485_v48 = vld [vmem:[%s8071_s0 + $0x484] ss:$8 sps:$4 sm:$0xff]   ;;  %v5487_v49 = vld [vmem:[%s8071_s0 + $0x80] ss:$8 sps:$4 sm:$0xff]  }
  0x10   :  { %v5488_v50 = vld [vmem:[%s8071_s0 + $0x480] ss:$8 sps:$4 sm:$0xff]   ;;  %v5489_v51 = vld [vmem:[%s8071_s0 + $0x94] ss:$8 sps:$4 sm:$0xff]   ;;  %v5493_v53 = vld [vmem:[%s8071_s0 + $0x90] ss:$8 sps:$4 sm:$0xff]  }
  0x11   :  { %v5491_v52 = vld [vmem:[%s8071_s0 + $0x494] ss:$8 sps:$4 sm:$0xff]   ;;  %v5494_v54 = vld [vmem:[%s8071_s0 + $0x490] ss:$8 sps:$4 sm:$0xff]   ;;  %v5495_v55 = vld [vmem:[%s8071_s0 + $0xa4] ss:$8 sps:$4 sm:$0xff]  }
  0x12   :  { %1907 = vmatpush1.bf16.msra.mxu0 %v5429_v7  ;;  %5417 = vmatpush1.bf16.msra.mxu1 %v5429_v7  ;;  %v5497_v56 = vld [vmem:[%s8071_s0 + $0x4a4] ss:$8 sps:$4 sm:$0xff]   ;;  %v5499_v57 = vld [vmem:[%s8071_s0 + $0xa0] ss:$8 sps:$4 sm:$0xff]   ;;  %v5501_v59 = vld [vmem:[%s8071_s0 + $0xb4] ss:$8 sps:$4 sm:$0xff]  }
  0x13   :  { %1908 = vmatprep.subr.bf16.mxu0 %v5822_v0  ;;  %5408 = vmatprep.subr.bf16.mxu1 %v5822_v0  ;;  %v5500_v58 = vld [vmem:[%s8071_s0 + $0x4a0] ss:$8 sps:$4 sm:$0xff]   ;;  %v5503_v60 = vld [vmem:[%s8071_s0 + $0x4b4] ss:$8 sps:$4 sm:$0xff]   ;;  %v5505_v61 = vld [vmem:[%s8071_s0 + $0xb0] ss:$8 sps:$4 sm:$0xff]  }
  0x14   :  { %v5506_v62 = vld [vmem:[%s8071_s0 + $0x4b0] ss:$8 sps:$4 sm:$0xff]   ;;  %v5507_v63 = vld [vmem:[%s8071_s0 + $0xc4] ss:$8 sps:$4 sm:$0xff]   ;;  %v5511_v1 = vld [vmem:[%s8071_s0 + $0xc0] ss:$8 sps:$4 sm:$0xff]  }
  0x15   :  { %v5512_v2 = vld [vmem:[%s8071_s0 + $0x4c0] ss:$8 sps:$4 sm:$0xff]   ;;  %v5513_v3 = vld [vmem:[%s8071_s0 + $0xd4] ss:$8 sps:$4 sm:$0xff]   ;;  %v5517_v5 = vld [vmem:[%s8071_s0 + $0xd0] ss:$8 sps:$4 sm:$0xff]  }
  0x16   :  { %1909 = vmatpush1.bf16.msra.mxu0 %v5430_v8  ;;  %5418 = vmatpush1.bf16.msra.mxu1 %v5430_v8  ;;  %v5515_v4 = vld [vmem:[%s8071_s0 + $0x4d4] ss:$8 sps:$4 sm:$0xff]   ;;  %v5518_v6 = vld [vmem:[%s8071_s0 + $0x4d0] ss:$8 sps:$4 sm:$0xff]   ;;  %v5519_v7 = vld [vmem:[%s8071_s0 + $0xe4] ss:$8 sps:$4 sm:$0xff]  }
  0x17   :  { %1910 = vmatprep.subr.bf16.mxu0 %v5822_v0  ;;  %5409 = vmatprep.subr.bf16.mxu1 %v5822_v0  ;;  %v5521_v8 = vld [vmem:[%s8071_s0 + $0x4e4] ss:$8 sps:$4 sm:$0xff]   ;;  %v5525_v11 = vld [vmem:[%s8071_s0 + $0xf4] ss:$8 sps:$4 sm:$0xff]   ;;  %v5530_v14 = vld [vmem:[%s8071_s0 + $0x4f0] ss:$8 sps:$4 sm:$0xff]  }
  0x18   :  { %v5527_v12 = vld [vmem:[%s8071_s0 + $0x4f4] ss:$8 sps:$4 sm:$0xff]   ;;  %v5531_v15 = vld [vmem:[%s8071_s0 + $0x104] ss:$8 sps:$4 sm:$0xff]  }
  0x1a   :  { %1911 = vmatpush1.bf16.msra.mxu0 %v5431_v9  ;;  %5419 = vmatpush1.bf16.msra.mxu1 %v5431_v9  ;;  %v5523_v9 = vld [vmem:[%s8071_s0 + $0xe0] ss:$8 sps:$4 sm:$0xff]  }
  0x1b   :  { %1912 = vmatprep.subr.bf16.mxu0 %v5822_v0  ;;  %5410 = vmatprep.subr.bf16.mxu1 %v5822_v0 }
  0x1e   :  { %1913 = vmatpush1.bf16.msra.mxu0 %v5432_v10  ;;  %5420 = vmatpush1.bf16.msra.mxu1 %v5432_v10  ;;  %v5524_v10 = vld [vmem:[%s8071_s0 + $0x4e0] ss:$8 sps:$4 sm:$0xff]  }
  0x1f   :  { %1914 = vmatprep.subr.bf16.mxu0 %v5822_v0  ;;  %5411 = vmatprep.subr.bf16.mxu1 %v5822_v0 }
  0x22   :  { %1915 = vmatpush1.bf16.msra.mxu0 %v5433_v13  ;;  %5421 = vmatpush1.bf16.msra.mxu1 %v5433_v13  ;;  %v5529_v13 = vld [vmem:[%s8071_s0 + $0xf0] ss:$8 sps:$4 sm:$0xff]  }
  0x23   :  { %1916 = vmatprep.subr.bf16.mxu0 %v5822_v0  ;;  %5412 = vmatprep.subr.bf16.mxu1 %v5822_v0  ;;  %v5509_v0 = vld [vmem:[%s8071_s0 + $0x4c4] ss:$8 sps:$4 sm:$0xff]  }
  0x26   :  { %1917 = vmatpush1.bf16.msra.mxu0 %v1896_v16  ;;  %5422 = vmatpush1.bf16.msra.mxu1 %v1896_v16  ;;  %v5533_v16 = vld [vmem:[%s8071_s0 + $0x504] ss:$8 sps:$4 sm:$0xff]  }
  0x29   :  { %1931 = vmatmul.mubr.bf16.vlgmr.msra.gmra.mrb[0].mxu0 %v5435_v17  ;;  %2443 = vmatmul.mubr.bf16.vlgmr.msra.gmra.mrb[0].mxu1 %v5438_v18  ;;  %v5535_v17 = vld [vmem:[%s8071_s0 + $0x100] ss:$8 sps:$4 sm:$0xff]  }
  0x2a   :  { %4764 = vmatprep.mubr.msk.bf16.mxu0 %vm1506_vm0, %v5441_v19  ;;  %4828 = vmatprep.mubr.msk.bf16.mxu1 %vm1506_vm0, %v5443_v20  ;;  %v5536_v18 = vld [vmem:[%s8071_s0 + $0x500] ss:$8 sps:$4 sm:$0xff]   ;;  %v5537_v19 = vld [vmem:[%s8071_s0 + $0x114] ss:$8 sps:$4 sm:$0xff]  }
  0x2b   :  { %v5539_v20 = vld [vmem:[%s8071_s0 + $0x514] ss:$8 sps:$4 sm:$0xff]  }
  0x31   :  { %1939 = vmatmul.mubr.bf16.gmra.mrb[4].mxu0 %v5445_v21  ;;  %2451 = vmatmul.mubr.bf16.gmra.mrb[4].mxu1 %v5446_v22  ;;  %v5541_v21 = vld [vmem:[%s8071_s0 + $0x110] ss:$8 sps:$4 sm:$0xff]  }
  0x32   :  { %4765 = vmatprep.mubr.msk.bf16.mxu0 %vm1506_vm0, %v5447_v23  ;;  %4829 = vmatprep.mubr.msk.bf16.mxu1 %vm1506_vm0, %v5449_v24  ;;  %v5542_v22 = vld [vmem:[%s8071_s0 + $0x510] ss:$8 sps:$4 sm:$0xff]   ;;  %v5543_v23 = vld [vmem:[%s8071_s0 + $0x124] ss:$8 sps:$4 sm:$0xff]  }
  0x33   :  { %v5545_v24 = vld [vmem:[%s8071_s0 + $0x524] ss:$8 sps:$4 sm:$0xff]  }
  0x39   :  { %1947 = vmatmul.mubr.bf16.gmra.mrb[8].mxu0 %v5451_v25  ;;  %2459 = vmatmul.mubr.bf16.gmra.mrb[8].mxu1 %v5452_v26  ;;  %v5547_v25 = vld [vmem:[%s8071_s0 + $0x120] ss:$8 sps:$4 sm:$0xff]  }
  0x3a   :  { %4766 = vmatprep.mubr.msk.bf16.mxu0 %vm1506_vm0, %v5453_v27  ;;  %4830 = vmatprep.mubr.msk.bf16.mxu1 %vm1506_vm0, %v5455_v28  ;;  %v5548_v26 = vld [vmem:[%s8071_s0 + $0x520] ss:$8 sps:$4 sm:$0xff]   ;;  %v5549_v27 = vld [vmem:[%s8071_s0 + $0x134] ss:$8 sps:$4 sm:$0xff]  }
  0x3b   :  { %v5551_v28 = vld [vmem:[%s8071_s0 + $0x534] ss:$8 sps:$4 sm:$0xff]  }
  0x41   :  { %1955 = vmatmul.mubr.bf16.gmra.mrb[12].mxu0 %v5457_v29  ;;  %2467 = vmatmul.mubr.bf16.gmra.mrb[12].mxu1 %v5458_v30  ;;  %v5553_v29 = vld [vmem:[%s8071_s0 + $0x130] ss:$8 sps:$4 sm:$0xff]  }
  0x42   :  { %4767 = vmatprep.mubr.msk.bf16.mxu0 %vm1506_vm0, %v5459_v31  ;;  %4831 = vmatprep.mubr.msk.bf16.mxu1 %vm1506_vm0, %v5461_v32  ;;  %v5554_v30 = vld [vmem:[%s8071_s0 + $0x530] ss:$8 sps:$4 sm:$0xff]   ;;  %v5555_v31 = vld [vmem:[%s8071_s0 + $0x144] ss:$8 sps:$4 sm:$0xff]  }
  0x43   :  { %v5557_v32 = vld [vmem:[%s8071_s0 + $0x544] ss:$8 sps:$4 sm:$0xff]  }
  0x49   :  { %1963 = vmatmul.mubr.bf16.gmra.mrb[16].mxu0 %v5463_v33  ;;  %2475 = vmatmul.mubr.bf16.gmra.mrb[16].mxu1 %v5464_v34  ;;  %v5559_v33 = vld [vmem:[%s8071_s0 + $0x140] ss:$8 sps:$4 sm:$0xff]  }
  0x4a   :  { %4768 = vmatprep.mubr.msk.bf16.mxu0 %vm1506_vm0, %v5465_v35  ;;  %4832 = vmatprep.mubr.msk.bf16.mxu1 %vm1506_vm0, %v5467_v36  ;;  %v5560_v34 = vld [vmem:[%s8071_s0 + $0x540] ss:$8 sps:$4 sm:$0xff]   ;;  %v5561_v35 = vld [vmem:[%s8071_s0 + $0x154] ss:$8 sps:$4 sm:$0xff]  }
  0x4b   :  { %v5563_v36 = vld [vmem:[%s8071_s0 + $0x554] ss:$8 sps:$4 sm:$0xff]  }
  0x51   :  { %1971 = vmatmul.mubr.bf16.gmra.mrb[20].mxu0 %v5469_v37  ;;  %2483 = vmatmul.mubr.bf16.gmra.mrb[20].mxu1 %v5470_v38  ;;  %v5565_v37 = vld [vmem:[%s8071_s0 + $0x150] ss:$8 sps:$4 sm:$0xff]  }
  0x52   :  { %4769 = vmatprep.mubr.msk.bf16.mxu0 %vm1506_vm0, %v5471_v39  ;;  %4833 = vmatprep.mubr.msk.bf16.mxu1 %vm1506_vm0, %v5473_v40  ;;  %v5566_v38 = vld [vmem:[%s8071_s0 + $0x550] ss:$8 sps:$4 sm:$0xff]   ;;  %v5567_v39 = vld [vmem:[%s8071_s0 + $0x164] ss:$8 sps:$4 sm:$0xff]  }
  0x53   :  { %v5569_v40 = vld [vmem:[%s8071_s0 + $0x564] ss:$8 sps:$4 sm:$0xff]  }
  0x59   :  { %1979 = vmatmul.mubr.bf16.gmra.mrb[24].mxu0 %v5475_v41  ;;  %2491 = vmatmul.mubr.bf16.gmra.mrb[24].mxu1 %v5476_v42  ;;  %v5571_v41 = vld [vmem:[%s8071_s0 + $0x160] ss:$8 sps:$4 sm:$0xff]  }
  0x5a   :  { %4770 = vmatprep.mubr.msk.bf16.mxu0 %vm1506_vm0, %v5477_v43  ;;  %4834 = vmatprep.mubr.msk.bf16.mxu1 %vm1506_vm0, %v5479_v44  ;;  %v5572_v42 = vld [vmem:[%s8071_s0 + $0x560] ss:$8 sps:$4 sm:$0xff]   ;;  %v5573_v43 = vld [vmem:[%s8071_s0 + $0x174] ss:$8 sps:$4 sm:$0xff]  }
  0x5b   :  { %v5575_v44 = vld [vmem:[%s8071_s0 + $0x574] ss:$8 sps:$4 sm:$0xff]  }
  0x61   :  { %1987 = vmatmul.mubr.bf16.gmra.mrb[28].mxu0 %v5481_v45  ;;  %2499 = vmatmul.mubr.bf16.gmra.mrb[28].mxu1 %v5482_v46  ;;  %v5577_v45 = vld [vmem:[%s8071_s0 + $0x170] ss:$8 sps:$4 sm:$0xff]  }
  0x62   :  { %4771 = vmatprep.mubr.msk.bf16.mxu0 %vm1506_vm0, %v5483_v47  ;;  %4835 = vmatprep.mubr.msk.bf16.mxu1 %vm1506_vm0, %v5485_v48  ;;  %v5578_v46 = vld [vmem:[%s8071_s0 + $0x570] ss:$8 sps:$4 sm:$0xff]   ;;  %v5579_v47 = vld [vmem:[%s8071_s0 + $0x184] ss:$8 sps:$4 sm:$0xff]  }
  0x63   :  { %v5581_v48 = vld [vmem:[%s8071_s0 + $0x584] ss:$8 sps:$4 sm:$0xff]  }
  0x69   :  { %1995 = vmatmul.mubr.bf16.gmra.mrb[32].mxu0 %v5487_v49  ;;  %2507 = vmatmul.mubr.bf16.gmra.mrb[32].mxu1 %v5488_v50  ;;  %v5583_v49 = vld [vmem:[%s8071_s0 + $0x180] ss:$8 sps:$4 sm:$0xff]  }
  0x6a   :  { %4772 = vmatprep.mubr.msk.bf16.mxu0 %vm1506_vm0, %v5489_v51  ;;  %4836 = vmatprep.mubr.msk.bf16.mxu1 %vm1506_vm0, %v5491_v52  ;;  %v5584_v50 = vld [vmem:[%s8071_s0 + $0x580] ss:$8 sps:$4 sm:$0xff]   ;;  %v5585_v51 = vld [vmem:[%s8071_s0 + $0x194] ss:$8 sps:$4 sm:$0xff]  }
  0x6b   :  { %v5587_v52 = vld [vmem:[%s8071_s0 + $0x594] ss:$8 sps:$4 sm:$0xff]  }
  0x71   :  { %2003 = vmatmul.mubr.bf16.gmra.mrb[36].mxu0 %v5493_v53  ;;  %2515 = vmatmul.mubr.bf16.gmra.mrb[36].mxu1 %v5494_v54  ;;  %v5589_v53 = vld [vmem:[%s8071_s0 + $0x190] ss:$8 sps:$4 sm:$0xff]  }
  0x72   :  { %4773 = vmatprep.mubr.msk.bf16.mxu0 %vm1506_vm0, %v5495_v55  ;;  %4837 = vmatprep.mubr.msk.bf16.mxu1 %vm1506_vm0, %v5497_v56  ;;  %v5590_v54 = vld [vmem:[%s8071_s0 + $0x590] ss:$8 sps:$4 sm:$0xff]   ;;  %v5591_v55 = vld [vmem:[%s8071_s0 + $0x1a4] ss:$8 sps:$4 sm:$0xff]  }
  0x73   :  { %v5593_v56 = vld [vmem:[%s8071_s0 + $0x5a4] ss:$8 sps:$4 sm:$0xff]  }
  0x79   :  { %2011 = vmatmul.mubr.bf16.gmra.mrb[40].mxu0 %v5499_v57  ;;  %2523 = vmatmul.mubr.bf16.gmra.mrb[40].mxu1 %v5500_v58  ;;  %v5595_v57 = vld [vmem:[%s8071_s0 + $0x1a0] ss:$8 sps:$4 sm:$0xff]  }
  0x7a   :  { %4774 = vmatprep.mubr.msk.bf16.mxu0 %vm1506_vm0, %v5501_v59  ;;  %4838 = vmatprep.mubr.msk.bf16.mxu1 %vm1506_vm0, %v5503_v60  ;;  %v5596_v58 = vld [vmem:[%s8071_s0 + $0x5a0] ss:$8 sps:$4 sm:$0xff]   ;;  %v5597_v59 = vld [vmem:[%s8071_s0 + $0x1b4] ss:$8 sps:$4 sm:$0xff]  }
  0x7b   :  { %v5599_v60 = vld [vmem:[%s8071_s0 + $0x5b4] ss:$8 sps:$4 sm:$0xff]  }
  0x81   :  { %2019 = vmatmul.mubr.bf16.gmra.mrb[44].mxu0 %v5505_v61  ;;  %2531 = vmatmul.mubr.bf16.gmra.mrb[44].mxu1 %v5506_v62  ;;  %v6261_v61 = vld [vmem:[%s8072_s2] ss:$0 sm:$0xff] }
  0x82   :  { %4775 = vmatprep.mubr.msk.bf16.mxu0 %vm1506_vm0, %v5507_v63  ;;  %4839 = vmatprep.mubr.msk.bf16.mxu1 %vm1506_vm0, %v5509_v0 }
  0x89   :  { %2027 = vmatmul.mubr.bf16.gmra.mrb[48].mxu0 %v5511_v1  ;;  %2539 = vmatmul.mubr.bf16.gmra.mrb[48].mxu1 %v5512_v2 }
  0x8a   :  { %4776 = vmatprep.mubr.msk.bf16.mxu0 %vm1506_vm0, %v5513_v3  ;;  %4840 = vmatprep.mubr.msk.bf16.mxu1 %vm1506_vm0, %v5515_v4  ;;  %v5601_v4 = vld [vmem:[%s8071_s0 + $0x1b0] ss:$8 sps:$4 sm:$0xff]  }
  0x91   :  { %2035 = vmatmul.mubr.bf16.gmra.mrb[52].mxu0 %v5517_v5  ;;  %2547 = vmatmul.mubr.bf16.gmra.mrb[52].mxu1 %v5518_v6  ;;  %v5602_v5 = vld [vmem:[%s8071_s0 + $0x5b0] ss:$8 sps:$4 sm:$0xff]  }
  0x92   :  { %4777 = vmatprep.mubr.msk.bf16.mxu0 %vm1506_vm0, %v5519_v7  ;;  %4841 = vmatprep.mubr.msk.bf16.mxu1 %vm1506_vm0, %v5521_v8  ;;  %v5603_v8 = vld [vmem:[%s8071_s0 + $0x1c4] ss:$8 sps:$4 sm:$0xff]  }
  0x99   :  { %2043 = vmatmul.mubr.bf16.gmra.mrb[56].mxu0 %v5523_v9  ;;  %2555 = vmatmul.mubr.bf16.gmra.mrb[56].mxu1 %v5524_v10  ;;  %v5605_v9 = vld [vmem:[%s8071_s0 + $0x5c4] ss:$8 sps:$4 sm:$0xff]  }
  0x9a   :  { %4778 = vmatprep.mubr.msk.bf16.mxu0 %vm1506_vm0, %v5525_v11  ;;  %4842 = vmatprep.mubr.msk.bf16.mxu1 %vm1506_vm0, %v5527_v12 }
  0xa1   :  { %2051 = vmatmul.mubr.bf16.gmra.mrb[60].mxu0 %v5529_v13  ;;  %2563 = vmatmul.mubr.bf16.gmra.mrb[60].mxu1 %v5530_v14 }
  0xa2   :  { %4779 = vmatprep.mubr.msk.bf16.mxu0 %vm1506_vm0, %v5531_v15  ;;  %4843 = vmatprep.mubr.msk.bf16.mxu1 %vm1506_vm0, %v5533_v16 }
  0xa9   :  { %2059 = vmatmul.mubr.bf16.gmra.mrb[64].mxu0 %v5535_v17  ;;  %2571 = vmatmul.mubr.bf16.gmra.mrb[64].mxu1 %v5536_v18 }
  0xaa   :  { %4780 = vmatprep.mubr.msk.bf16.mxu0 %vm1506_vm0, %v5537_v19  ;;  %4844 = vmatprep.mubr.msk.bf16.mxu1 %vm1506_vm0, %v5539_v20 }
  0xb1   :  { %2067 = vmatmul.mubr.bf16.gmra.mrb[68].mxu0 %v5541_v21  ;;  %2579 = vmatmul.mubr.bf16.gmra.mrb[68].mxu1 %v5542_v22 }
  0xb2   :  { %4781 = vmatprep.mubr.msk.bf16.mxu0 %vm1506_vm0, %v5543_v23  ;;  %4845 = vmatprep.mubr.msk.bf16.mxu1 %vm1506_vm0, %v5545_v24 }
  0xb9   :  { %2075 = vmatmul.mubr.bf16.gmra.mrb[72].mxu0 %v5547_v25  ;;  %2587 = vmatmul.mubr.bf16.gmra.mrb[72].mxu1 %v5548_v26 }
  0xba   :  { %4782 = vmatprep.mubr.msk.bf16.mxu0 %vm1506_vm0, %v5549_v27  ;;  %4846 = vmatprep.mubr.msk.bf16.mxu1 %vm1506_vm0, %v5551_v28  ;;  %v5607_v28 = vld [vmem:[%s8071_s0 + $0x1c0] ss:$8 sps:$4 sm:$0xff]  }
  0xc1   :  { %2083 = vmatmul.mubr.bf16.gmra.mrb[76].mxu0 %v5553_v29  ;;  %2595 = vmatmul.mubr.bf16.gmra.mrb[76].mxu1 %v5554_v30  ;;  %v5608_v29 = vld [vmem:[%s8071_s0 + $0x5c0] ss:$8 sps:$4 sm:$0xff]  }
  0xc2   :  { %4783 = vmatprep.mubr.msk.bf16.mxu0 %vm1506_vm0, %v5555_v31  ;;  %4847 = vmatprep.mubr.msk.bf16.mxu1 %vm1506_vm0, %v5557_v32  ;;  %v5609_v32 = vld [vmem:[%s8071_s0 + $0x1d4] ss:$8 sps:$4 sm:$0xff]  }
  0xc9   :  { %2091 = vmatmul.mubr.bf16.gmra.mrb[80].mxu0 %v5559_v33  ;;  %2603 = vmatmul.mubr.bf16.gmra.mrb[80].mxu1 %v5560_v34  ;;  %v5611_v33 = vld [vmem:[%s8071_s0 + $0x5d4] ss:$8 sps:$4 sm:$0xff]  }
  0xca   :  { %4784 = vmatprep.mubr.msk.bf16.mxu0 %vm1506_vm0, %v5561_v35  ;;  %4848 = vmatprep.mubr.msk.bf16.mxu1 %vm1506_vm0, %v5563_v36 }
  0xd1   :  { %2099 = vmatmul.mubr.bf16.gmra.mrb[84].mxu0 %v5565_v37  ;;  %2611 = vmatmul.mubr.bf16.gmra.mrb[84].mxu1 %v5566_v38 }
  0xd2   :  { %4785 = vmatprep.mubr.msk.bf16.mxu0 %vm1506_vm0, %v5567_v39  ;;  %4849 = vmatprep.mubr.msk.bf16.mxu1 %vm1506_vm0, %v5569_v40 }
  0xd9   :  { %2107 = vmatmul.mubr.bf16.gmra.mrb[88].mxu0 %v5571_v41  ;;  %2619 = vmatmul.mubr.bf16.gmra.mrb[88].mxu1 %v5572_v42 }
  0xda   :  { %4786 = vmatprep.mubr.msk.bf16.mxu0 %vm1506_vm0, %v5573_v43  ;;  %4850 = vmatprep.mubr.msk.bf16.mxu1 %vm1506_vm0, %v5575_v44 }
  0xe1   :  { %2115 = vmatmul.mubr.bf16.gmra.mrb[92].mxu0 %v5577_v45  ;;  %2627 = vmatmul.mubr.bf16.gmra.mrb[92].mxu1 %v5578_v46 }
  0xe2   :  { %4787 = vmatprep.mubr.msk.bf16.mxu0 %vm1506_vm0, %v5579_v47  ;;  %4851 = vmatprep.mubr.msk.bf16.mxu1 %vm1506_vm0, %v5581_v48 }
  0xe9   :  { %2123 = vmatmul.mubr.bf16.gmra.mrb[96].mxu0 %v5583_v49  ;;  %2635 = vmatmul.mubr.bf16.gmra.mrb[96].mxu1 %v5584_v50 }
  0xea   :  { %4788 = vmatprep.mubr.msk.bf16.mxu0 %vm1506_vm0, %v5585_v51  ;;  %4852 = vmatprep.mubr.msk.bf16.mxu1 %vm1506_vm0, %v5587_v52  ;;  %v5613_v52 = vld [vmem:[%s8071_s0 + $0x1d0] ss:$8 sps:$4 sm:$0xff]  }
  0xf1   :  { %2131 = vmatmul.mubr.bf16.gmra.mrb[100].mxu0 %v5589_v53  ;;  %2643 = vmatmul.mubr.bf16.gmra.mrb[100].mxu1 %v5590_v54  ;;  %v5614_v53 = vld [vmem:[%s8071_s0 + $0x5d0] ss:$8 sps:$4 sm:$0xff]  }
  0xf2   :  { %4789 = vmatprep.mubr.msk.bf16.mxu0 %vm1506_vm0, %v5591_v55  ;;  %4853 = vmatprep.mubr.msk.bf16.mxu1 %vm1506_vm0, %v5593_v56  ;;  %v5615_v56 = vld [vmem:[%s8071_s0 + $0x1e4] ss:$8 sps:$4 sm:$0xff]  }
  0xf9   :  { %2139 = vmatmul.mubr.bf16.gmra.mrb[104].mxu0 %v5595_v57  ;;  %2651 = vmatmul.mubr.bf16.gmra.mrb[104].mxu1 %v5596_v58  ;;  %v5617_v57 = vld [vmem:[%s8071_s0 + $0x5e4] ss:$8 sps:$4 sm:$0xff]  }
  0xfa   :  { %4790 = vmatprep.mubr.msk.bf16.mxu0 %vm1506_vm0, %v5597_v59  ;;  %4854 = vmatprep.mubr.msk.bf16.mxu1 %vm1506_vm0, %v5599_v60 }
  0xfc   :  { %v1932_v62 = vpop.f32.mrb[0].mxu0  ;;  %v2444_v63 = vpop.f32.mrb[0].mxu1 }
  0xfd   :  { %v1933_v0 = vadd.f32 %v6261_v61, %v1932_v62  ;;  %v2445_v1 = vadd.f32 %v6261_v61, %v2444_v63  ;;  %v1934_v2 = vpop.f32.mrb[1].mxu0  ;;  %v2446_v3 = vpop.f32.mrb[1].mxu1 }
  0xfe   :  { %v1935_v6 = vpop.f32.mrb[2].mxu0  ;;  %v2447_v7 = vpop.f32.mrb[2].mxu1 }
  0xff   :  { %v2955_v10 = vmax.f32 %v1933_v0, 0.0  ;;  %v3083_v11 = vmax.f32 %v2445_v1, 0.0  ;;  %v1936_v12 = vadd.f32 %v6261_v61, %v1935_v6  ;;  %v2448_v13 = vadd.f32 %v6261_v61, %v2447_v7  ;;  %v1937_v14 = vpop.f32.mrb[3].mxu0  ;;  %v2449_v15 = vpop.f32.mrb[3].mxu1 }
 0x100   :  { %v5620_v14 = vld [vmem:[%s8071_s0 + $0x5e0] ss:$8 sps:$4 sm:$0xff]  }
 0x101   :  { %v5147_v16 = vpack.c.bf16 %v2955_v10, %v2955_v10  ;;  %v5275_v17 = vpack.c.bf16 %v3083_v11, %v3083_v11  ;;  %v2956_v18 = vmax.f32 %v1936_v12, 0.0  ;;  %v3084_v19 = vmax.f32 %v2448_v13, 0.0  ;;  %2147 = vmatmul.mubr.bf16.gmra.mrb[108].mxu0 %v5601_v4  ;;  %2659 = vmatmul.mubr.bf16.gmra.mrb[108].mxu1 %v5602_v5  ;;  %v5619_v13 = vld [vmem:[%s8071_s0 + $0x1e0] ss:$8 sps:$4 sm:$0xff]  }
 0x102   :  { %4791 = vmatprep.mubr.msk.bf16.mxu0 %vm1506_vm0, %v5603_v8  ;;  %4855 = vmatprep.mubr.msk.bf16.mxu1 %vm1506_vm0, %v5605_v9 }
 0x103   :  { %4236 = vst.msk [vmem:[%s8073_s3] sm:$0xf] %vm4235_vm3, %v5147_v16  ;;  %4364 = vst.msk [vmem:[%s8073_s3 + $0x200] sm:$0xf] %vm4235_vm3, %v5275_v17  ;;  %v5148_v20 = vpack.c.bf16 %v2956_v18, %v2956_v18  ;;  %v5276_v21 = vpack.c.bf16 %v3084_v19, %v3084_v19  ;;  %v5621_v17 = vld [vmem:[%s8071_s0 + $0x1f4] ss:$8 sps:$4 sm:$0xff]  }
 0x104   :  { %v1940_v22 = vpop.f32.mrb[4].mxu0  ;;  %v2452_v23 = vpop.f32.mrb[4].mxu1  ;;  %v5623_v18 = vld [vmem:[%s8071_s0 + $0x5f4] ss:$8 sps:$4 sm:$0xff]  }
 0x105   :  { %4237 = vst.msk [vmem:[%s8073_s3 + $0x4] sm:$0xf] %vm4235_vm3, %v5148_v20  ;;  %4365 = vst.msk [vmem:[%s8073_s3 + $0x204] sm:$0xf] %vm4235_vm3, %v5276_v21  ;;  %v1941_v24 = vadd.f32 %v6261_v61, %v1940_v22  ;;  %v2453_v25 = vadd.f32 %v6261_v61, %v2452_v23  ;;  %v1942_v26 = vpop.f32.mrb[5].mxu0  ;;  %v2454_v27 = vpop.f32.mrb[5].mxu1 }
 0x106   :  { %v1943_v30 = vpop.f32.mrb[6].mxu0  ;;  %v2455_v31 = vpop.f32.mrb[6].mxu1 }
 0x107   :  { %v2957_v34 = vmax.f32 %v1941_v24, 0.0  ;;  %v3085_v35 = vmax.f32 %v2453_v25, 0.0  ;;  %v1944_v36 = vadd.f32 %v6261_v61, %v1943_v30  ;;  %v2456_v37 = vadd.f32 %v6261_v61, %v2455_v31  ;;  %v1945_v38 = vpop.f32.mrb[7].mxu0  ;;  %v2457_v39 = vpop.f32.mrb[7].mxu1 }
 0x108   :  { %v5626_v38 = vld [vmem:[%s8071_s0 + $0x5f0] ss:$8 sps:$4 sm:$0xff]  }
 0x109   :  { %v5149_v40 = vpack.c.bf16 %v2957_v34, %v2957_v34  ;;  %v5277_v41 = vpack.c.bf16 %v3085_v35, %v3085_v35  ;;  %v2958_v42 = vmax.f32 %v1944_v36, 0.0  ;;  %v3086_v43 = vmax.f32 %v2456_v37, 0.0  ;;  %2155 = vmatmul.mubr.bf16.gmra.mrb[112].mxu0 %v5607_v28  ;;  %2667 = vmatmul.mubr.bf16.gmra.mrb[112].mxu1 %v5608_v29  ;;  %v5625_v37 = vld [vmem:[%s8071_s0 + $0x1f0] ss:$8 sps:$4 sm:$0xff]  }
 0x10a   :  { %4792 = vmatprep.mubr.msk.bf16.mxu0 %vm1506_vm0, %v5609_v32  ;;  %4856 = vmatprep.mubr.msk.bf16.mxu1 %vm1506_vm0, %v5611_v33 }
 0x10b   :  { %4238 = vst.msk [vmem:[%s8073_s3 + $0x8] sm:$0xf] %vm4235_vm3, %v5149_v40  ;;  %4366 = vst.msk [vmem:[%s8073_s3 + $0x208] sm:$0xf] %vm4235_vm3, %v5277_v41  ;;  %v5150_v44 = vpack.c.bf16 %v2958_v42, %v2958_v42  ;;  %v5278_v45 = vpack.c.bf16 %v3086_v43, %v3086_v43  ;;  %v5627_v41 = vld [vmem:[%s8071_s0 + $0x204] ss:$8 sps:$4 sm:$0xff]  }
 0x10c   :  { %v1948_v46 = vpop.f32.mrb[8].mxu0  ;;  %v2460_v47 = vpop.f32.mrb[8].mxu1  ;;  %v5629_v42 = vld [vmem:[%s8071_s0 + $0x604] ss:$8 sps:$4 sm:$0xff]  }
 0x10d   :  { %4239 = vst.msk [vmem:[%s8073_s3 + $0xc] sm:$0xf] %vm4235_vm3, %v5150_v44  ;;  %4367 = vst.msk [vmem:[%s8073_s3 + $0x20c] sm:$0xf] %vm4235_vm3, %v5278_v45  ;;  %v1949_v48 = vadd.f32 %v6261_v61, %v1948_v46  ;;  %v2461_v49 = vadd.f32 %v6261_v61, %v2460_v47  ;;  %v1950_v50 = vpop.f32.mrb[9].mxu0  ;;  %v2462_v51 = vpop.f32.mrb[9].mxu1 }
 0x10e   :  { %v1951_v54 = vpop.f32.mrb[10].mxu0  ;;  %v2463_v55 = vpop.f32.mrb[10].mxu1 }
 0x10f   :  { %v2959_v58 = vmax.f32 %v1949_v48, 0.0  ;;  %v3087_v59 = vmax.f32 %v2461_v49, 0.0  ;;  %v1952_v60 = vadd.f32 %v6261_v61, %v1951_v54  ;;  %v2464_v62 = vadd.f32 %v6261_v61, %v2463_v55  ;;  %v1953_v63 = vpop.f32.mrb[11].mxu0  ;;  %v2465_v0 = vpop.f32.mrb[11].mxu1 }
 0x110   :  { %v5632_v63 = vld [vmem:[%s8071_s0 + $0x600] ss:$8 sps:$4 sm:$0xff]  }
 0x111   :  { %v5151_v1 = vpack.c.bf16 %v2959_v58, %v2959_v58  ;;  %v5279_v2 = vpack.c.bf16 %v3087_v59, %v3087_v59  ;;  %v2960_v3 = vmax.f32 %v1952_v60, 0.0  ;;  %v3088_v4 = vmax.f32 %v2464_v62, 0.0  ;;  %2163 = vmatmul.mubr.bf16.gmra.mrb[116].mxu0 %v5613_v52  ;;  %2675 = vmatmul.mubr.bf16.gmra.mrb[116].mxu1 %v5614_v53  ;;  %v5631_v62 = vld [vmem:[%s8071_s0 + $0x200] ss:$8 sps:$4 sm:$0xff]  }
 0x112   :  { %4793 = vmatprep.mubr.msk.bf16.mxu0 %vm1506_vm0, %v5615_v56  ;;  %4857 = vmatprep.mubr.msk.bf16.mxu1 %vm1506_vm0, %v5617_v57 }
 0x113   :  { %4240 = vst.msk [vmem:[%s8073_s3 + $0x10] sm:$0xf] %vm4235_vm3, %v5151_v1  ;;  %4368 = vst.msk [vmem:[%s8073_s3 + $0x210] sm:$0xf] %vm4235_vm3, %v5279_v2  ;;  %v5152_v5 = vpack.c.bf16 %v2960_v3, %v2960_v3  ;;  %v5280_v6 = vpack.c.bf16 %v3088_v4, %v3088_v4  ;;  %v5633_v2 = vld [vmem:[%s8071_s0 + $0x214] ss:$8 sps:$4 sm:$0xff]  }
 0x114   :  { %v1956_v7 = vpop.f32.mrb[12].mxu0  ;;  %v2468_v8 = vpop.f32.mrb[12].mxu1  ;;  %v5635_v3 = vld [vmem:[%s8071_s0 + $0x614] ss:$8 sps:$4 sm:$0xff]  }
 0x115   :  { %4241 = vst.msk [vmem:[%s8073_s3 + $0x14] sm:$0xf] %vm4235_vm3, %v5152_v5  ;;  %4369 = vst.msk [vmem:[%s8073_s3 + $0x214] sm:$0xf] %vm4235_vm3, %v5280_v6  ;;  %v1957_v9 = vadd.f32 %v6261_v61, %v1956_v7  ;;  %v2469_v10 = vadd.f32 %v6261_v61, %v2468_v8  ;;  %v1958_v11 = vpop.f32.mrb[13].mxu0  ;;  %v2470_v12 = vpop.f32.mrb[13].mxu1 }
 0x116   :  { %v1959_v15 = vpop.f32.mrb[14].mxu0  ;;  %v2471_v16 = vpop.f32.mrb[14].mxu1 }
 0x117   :  { %v2961_v19 = vmax.f32 %v1957_v9, 0.0  ;;  %v3089_v20 = vmax.f32 %v2469_v10, 0.0  ;;  %v1960_v21 = vadd.f32 %v6261_v61, %v1959_v15  ;;  %v2472_v22 = vadd.f32 %v6261_v61, %v2471_v16  ;;  %v1961_v23 = vpop.f32.mrb[15].mxu0  ;;  %v2473_v24 = vpop.f32.mrb[15].mxu1 }
 0x118   :  { %v5638_v23 = vld [vmem:[%s8071_s0 + $0x610] ss:$8 sps:$4 sm:$0xff]  }
 0x119   :  { %v5153_v25 = vpack.c.bf16 %v2961_v19, %v2961_v19  ;;  %v5281_v26 = vpack.c.bf16 %v3089_v20, %v3089_v20  ;;  %v2962_v27 = vmax.f32 %v1960_v21, 0.0  ;;  %v3090_v28 = vmax.f32 %v2472_v22, 0.0  ;;  %2171 = vmatmul.mubr.bf16.gmra.mrb[120].mxu0 %v5619_v13  ;;  %2683 = vmatmul.mubr.bf16.gmra.mrb[120].mxu1 %v5620_v14  ;;  %v5637_v22 = vld [vmem:[%s8071_s0 + $0x210] ss:$8 sps:$4 sm:$0xff]  }
 0x11a   :  { %4794 = vmatprep.mubr.msk.bf16.mxu0 %vm1506_vm0, %v5621_v17  ;;  %4858 = vmatprep.mubr.msk.bf16.mxu1 %vm1506_vm0, %v5623_v18 }
 0x11b   :  { %4242 = vst.msk [vmem:[%s8073_s3 + $0x18] sm:$0xf] %vm4235_vm3, %v5153_v25  ;;  %4370 = vst.msk [vmem:[%s8073_s3 + $0x218] sm:$0xf] %vm4235_vm3, %v5281_v26  ;;  %v5154_v29 = vpack.c.bf16 %v2962_v27, %v2962_v27  ;;  %v5282_v30 = vpack.c.bf16 %v3090_v28, %v3090_v28  ;;  %v5639_v26 = vld [vmem:[%s8071_s0 + $0x224] ss:$8 sps:$4 sm:$0xff]  }
 0x11c   :  { %v1964_v31 = vpop.f32.mrb[16].mxu0  ;;  %v2476_v32 = vpop.f32.mrb[16].mxu1  ;;  %v5641_v27 = vld [vmem:[%s8071_s0 + $0x624] ss:$8 sps:$4 sm:$0xff]  }
 0x11d   :  { %4243 = vst.msk [vmem:[%s8073_s3 + $0x1c] sm:$0xf] %vm4235_vm3, %v5154_v29  ;;  %4371 = vst.msk [vmem:[%s8073_s3 + $0x21c] sm:$0xf] %vm4235_vm3, %v5282_v30  ;;  %v1965_v33 = vadd.f32 %v6261_v61, %v1964_v31  ;;  %v2477_v34 = vadd.f32 %v6261_v61, %v2476_v32  ;;  %v1966_v35 = vpop.f32.mrb[17].mxu0  ;;  %v2478_v36 = vpop.f32.mrb[17].mxu1 }
 0x11e   :  { %v1967_v39 = vpop.f32.mrb[18].mxu0  ;;  %v2479_v40 = vpop.f32.mrb[18].mxu1 }
 0x11f   :  { %v2963_v43 = vmax.f32 %v1965_v33, 0.0  ;;  %v3091_v44 = vmax.f32 %v2477_v34, 0.0  ;;  %v1968_v45 = vadd.f32 %v6261_v61, %v1967_v39  ;;  %v2480_v46 = vadd.f32 %v6261_v61, %v2479_v40  ;;  %v1969_v47 = vpop.f32.mrb[19].mxu0  ;;  %v2481_v48 = vpop.f32.mrb[19].mxu1 }
 0x120   :  { %v5644_v47 = vld [vmem:[%s8071_s0 + $0x620] ss:$8 sps:$4 sm:$0xff]  }
 0x121   :  { %v5155_v49 = vpack.c.bf16 %v2963_v43, %v2963_v43  ;;  %v5283_v50 = vpack.c.bf16 %v3091_v44, %v3091_v44  ;;  %v2964_v51 = vmax.f32 %v1968_v45, 0.0  ;;  %v3092_v52 = vmax.f32 %v2480_v46, 0.0  ;;  %2179 = vmatmul.mubr.bf16.gmra.mrb[124].mxu0 %v5625_v37  ;;  %2691 = vmatmul.mubr.bf16.gmra.mrb[124].mxu1 %v5626_v38  ;;  %v5643_v46 = vld [vmem:[%s8071_s0 + $0x220] ss:$8 sps:$4 sm:$0xff]  }
 0x122   :  { %4795 = vmatprep.mubr.msk.bf16.mxu0 %vm1506_vm0, %v5627_v41  ;;  %4859 = vmatprep.mubr.msk.bf16.mxu1 %vm1506_vm0, %v5629_v42 }
 0x123   :  { %4244 = vst.msk [vmem:[%s8073_s3 + $0x20] sm:$0xf] %vm4235_vm3, %v5155_v49  ;;  %4372 = vst.msk [vmem:[%s8073_s3 + $0x220] sm:$0xf] %vm4235_vm3, %v5283_v50  ;;  %v5156_v53 = vpack.c.bf16 %v2964_v51, %v2964_v51  ;;  %v5284_v54 = vpack.c.bf16 %v3092_v52, %v3092_v52  ;;  %v5645_v50 = vld [vmem:[%s8071_s0 + $0x234] ss:$8 sps:$4 sm:$0xff]  }
 0x124   :  { %v1972_v55 = vpop.f32.mrb[20].mxu0  ;;  %v2484_v56 = vpop.f32.mrb[20].mxu1  ;;  %v5647_v51 = vld [vmem:[%s8071_s0 + $0x634] ss:$8 sps:$4 sm:$0xff]  }
 0x125   :  { %4245 = vst.msk [vmem:[%s8073_s3 + $0x24] sm:$0xf] %vm4235_vm3, %v5156_v53  ;;  %4373 = vst.msk [vmem:[%s8073_s3 + $0x224] sm:$0xf] %vm4235_vm3, %v5284_v54  ;;  %v1973_v57 = vadd.f32 %v6261_v61, %v1972_v55  ;;  %v2485_v58 = vadd.f32 %v6261_v61, %v2484_v56  ;;  %v1974_v59 = vpop.f32.mrb[21].mxu0  ;;  %v2486_v60 = vpop.f32.mrb[21].mxu1 }
 0x126   :  { %v1975_v0 = vpop.f32.mrb[22].mxu0  ;;  %v2487_v1 = vpop.f32.mrb[22].mxu1 }
 0x127   :  { %v2965_v4 = vmax.f32 %v1973_v57, 0.0  ;;  %v3093_v5 = vmax.f32 %v2485_v58, 0.0  ;;  %v1976_v6 = vadd.f32 %v6261_v61, %v1975_v0  ;;  %v2488_v7 = vadd.f32 %v6261_v61, %v2487_v1  ;;  %v1977_v8 = vpop.f32.mrb[23].mxu0  ;;  %v2489_v9 = vpop.f32.mrb[23].mxu1 }
 0x128   :  { %v5650_v8 = vld [vmem:[%s8071_s0 + $0x630] ss:$8 sps:$4 sm:$0xff]  }
 0x129   :  { %v5157_v10 = vpack.c.bf16 %v2965_v4, %v2965_v4  ;;  %v5285_v11 = vpack.c.bf16 %v3093_v5, %v3093_v5  ;;  %v2966_v12 = vmax.f32 %v1976_v6, 0.0  ;;  %v3094_v13 = vmax.f32 %v2488_v7, 0.0  ;;  %2187 = vmatmul.mubr.bf16.gmra.mrb[128].mxu0 %v5631_v62  ;;  %2699 = vmatmul.mubr.bf16.gmra.mrb[128].mxu1 %v5632_v63  ;;  %v5649_v7 = vld [vmem:[%s8071_s0 + $0x230] ss:$8 sps:$4 sm:$0xff]  }
 0x12a   :  { %4796 = vmatprep.mubr.msk.bf16.mxu0 %vm1506_vm0, %v5633_v2  ;;  %4860 = vmatprep.mubr.msk.bf16.mxu1 %vm1506_vm0, %v5635_v3 }
 0x12b   :  { %4246 = vst.msk [vmem:[%s8073_s3 + $0x28] sm:$0xf] %vm4235_vm3, %v5157_v10  ;;  %4374 = vst.msk [vmem:[%s8073_s3 + $0x228] sm:$0xf] %vm4235_vm3, %v5285_v11  ;;  %v5158_v14 = vpack.c.bf16 %v2966_v12, %v2966_v12  ;;  %v5286_v15 = vpack.c.bf16 %v3094_v13, %v3094_v13  ;;  %v5651_v11 = vld [vmem:[%s8071_s0 + $0x244] ss:$8 sps:$4 sm:$0xff]  }
 0x12c   :  { %v1980_v16 = vpop.f32.mrb[24].mxu0  ;;  %v2492_v17 = vpop.f32.mrb[24].mxu1  ;;  %v5653_v12 = vld [vmem:[%s8071_s0 + $0x644] ss:$8 sps:$4 sm:$0xff]  }
 0x12d   :  { %4247 = vst.msk [vmem:[%s8073_s3 + $0x2c] sm:$0xf] %vm4235_vm3, %v5158_v14  ;;  %4375 = vst.msk [vmem:[%s8073_s3 + $0x22c] sm:$0xf] %vm4235_vm3, %v5286_v15  ;;  %v1981_v18 = vadd.f32 %v6261_v61, %v1980_v16  ;;  %v2493_v19 = vadd.f32 %v6261_v61, %v2492_v17  ;;  %v1982_v20 = vpop.f32.mrb[25].mxu0  ;;  %v2494_v21 = vpop.f32.mrb[25].mxu1 }
 0x12e   :  { %v1983_v24 = vpop.f32.mrb[26].mxu0  ;;  %v2495_v25 = vpop.f32.mrb[26].mxu1 }
 0x12f   :  { %v2967_v28 = vmax.f32 %v1981_v18, 0.0  ;;  %v3095_v29 = vmax.f32 %v2493_v19, 0.0  ;;  %v1984_v30 = vadd.f32 %v6261_v61, %v1983_v24  ;;  %v2496_v31 = vadd.f32 %v6261_v61, %v2495_v25  ;;  %v1985_v32 = vpop.f32.mrb[27].mxu0  ;;  %v2497_v33 = vpop.f32.mrb[27].mxu1 }
 0x130   :  { %v5656_v32 = vld [vmem:[%s8071_s0 + $0x640] ss:$8 sps:$4 sm:$0xff]  }
 0x131   :  { %v5159_v34 = vpack.c.bf16 %v2967_v28, %v2967_v28  ;;  %v5287_v35 = vpack.c.bf16 %v3095_v29, %v3095_v29  ;;  %v2968_v36 = vmax.f32 %v1984_v30, 0.0  ;;  %v3096_v37 = vmax.f32 %v2496_v31, 0.0  ;;  %2195 = vmatmul.mubr.bf16.gmra.mrb[132].mxu0 %v5637_v22  ;;  %2707 = vmatmul.mubr.bf16.gmra.mrb[132].mxu1 %v5638_v23  ;;  %v5655_v31 = vld [vmem:[%s8071_s0 + $0x240] ss:$8 sps:$4 sm:$0xff]  }
 0x132   :  { %4797 = vmatprep.mubr.msk.bf16.mxu0 %vm1506_vm0, %v5639_v26  ;;  %4861 = vmatprep.mubr.msk.bf16.mxu1 %vm1506_vm0, %v5641_v27 }
 0x133   :  { %4248 = vst.msk [vmem:[%s8073_s3 + $0x30] sm:$0xf] %vm4235_vm3, %v5159_v34  ;;  %4376 = vst.msk [vmem:[%s8073_s3 + $0x230] sm:$0xf] %vm4235_vm3, %v5287_v35  ;;  %v5160_v38 = vpack.c.bf16 %v2968_v36, %v2968_v36  ;;  %v5288_v39 = vpack.c.bf16 %v3096_v37, %v3096_v37  ;;  %v5657_v35 = vld [vmem:[%s8071_s0 + $0x254] ss:$8 sps:$4 sm:$0xff]  }
 0x134   :  { %v1988_v40 = vpop.f32.mrb[28].mxu0  ;;  %v2500_v41 = vpop.f32.mrb[28].mxu1  ;;  %v5659_v36 = vld [vmem:[%s8071_s0 + $0x654] ss:$8 sps:$4 sm:$0xff]  }
 0x135   :  { %4249 = vst.msk [vmem:[%s8073_s3 + $0x34] sm:$0xf] %vm4235_vm3, %v5160_v38  ;;  %4377 = vst.msk [vmem:[%s8073_s3 + $0x234] sm:$0xf] %vm4235_vm3, %v5288_v39  ;;  %v1989_v42 = vadd.f32 %v6261_v61, %v1988_v40  ;;  %v2501_v43 = vadd.f32 %v6261_v61, %v2500_v41  ;;  %v1990_v44 = vpop.f32.mrb[29].mxu0  ;;  %v2502_v45 = vpop.f32.mrb[29].mxu1 }
 0x136   :  { %v1991_v48 = vpop.f32.mrb[30].mxu0  ;;  %v2503_v49 = vpop.f32.mrb[30].mxu1 }
 0x137   :  { %v2969_v52 = vmax.f32 %v1989_v42, 0.0  ;;  %v3097_v53 = vmax.f32 %v2501_v43, 0.0  ;;  %v1992_v54 = vadd.f32 %v6261_v61, %v1991_v48  ;;  %v2504_v55 = vadd.f32 %v6261_v61, %v2503_v49  ;;  %v1993_v56 = vpop.f32.mrb[31].mxu0  ;;  %v2505_v57 = vpop.f32.mrb[31].mxu1 }
 0x138   :  { %v5662_v56 = vld [vmem:[%s8071_s0 + $0x650] ss:$8 sps:$4 sm:$0xff]  }
 0x139   :  { %v5161_v58 = vpack.c.bf16 %v2969_v52, %v2969_v52  ;;  %v5289_v59 = vpack.c.bf16 %v3097_v53, %v3097_v53  ;;  %v2970_v60 = vmax.f32 %v1992_v54, 0.0  ;;  %v3098_v62 = vmax.f32 %v2504_v55, 0.0  ;;  %2203 = vmatmul.mubr.bf16.gmra.mrb[136].mxu0 %v5643_v46  ;;  %2715 = vmatmul.mubr.bf16.gmra.mrb[136].mxu1 %v5644_v47  ;;  %v5661_v55 = vld [vmem:[%s8071_s0 + $0x250] ss:$8 sps:$4 sm:$0xff]  }
 0x13a   :  { %4798 = vmatprep.mubr.msk.bf16.mxu0 %vm1506_vm0, %v5645_v50  ;;  %4862 = vmatprep.mubr.msk.bf16.mxu1 %vm1506_vm0, %v5647_v51 }
 0x13b   :  { %4250 = vst.msk [vmem:[%s8073_s3 + $0x38] sm:$0xf] %vm4235_vm3, %v5161_v58  ;;  %4378 = vst.msk [vmem:[%s8073_s3 + $0x238] sm:$0xf] %vm4235_vm3, %v5289_v59  ;;  %v5162_v63 = vpack.c.bf16 %v2970_v60, %v2970_v60  ;;  %v5290_v0 = vpack.c.bf16 %v3098_v62, %v3098_v62  ;;  %v5663_v59 = vld [vmem:[%s8071_s0 + $0x264] ss:$8 sps:$4 sm:$0xff]  }
 0x13c   :  { %v1996_v1 = vpop.f32.mrb[32].mxu0  ;;  %v2508_v2 = vpop.f32.mrb[32].mxu1  ;;  %v5665_v60 = vld [vmem:[%s8071_s0 + $0x664] ss:$8 sps:$4 sm:$0xff]  }
 0x13d   :  { %4251 = vst.msk [vmem:[%s8073_s3 + $0x3c] sm:$0xf] %vm4235_vm3, %v5162_v63  ;;  %4379 = vst.msk [vmem:[%s8073_s3 + $0x23c] sm:$0xf] %vm4235_vm3, %v5290_v0  ;;  %v1997_v3 = vadd.f32 %v6261_v61, %v1996_v1  ;;  %v2509_v4 = vadd.f32 %v6261_v61, %v2508_v2  ;;  %v1998_v5 = vpop.f32.mrb[33].mxu0  ;;  %v2510_v6 = vpop.f32.mrb[33].mxu1 }
 0x13e   :  { %v1999_v9 = vpop.f32.mrb[34].mxu0  ;;  %v2511_v10 = vpop.f32.mrb[34].mxu1 }
 0x13f   :  { %v2971_v13 = vmax.f32 %v1997_v3, 0.0  ;;  %v3099_v14 = vmax.f32 %v2509_v4, 0.0  ;;  %v2000_v15 = vadd.f32 %v6261_v61, %v1999_v9  ;;  %v2512_v16 = vadd.f32 %v6261_v61, %v2511_v10  ;;  %v2001_v17 = vpop.f32.mrb[35].mxu0  ;;  %v2513_v18 = vpop.f32.mrb[35].mxu1 }
 0x140   :  { %v5668_v17 = vld [vmem:[%s8071_s0 + $0x660] ss:$8 sps:$4 sm:$0xff]  }
 0x141   :  { %v5163_v19 = vpack.c.bf16 %v2971_v13, %v2971_v13  ;;  %v5291_v20 = vpack.c.bf16 %v3099_v14, %v3099_v14  ;;  %v2972_v21 = vmax.f32 %v2000_v15, 0.0  ;;  %v3100_v22 = vmax.f32 %v2512_v16, 0.0  ;;  %2211 = vmatmul.mubr.bf16.gmra.mrb[140].mxu0 %v5649_v7  ;;  %2723 = vmatmul.mubr.bf16.gmra.mrb[140].mxu1 %v5650_v8  ;;  %v5667_v16 = vld [vmem:[%s8071_s0 + $0x260] ss:$8 sps:$4 sm:$0xff]  }
 0x142   :  { %4799 = vmatprep.mubr.msk.bf16.mxu0 %vm1506_vm0, %v5651_v11  ;;  %4863 = vmatprep.mubr.msk.bf16.mxu1 %vm1506_vm0, %v5653_v12 }
 0x143   :  { %4252 = vst.msk [vmem:[%s8073_s3 + $0x40] sm:$0xf] %vm4235_vm3, %v5163_v19  ;;  %4380 = vst.msk [vmem:[%s8073_s3 + $0x240] sm:$0xf] %vm4235_vm3, %v5291_v20  ;;  %v5164_v23 = vpack.c.bf16 %v2972_v21, %v2972_v21  ;;  %v5292_v24 = vpack.c.bf16 %v3100_v22, %v3100_v22  ;;  %v5669_v20 = vld [vmem:[%s8071_s0 + $0x274] ss:$8 sps:$4 sm:$0xff]  }
 0x144   :  { %v2004_v25 = vpop.f32.mrb[36].mxu0  ;;  %v2516_v26 = vpop.f32.mrb[36].mxu1  ;;  %v5671_v21 = vld [vmem:[%s8071_s0 + $0x674] ss:$8 sps:$4 sm:$0xff]  }
 0x145   :  { %4253 = vst.msk [vmem:[%s8073_s3 + $0x44] sm:$0xf] %vm4235_vm3, %v5164_v23  ;;  %4381 = vst.msk [vmem:[%s8073_s3 + $0x244] sm:$0xf] %vm4235_vm3, %v5292_v24  ;;  %v2005_v27 = vadd.f32 %v6261_v61, %v2004_v25  ;;  %v2517_v28 = vadd.f32 %v6261_v61, %v2516_v26  ;;  %v2006_v29 = vpop.f32.mrb[37].mxu0  ;;  %v2518_v30 = vpop.f32.mrb[37].mxu1 }
 0x146   :  { %v2007_v33 = vpop.f32.mrb[38].mxu0  ;;  %v2519_v34 = vpop.f32.mrb[38].mxu1 }
 0x147   :  { %v2973_v37 = vmax.f32 %v2005_v27, 0.0  ;;  %v3101_v38 = vmax.f32 %v2517_v28, 0.0  ;;  %v2008_v39 = vadd.f32 %v6261_v61, %v2007_v33  ;;  %v2520_v40 = vadd.f32 %v6261_v61, %v2519_v34  ;;  %v2009_v41 = vpop.f32.mrb[39].mxu0  ;;  %v2521_v42 = vpop.f32.mrb[39].mxu1 }
 0x148   :  { %v5674_v41 = vld [vmem:[%s8071_s0 + $0x670] ss:$8 sps:$4 sm:$0xff]  }
 0x149   :  { %v5165_v43 = vpack.c.bf16 %v2973_v37, %v2973_v37  ;;  %v5293_v44 = vpack.c.bf16 %v3101_v38, %v3101_v38  ;;  %v2974_v45 = vmax.f32 %v2008_v39, 0.0  ;;  %v3102_v46 = vmax.f32 %v2520_v40, 0.0  ;;  %2219 = vmatmul.mubr.bf16.gmra.mrb[144].mxu0 %v5655_v31  ;;  %2731 = vmatmul.mubr.bf16.gmra.mrb[144].mxu1 %v5656_v32  ;;  %v5673_v40 = vld [vmem:[%s8071_s0 + $0x270] ss:$8 sps:$4 sm:$0xff]  }
 0x14a   :  { %4800 = vmatprep.mubr.msk.bf16.mxu0 %vm1506_vm0, %v5657_v35  ;;  %4864 = vmatprep.mubr.msk.bf16.mxu1 %vm1506_vm0, %v5659_v36 }
 0x14b   :  { %4254 = vst.msk [vmem:[%s8073_s3 + $0x48] sm:$0xf] %vm4235_vm3, %v5165_v43  ;;  %4382 = vst.msk [vmem:[%s8073_s3 + $0x248] sm:$0xf] %vm4235_vm3, %v5293_v44  ;;  %v5166_v47 = vpack.c.bf16 %v2974_v45, %v2974_v45  ;;  %v5294_v48 = vpack.c.bf16 %v3102_v46, %v3102_v46  ;;  %v5675_v44 = vld [vmem:[%s8071_s0 + $0x284] ss:$8 sps:$4 sm:$0xff]  }
 0x14c   :  { %v2012_v49 = vpop.f32.mrb[40].mxu0  ;;  %v2524_v50 = vpop.f32.mrb[40].mxu1  ;;  %v5677_v45 = vld [vmem:[%s8071_s0 + $0x684] ss:$8 sps:$4 sm:$0xff]  }
 0x14d   :  { %4255 = vst.msk [vmem:[%s8073_s3 + $0x4c] sm:$0xf] %vm4235_vm3, %v5166_v47  ;;  %4383 = vst.msk [vmem:[%s8073_s3 + $0x24c] sm:$0xf] %vm4235_vm3, %v5294_v48  ;;  %v2013_v51 = vadd.f32 %v6261_v61, %v2012_v49  ;;  %v2525_v52 = vadd.f32 %v6261_v61, %v2524_v50  ;;  %v2014_v53 = vpop.f32.mrb[41].mxu0  ;;  %v2526_v54 = vpop.f32.mrb[41].mxu1 }
 0x14e   :  { %v2015_v57 = vpop.f32.mrb[42].mxu0  ;;  %v2527_v58 = vpop.f32.mrb[42].mxu1 }
 0x14f   :  { %v2975_v62 = vmax.f32 %v2013_v51, 0.0  ;;  %v3103_v63 = vmax.f32 %v2525_v52, 0.0  ;;  %v2016_v0 = vadd.f32 %v6261_v61, %v2015_v57  ;;  %v2528_v1 = vadd.f32 %v6261_v61, %v2527_v58  ;;  %v2017_v2 = vpop.f32.mrb[43].mxu0  ;;  %v2529_v3 = vpop.f32.mrb[43].mxu1 }
 0x150   :  { %v5680_v2 = vld [vmem:[%s8071_s0 + $0x680] ss:$8 sps:$4 sm:$0xff]  }
 0x151   :  { %v5167_v4 = vpack.c.bf16 %v2975_v62, %v2975_v62  ;;  %v5295_v5 = vpack.c.bf16 %v3103_v63, %v3103_v63  ;;  %v2976_v6 = vmax.f32 %v2016_v0, 0.0  ;;  %v3104_v7 = vmax.f32 %v2528_v1, 0.0  ;;  %2227 = vmatmul.mubr.bf16.gmra.mrb[148].mxu0 %v5661_v55  ;;  %2739 = vmatmul.mubr.bf16.gmra.mrb[148].mxu1 %v5662_v56  ;;  %v5679_v1 = vld [vmem:[%s8071_s0 + $0x280] ss:$8 sps:$4 sm:$0xff]  }
 0x152   :  { %4801 = vmatprep.mubr.msk.bf16.mxu0 %vm1506_vm0, %v5663_v59  ;;  %4865 = vmatprep.mubr.msk.bf16.mxu1 %vm1506_vm0, %v5665_v60 }
 0x153   :  { %4256 = vst.msk [vmem:[%s8073_s3 + $0x50] sm:$0xf] %vm4235_vm3, %v5167_v4  ;;  %4384 = vst.msk [vmem:[%s8073_s3 + $0x250] sm:$0xf] %vm4235_vm3, %v5295_v5  ;;  %v5168_v8 = vpack.c.bf16 %v2976_v6, %v2976_v6  ;;  %v5296_v9 = vpack.c.bf16 %v3104_v7, %v3104_v7  ;;  %v5681_v5 = vld [vmem:[%s8071_s0 + $0x294] ss:$8 sps:$4 sm:$0xff]  }
 0x154   :  { %v2020_v10 = vpop.f32.mrb[44].mxu0  ;;  %v2532_v11 = vpop.f32.mrb[44].mxu1  ;;  %v5683_v6 = vld [vmem:[%s8071_s0 + $0x694] ss:$8 sps:$4 sm:$0xff]  }
 0x155   :  { %4257 = vst.msk [vmem:[%s8073_s3 + $0x54] sm:$0xf] %vm4235_vm3, %v5168_v8  ;;  %4385 = vst.msk [vmem:[%s8073_s3 + $0x254] sm:$0xf] %vm4235_vm3, %v5296_v9  ;;  %v2021_v12 = vadd.f32 %v6261_v61, %v2020_v10  ;;  %v2533_v13 = vadd.f32 %v6261_v61, %v2532_v11  ;;  %v2022_v14 = vpop.f32.mrb[45].mxu0  ;;  %v2534_v15 = vpop.f32.mrb[45].mxu1 }
 0x156   :  { %v2023_v18 = vpop.f32.mrb[46].mxu0  ;;  %v2535_v19 = vpop.f32.mrb[46].mxu1 }
 0x157   :  { %v2977_v22 = vmax.f32 %v2021_v12, 0.0  ;;  %v3105_v23 = vmax.f32 %v2533_v13, 0.0  ;;  %v2024_v24 = vadd.f32 %v6261_v61, %v2023_v18  ;;  %v2536_v25 = vadd.f32 %v6261_v61, %v2535_v19  ;;  %v2025_v26 = vpop.f32.mrb[47].mxu0  ;;  %v2537_v27 = vpop.f32.mrb[47].mxu1 }
 0x158   :  { %v5686_v26 = vld [vmem:[%s8071_s0 + $0x690] ss:$8 sps:$4 sm:$0xff]  }
 0x159   :  { %v5169_v28 = vpack.c.bf16 %v2977_v22, %v2977_v22  ;;  %v5297_v29 = vpack.c.bf16 %v3105_v23, %v3105_v23  ;;  %v2978_v30 = vmax.f32 %v2024_v24, 0.0  ;;  %v3106_v31 = vmax.f32 %v2536_v25, 0.0  ;;  %2235 = vmatmul.mubr.bf16.gmra.mrb[152].mxu0 %v5667_v16  ;;  %2747 = vmatmul.mubr.bf16.gmra.mrb[152].mxu1 %v5668_v17  ;;  %v5685_v25 = vld [vmem:[%s8071_s0 + $0x290] ss:$8 sps:$4 sm:$0xff]  }
 0x15a   :  { %4802 = vmatprep.mubr.msk.bf16.mxu0 %vm1506_vm0, %v5669_v20  ;;  %4866 = vmatprep.mubr.msk.bf16.mxu1 %vm1506_vm0, %v5671_v21 }
 0x15b   :  { %4258 = vst.msk [vmem:[%s8073_s3 + $0x58] sm:$0xf] %vm4235_vm3, %v5169_v28  ;;  %4386 = vst.msk [vmem:[%s8073_s3 + $0x258] sm:$0xf] %vm4235_vm3, %v5297_v29  ;;  %v5170_v32 = vpack.c.bf16 %v2978_v30, %v2978_v30  ;;  %v5298_v33 = vpack.c.bf16 %v3106_v31, %v3106_v31  ;;  %v5687_v29 = vld [vmem:[%s8071_s0 + $0x2a4] ss:$8 sps:$4 sm:$0xff]  }
 0x15c   :  { %v2028_v34 = vpop.f32.mrb[48].mxu0  ;;  %v2540_v35 = vpop.f32.mrb[48].mxu1  ;;  %v5689_v30 = vld [vmem:[%s8071_s0 + $0x6a4] ss:$8 sps:$4 sm:$0xff]  }
 0x15d   :  { %4259 = vst.msk [vmem:[%s8073_s3 + $0x5c] sm:$0xf] %vm4235_vm3, %v5170_v32  ;;  %4387 = vst.msk [vmem:[%s8073_s3 + $0x25c] sm:$0xf] %vm4235_vm3, %v5298_v33  ;;  %v2029_v36 = vadd.f32 %v6261_v61, %v2028_v34  ;;  %v2541_v37 = vadd.f32 %v6261_v61, %v2540_v35  ;;  %v2030_v38 = vpop.f32.mrb[49].mxu0  ;;  %v2542_v39 = vpop.f32.mrb[49].mxu1 }
 0x15e   :  { %v2031_v42 = vpop.f32.mrb[50].mxu0  ;;  %v2543_v43 = vpop.f32.mrb[50].mxu1 }
 0x15f   :  { %v2979_v46 = vmax.f32 %v2029_v36, 0.0  ;;  %v3107_v47 = vmax.f32 %v2541_v37, 0.0  ;;  %v2032_v48 = vadd.f32 %v6261_v61, %v2031_v42  ;;  %v2544_v49 = vadd.f32 %v6261_v61, %v2543_v43  ;;  %v2033_v50 = vpop.f32.mrb[51].mxu0  ;;  %v2545_v51 = vpop.f32.mrb[51].mxu1 }
 0x160   :  { %v5692_v50 = vld [vmem:[%s8071_s0 + $0x6a0] ss:$8 sps:$4 sm:$0xff]  }
 0x161   :  { %v5171_v52 = vpack.c.bf16 %v2979_v46, %v2979_v46  ;;  %v5299_v53 = vpack.c.bf16 %v3107_v47, %v3107_v47  ;;  %v2980_v54 = vmax.f32 %v2032_v48, 0.0  ;;  %v3108_v55 = vmax.f32 %v2544_v49, 0.0  ;;  %2243 = vmatmul.mubr.bf16.gmra.mrb[156].mxu0 %v5673_v40  ;;  %2755 = vmatmul.mubr.bf16.gmra.mrb[156].mxu1 %v5674_v41  ;;  %v5691_v49 = vld [vmem:[%s8071_s0 + $0x2a0] ss:$8 sps:$4 sm:$0xff]  }
 0x162   :  { %4803 = vmatprep.mubr.msk.bf16.mxu0 %vm1506_vm0, %v5675_v44  ;;  %4867 = vmatprep.mubr.msk.bf16.mxu1 %vm1506_vm0, %v5677_v45 }
 0x163   :  { %4260 = vst.msk [vmem:[%s8073_s3 + $0x60] sm:$0xf] %vm4235_vm3, %v5171_v52  ;;  %4388 = vst.msk [vmem:[%s8073_s3 + $0x260] sm:$0xf] %vm4235_vm3, %v5299_v53  ;;  %v5172_v56 = vpack.c.bf16 %v2980_v54, %v2980_v54  ;;  %v5300_v57 = vpack.c.bf16 %v3108_v55, %v3108_v55  ;;  %v5693_v53 = vld [vmem:[%s8071_s0 + $0x2b4] ss:$8 sps:$4 sm:$0xff]  }
 0x164   :  { %v2036_v58 = vpop.f32.mrb[52].mxu0  ;;  %v2548_v59 = vpop.f32.mrb[52].mxu1  ;;  %v5695_v54 = vld [vmem:[%s8071_s0 + $0x6b4] ss:$8 sps:$4 sm:$0xff]  }
 0x165   :  { %4261 = vst.msk [vmem:[%s8073_s3 + $0x64] sm:$0xf] %vm4235_vm3, %v5172_v56  ;;  %4389 = vst.msk [vmem:[%s8073_s3 + $0x264] sm:$0xf] %vm4235_vm3, %v5300_v57  ;;  %v2037_v60 = vadd.f32 %v6261_v61, %v2036_v58  ;;  %v2549_v62 = vadd.f32 %v6261_v61, %v2548_v59  ;;  %v2038_v63 = vpop.f32.mrb[53].mxu0  ;;  %v2550_v0 = vpop.f32.mrb[53].mxu1 }
 0x166   :  { %v2039_v3 = vpop.f32.mrb[54].mxu0  ;;  %v2551_v4 = vpop.f32.mrb[54].mxu1 }
 0x167   :  { %v2981_v7 = vmax.f32 %v2037_v60, 0.0  ;;  %v3109_v8 = vmax.f32 %v2549_v62, 0.0  ;;  %v2040_v9 = vadd.f32 %v6261_v61, %v2039_v3  ;;  %v2552_v10 = vadd.f32 %v6261_v61, %v2551_v4  ;;  %v2041_v11 = vpop.f32.mrb[55].mxu0  ;;  %v2553_v12 = vpop.f32.mrb[55].mxu1 }
 0x168   :  { %v5698_v11 = vld [vmem:[%s8071_s0 + $0x6b0] ss:$8 sps:$4 sm:$0xff]  }
 0x169   :  { %v5173_v13 = vpack.c.bf16 %v2981_v7, %v2981_v7  ;;  %v5301_v14 = vpack.c.bf16 %v3109_v8, %v3109_v8  ;;  %v2982_v15 = vmax.f32 %v2040_v9, 0.0  ;;  %v3110_v16 = vmax.f32 %v2552_v10, 0.0  ;;  %2251 = vmatmul.mubr.bf16.gmra.mrb[160].mxu0 %v5679_v1  ;;  %2763 = vmatmul.mubr.bf16.gmra.mrb[160].mxu1 %v5680_v2  ;;  %v5697_v10 = vld [vmem:[%s8071_s0 + $0x2b0] ss:$8 sps:$4 sm:$0xff]  }
 0x16a   :  { %4804 = vmatprep.mubr.msk.bf16.mxu0 %vm1506_vm0, %v5681_v5  ;;  %4868 = vmatprep.mubr.msk.bf16.mxu1 %vm1506_vm0, %v5683_v6  ;;  %v6812_v5 = vld [vmem:[%s8072_s2] ss:$0 sm:$0xff] }
 0x16b   :  { %4262 = vst.msk [vmem:[%s8073_s3 + $0x68] sm:$0xf] %vm4235_vm3, %v5173_v13  ;;  %4390 = vst.msk [vmem:[%s8073_s3 + $0x268] sm:$0xf] %vm4235_vm3, %v5301_v14  ;;  %v5174_v17 = vpack.c.bf16 %v2982_v15, %v2982_v15  ;;  %v5302_v18 = vpack.c.bf16 %v3110_v16, %v3110_v16  ;;  %v5699_v14 = vld [vmem:[%s8071_s0 + $0x2c4] ss:$8 sps:$4 sm:$0xff]  }
 0x16c   :  { %v2044_v19 = vpop.f32.mrb[56].mxu0  ;;  %v2556_v20 = vpop.f32.mrb[56].mxu1  ;;  %v5701_v15 = vld [vmem:[%s8071_s0 + $0x6c4] ss:$8 sps:$4 sm:$0xff]  }
 0x16d   :  { %4263 = vst.msk [vmem:[%s8073_s3 + $0x6c] sm:$0xf] %vm4235_vm3, %v5174_v17  ;;  %4391 = vst.msk [vmem:[%s8073_s3 + $0x26c] sm:$0xf] %vm4235_vm3, %v5302_v18  ;;  %v2045_v21 = vadd.f32 %v6261_v61, %v2044_v19  ;;  %v2557_v22 = vadd.f32 %v6261_v61, %v2556_v20  ;;  %v2046_v23 = vpop.f32.mrb[57].mxu0  ;;  %v2558_v24 = vpop.f32.mrb[57].mxu1 }
 0x16e   :  { %v2047_v27 = vpop.f32.mrb[58].mxu0  ;;  %v2559_v28 = vpop.f32.mrb[58].mxu1 }
 0x16f   :  { %v2983_v31 = vmax.f32 %v2045_v21, 0.0  ;;  %v3111_v32 = vmax.f32 %v2557_v22, 0.0  ;;  %v2048_v33 = vadd.f32 %v6261_v61, %v2047_v27  ;;  %v2560_v34 = vadd.f32 %v6261_v61, %v2559_v28  ;;  %v2049_v35 = vpop.f32.mrb[59].mxu0  ;;  %v2561_v36 = vpop.f32.mrb[59].mxu1 }
 0x170   :  { %v5704_v35 = vld [vmem:[%s8071_s0 + $0x6c0] ss:$8 sps:$4 sm:$0xff]  }
 0x171   :  { %v5175_v37 = vpack.c.bf16 %v2983_v31, %v2983_v31  ;;  %v5303_v38 = vpack.c.bf16 %v3111_v32, %v3111_v32  ;;  %v2984_v39 = vmax.f32 %v2048_v33, 0.0  ;;  %v3112_v40 = vmax.f32 %v2560_v34, 0.0  ;;  %2259 = vmatmul.mubr.bf16.gmra.mrb[164].mxu0 %v5685_v25  ;;  %2771 = vmatmul.mubr.bf16.gmra.mrb[164].mxu1 %v5686_v26  ;;  %v5703_v34 = vld [vmem:[%s8071_s0 + $0x2c0] ss:$8 sps:$4 sm:$0xff]  }
 0x172   :  { %4805 = vmatprep.mubr.msk.bf16.mxu0 %vm1506_vm0, %v5687_v29  ;;  %4869 = vmatprep.mubr.msk.bf16.mxu1 %vm1506_vm0, %v5689_v30 }
 0x173   :  { %4264 = vst.msk [vmem:[%s8073_s3 + $0x70] sm:$0xf] %vm4235_vm3, %v5175_v37  ;;  %4392 = vst.msk [vmem:[%s8073_s3 + $0x270] sm:$0xf] %vm4235_vm3, %v5303_v38  ;;  %v5176_v41 = vpack.c.bf16 %v2984_v39, %v2984_v39  ;;  %v5304_v42 = vpack.c.bf16 %v3112_v40, %v3112_v40  ;;  %v5705_v38 = vld [vmem:[%s8071_s0 + $0x2d4] ss:$8 sps:$4 sm:$0xff]  }
 0x174   :  { %v2052_v43 = vpop.f32.mrb[60].mxu0  ;;  %v2564_v44 = vpop.f32.mrb[60].mxu1  ;;  %v5707_v39 = vld [vmem:[%s8071_s0 + $0x6d4] ss:$8 sps:$4 sm:$0xff]  }
 0x175   :  { %4265 = vst.msk [vmem:[%s8073_s3 + $0x74] sm:$0xf] %vm4235_vm3, %v5176_v41  ;;  %4393 = vst.msk [vmem:[%s8073_s3 + $0x274] sm:$0xf] %vm4235_vm3, %v5304_v42  ;;  %v2053_v45 = vadd.f32 %v6261_v61, %v2052_v43  ;;  %v2565_v46 = vadd.f32 %v6261_v61, %v2564_v44  ;;  %v2054_v47 = vpop.f32.mrb[61].mxu0  ;;  %v2566_v48 = vpop.f32.mrb[61].mxu1 }
 0x176   :  { %v2055_v51 = vpop.f32.mrb[62].mxu0  ;;  %v2567_v52 = vpop.f32.mrb[62].mxu1 }
 0x177   :  { %v2985_v55 = vmax.f32 %v2053_v45, 0.0  ;;  %v3113_v56 = vmax.f32 %v2565_v46, 0.0  ;;  %v2056_v57 = vadd.f32 %v6261_v61, %v2055_v51  ;;  %v2568_v58 = vadd.f32 %v6261_v61, %v2567_v52  ;;  %v2057_v59 = vpop.f32.mrb[63].mxu0  ;;  %v2569_v60 = vpop.f32.mrb[63].mxu1 }
 0x178   :  { %v5710_v59 = vld [vmem:[%s8071_s0 + $0x6d0] ss:$8 sps:$4 sm:$0xff]  }
 0x179   :  { %v5177_v62 = vpack.c.bf16 %v2985_v55, %v2985_v55  ;;  %v5305_v63 = vpack.c.bf16 %v3113_v56, %v3113_v56  ;;  %v2986_v0 = vmax.f32 %v2056_v57, 0.0  ;;  %v3114_v1 = vmax.f32 %v2568_v58, 0.0  ;;  %2267 = vmatmul.mubr.bf16.gmra.mrb[168].mxu0 %v5691_v49  ;;  %2779 = vmatmul.mubr.bf16.gmra.mrb[168].mxu1 %v5692_v50  ;;  %v5709_v58 = vld [vmem:[%s8071_s0 + $0x2d0] ss:$8 sps:$4 sm:$0xff]  }
 0x17a   :  { %4806 = vmatprep.mubr.msk.bf16.mxu0 %vm1506_vm0, %v5693_v53  ;;  %4870 = vmatprep.mubr.msk.bf16.mxu1 %vm1506_vm0, %v5695_v54 }
 0x17b   :  { %4266 = vst.msk [vmem:[%s8073_s3 + $0x78] sm:$0xf] %vm4235_vm3, %v5177_v62  ;;  %4394 = vst.msk [vmem:[%s8073_s3 + $0x278] sm:$0xf] %vm4235_vm3, %v5305_v63  ;;  %v5178_v61 = vpack.c.bf16 %v2986_v0, %v2986_v0  ;;  %v5306_v2 = vpack.c.bf16 %v3114_v1, %v3114_v1  ;;  %v5711_v63 = vld [vmem:[%s8071_s0 + $0x2e4] ss:$8 sps:$4 sm:$0xff]  }
 0x17c   :  { %v2060_v3 = vpop.f32.mrb[64].mxu0  ;;  %v2572_v4 = vpop.f32.mrb[64].mxu1  ;;  %v5713_v0 = vld [vmem:[%s8071_s0 + $0x6e4] ss:$8 sps:$4 sm:$0xff]  }
 0x17d   :  { %4267 = vst.msk [vmem:[%s8073_s3 + $0x7c] sm:$0xf] %vm4235_vm3, %v5178_v61  ;;  %4395 = vst.msk [vmem:[%s8073_s3 + $0x27c] sm:$0xf] %vm4235_vm3, %v5306_v2  ;;  %v2061_v6 = vadd.f32 %v6812_v5, %v2060_v3  ;;  %v2573_v7 = vadd.f32 %v6812_v5, %v2572_v4  ;;  %v2062_v8 = vpop.f32.mrb[65].mxu0  ;;  %v2574_v9 = vpop.f32.mrb[65].mxu1 }
 0x17e   :  { %v2063_v12 = vpop.f32.mrb[66].mxu0  ;;  %v2575_v13 = vpop.f32.mrb[66].mxu1 }
 0x17f   :  { %v2987_v16 = vmax.f32 %v2061_v6, 0.0  ;;  %v3115_v17 = vmax.f32 %v2573_v7, 0.0  ;;  %v2064_v18 = vadd.f32 %v6812_v5, %v2063_v12  ;;  %v2576_v19 = vadd.f32 %v6812_v5, %v2575_v13  ;;  %v2065_v20 = vpop.f32.mrb[67].mxu0  ;;  %v2577_v21 = vpop.f32.mrb[67].mxu1 }
 0x180   :  { %v5716_v20 = vld [vmem:[%s8071_s0 + $0x6e0] ss:$8 sps:$4 sm:$0xff]  }
 0x181   :  { %v5179_v22 = vpack.c.bf16 %v2987_v16, %v2987_v16  ;;  %v5307_v23 = vpack.c.bf16 %v3115_v17, %v3115_v17  ;;  %v2988_v24 = vmax.f32 %v2064_v18, 0.0  ;;  %v3116_v25 = vmax.f32 %v2576_v19, 0.0  ;;  %2275 = vmatmul.mubr.bf16.gmra.mrb[172].mxu0 %v5697_v10  ;;  %2787 = vmatmul.mubr.bf16.gmra.mrb[172].mxu1 %v5698_v11  ;;  %v5715_v19 = vld [vmem:[%s8071_s0 + $0x2e0] ss:$8 sps:$4 sm:$0xff]  }
 0x182   :  { %4807 = vmatprep.mubr.msk.bf16.mxu0 %vm1506_vm0, %v5699_v14  ;;  %4871 = vmatprep.mubr.msk.bf16.mxu1 %vm1506_vm0, %v5701_v15 }
 0x183   :  { %4268 = vst.msk [vmem:[%s8073_s3 + $0x80] sm:$0xf] %vm4235_vm3, %v5179_v22  ;;  %4396 = vst.msk [vmem:[%s8073_s3 + $0x280] sm:$0xf] %vm4235_vm3, %v5307_v23  ;;  %v5180_v26 = vpack.c.bf16 %v2988_v24, %v2988_v24  ;;  %v5308_v27 = vpack.c.bf16 %v3116_v25, %v3116_v25  ;;  %v5717_v23 = vld [vmem:[%s8071_s0 + $0x2f4] ss:$8 sps:$4 sm:$0xff]  }
 0x184   :  { %v2068_v28 = vpop.f32.mrb[68].mxu0  ;;  %v2580_v29 = vpop.f32.mrb[68].mxu1  ;;  %v5719_v24 = vld [vmem:[%s8071_s0 + $0x6f4] ss:$8 sps:$4 sm:$0xff]  }
 0x185   :  { %4269 = vst.msk [vmem:[%s8073_s3 + $0x84] sm:$0xf] %vm4235_vm3, %v5180_v26  ;;  %4397 = vst.msk [vmem:[%s8073_s3 + $0x284] sm:$0xf] %vm4235_vm3, %v5308_v27  ;;  %v2069_v30 = vadd.f32 %v6812_v5, %v2068_v28  ;;  %v2581_v31 = vadd.f32 %v6812_v5, %v2580_v29  ;;  %v2070_v32 = vpop.f32.mrb[69].mxu0  ;;  %v2582_v33 = vpop.f32.mrb[69].mxu1 }
 0x186   :  { %v2071_v36 = vpop.f32.mrb[70].mxu0  ;;  %v2583_v37 = vpop.f32.mrb[70].mxu1 }
 0x187   :  { %v2989_v40 = vmax.f32 %v2069_v30, 0.0  ;;  %v3117_v41 = vmax.f32 %v2581_v31, 0.0  ;;  %v2072_v42 = vadd.f32 %v6812_v5, %v2071_v36  ;;  %v2584_v43 = vadd.f32 %v6812_v5, %v2583_v37  ;;  %v2073_v44 = vpop.f32.mrb[71].mxu0  ;;  %v2585_v45 = vpop.f32.mrb[71].mxu1 }
 0x188   :  { %v5722_v44 = vld [vmem:[%s8071_s0 + $0x6f0] ss:$8 sps:$4 sm:$0xff]  }
 0x189   :  { %v5181_v46 = vpack.c.bf16 %v2989_v40, %v2989_v40  ;;  %v5309_v47 = vpack.c.bf16 %v3117_v41, %v3117_v41  ;;  %v2990_v48 = vmax.f32 %v2072_v42, 0.0  ;;  %v3118_v49 = vmax.f32 %v2584_v43, 0.0  ;;  %2283 = vmatmul.mubr.bf16.gmra.mrb[176].mxu0 %v5703_v34  ;;  %2795 = vmatmul.mubr.bf16.gmra.mrb[176].mxu1 %v5704_v35  ;;  %v5721_v43 = vld [vmem:[%s8071_s0 + $0x2f0] ss:$8 sps:$4 sm:$0xff]  }
 0x18a   :  { %4808 = vmatprep.mubr.msk.bf16.mxu0 %vm1506_vm0, %v5705_v38  ;;  %4872 = vmatprep.mubr.msk.bf16.mxu1 %vm1506_vm0, %v5707_v39 }
 0x18b   :  { %4270 = vst.msk [vmem:[%s8073_s3 + $0x88] sm:$0xf] %vm4235_vm3, %v5181_v46  ;;  %4398 = vst.msk [vmem:[%s8073_s3 + $0x288] sm:$0xf] %vm4235_vm3, %v5309_v47  ;;  %v5182_v50 = vpack.c.bf16 %v2990_v48, %v2990_v48  ;;  %v5310_v51 = vpack.c.bf16 %v3118_v49, %v3118_v49  ;;  %v5723_v47 = vld [vmem:[%s8071_s0 + $0x304] ss:$8 sps:$4 sm:$0xff]  }
 0x18c   :  { %v2076_v52 = vpop.f32.mrb[72].mxu0  ;;  %v2588_v53 = vpop.f32.mrb[72].mxu1  ;;  %v5725_v48 = vld [vmem:[%s8071_s0 + $0x704] ss:$8 sps:$4 sm:$0xff]  }
 0x18d   :  { %4271 = vst.msk [vmem:[%s8073_s3 + $0x8c] sm:$0xf] %vm4235_vm3, %v5182_v50  ;;  %4399 = vst.msk [vmem:[%s8073_s3 + $0x28c] sm:$0xf] %vm4235_vm3, %v5310_v51  ;;  %v2077_v54 = vadd.f32 %v6812_v5, %v2076_v52  ;;  %v2589_v55 = vadd.f32 %v6812_v5, %v2588_v53  ;;  %v2078_v56 = vpop.f32.mrb[73].mxu0  ;;  %v2590_v57 = vpop.f32.mrb[73].mxu1 }
 0x18e   :  { %v2079_v60 = vpop.f32.mrb[74].mxu0  ;;  %v2591_v62 = vpop.f32.mrb[74].mxu1 }
 0x18f   :  { %v2991_v1 = vmax.f32 %v2077_v54, 0.0  ;;  %v3119_v61 = vmax.f32 %v2589_v55, 0.0  ;;  %v2080_v2 = vadd.f32 %v6812_v5, %v2079_v60  ;;  %v2592_v3 = vadd.f32 %v6812_v5, %v2591_v62  ;;  %v2081_v4 = vpop.f32.mrb[75].mxu0  ;;  %v2593_v6 = vpop.f32.mrb[75].mxu1 }
 0x190   :  { %v5728_v4 = vld [vmem:[%s8071_s0 + $0x700] ss:$8 sps:$4 sm:$0xff]  }
 0x191   :  { %v5183_v7 = vpack.c.bf16 %v2991_v1, %v2991_v1  ;;  %v5311_v8 = vpack.c.bf16 %v3119_v61, %v3119_v61  ;;  %v2992_v9 = vmax.f32 %v2080_v2, 0.0  ;;  %v3120_v10 = vmax.f32 %v2592_v3, 0.0  ;;  %2291 = vmatmul.mubr.bf16.gmra.mrb[180].mxu0 %v5709_v58  ;;  %2803 = vmatmul.mubr.bf16.gmra.mrb[180].mxu1 %v5710_v59  ;;  %v5727_v3 = vld [vmem:[%s8071_s0 + $0x300] ss:$8 sps:$4 sm:$0xff]  }
 0x192   :  { %4809 = vmatprep.mubr.msk.bf16.mxu0 %vm1506_vm0, %v5711_v63  ;;  %4873 = vmatprep.mubr.msk.bf16.mxu1 %vm1506_vm0, %v5713_v0 }
 0x193   :  { %4272 = vst.msk [vmem:[%s8073_s3 + $0x90] sm:$0xf] %vm4235_vm3, %v5183_v7  ;;  %4400 = vst.msk [vmem:[%s8073_s3 + $0x290] sm:$0xf] %vm4235_vm3, %v5311_v8  ;;  %v5184_v11 = vpack.c.bf16 %v2992_v9, %v2992_v9  ;;  %v5312_v12 = vpack.c.bf16 %v3120_v10, %v3120_v10  ;;  %v5729_v8 = vld [vmem:[%s8071_s0 + $0x314] ss:$8 sps:$4 sm:$0xff]  }
 0x194   :  { %v2084_v13 = vpop.f32.mrb[76].mxu0  ;;  %v2596_v14 = vpop.f32.mrb[76].mxu1  ;;  %v5731_v9 = vld [vmem:[%s8071_s0 + $0x714] ss:$8 sps:$4 sm:$0xff]  }
 0x195   :  { %4273 = vst.msk [vmem:[%s8073_s3 + $0x94] sm:$0xf] %vm4235_vm3, %v5184_v11  ;;  %4401 = vst.msk [vmem:[%s8073_s3 + $0x294] sm:$0xf] %vm4235_vm3, %v5312_v12  ;;  %v2085_v15 = vadd.f32 %v6812_v5, %v2084_v13  ;;  %v2597_v16 = vadd.f32 %v6812_v5, %v2596_v14  ;;  %v2086_v17 = vpop.f32.mrb[77].mxu0  ;;  %v2598_v18 = vpop.f32.mrb[77].mxu1 }
 0x196   :  { %v2087_v21 = vpop.f32.mrb[78].mxu0  ;;  %v2599_v22 = vpop.f32.mrb[78].mxu1 }
 0x197   :  { %v2993_v25 = vmax.f32 %v2085_v15, 0.0  ;;  %v3121_v26 = vmax.f32 %v2597_v16, 0.0  ;;  %v2088_v27 = vadd.f32 %v6812_v5, %v2087_v21  ;;  %v2600_v28 = vadd.f32 %v6812_v5, %v2599_v22  ;;  %v2089_v29 = vpop.f32.mrb[79].mxu0  ;;  %v2601_v30 = vpop.f32.mrb[79].mxu1 }
 0x198   :  { %v5734_v29 = vld [vmem:[%s8071_s0 + $0x710] ss:$8 sps:$4 sm:$0xff]  }
 0x199   :  { %v5185_v31 = vpack.c.bf16 %v2993_v25, %v2993_v25  ;;  %v5313_v32 = vpack.c.bf16 %v3121_v26, %v3121_v26  ;;  %v2994_v33 = vmax.f32 %v2088_v27, 0.0  ;;  %v3122_v34 = vmax.f32 %v2600_v28, 0.0  ;;  %2299 = vmatmul.mubr.bf16.gmra.mrb[184].mxu0 %v5715_v19  ;;  %2811 = vmatmul.mubr.bf16.gmra.mrb[184].mxu1 %v5716_v20  ;;  %v5733_v28 = vld [vmem:[%s8071_s0 + $0x310] ss:$8 sps:$4 sm:$0xff]  }
 0x19a   :  { %4810 = vmatprep.mubr.msk.bf16.mxu0 %vm1506_vm0, %v5717_v23  ;;  %4874 = vmatprep.mubr.msk.bf16.mxu1 %vm1506_vm0, %v5719_v24 }
 0x19b   :  { %4274 = vst.msk [vmem:[%s8073_s3 + $0x98] sm:$0xf] %vm4235_vm3, %v5185_v31  ;;  %4402 = vst.msk [vmem:[%s8073_s3 + $0x298] sm:$0xf] %vm4235_vm3, %v5313_v32  ;;  %v5186_v35 = vpack.c.bf16 %v2994_v33, %v2994_v33  ;;  %v5314_v36 = vpack.c.bf16 %v3122_v34, %v3122_v34  ;;  %v5735_v32 = vld [vmem:[%s8071_s0 + $0x324] ss:$8 sps:$4 sm:$0xff]  }
 0x19c   :  { %v2092_v37 = vpop.f32.mrb[80].mxu0  ;;  %v2604_v38 = vpop.f32.mrb[80].mxu1  ;;  %v5737_v33 = vld [vmem:[%s8071_s0 + $0x724] ss:$8 sps:$4 sm:$0xff]  }
 0x19d   :  { %4275 = vst.msk [vmem:[%s8073_s3 + $0x9c] sm:$0xf] %vm4235_vm3, %v5186_v35  ;;  %4403 = vst.msk [vmem:[%s8073_s3 + $0x29c] sm:$0xf] %vm4235_vm3, %v5314_v36  ;;  %v2093_v39 = vadd.f32 %v6812_v5, %v2092_v37  ;;  %v2605_v40 = vadd.f32 %v6812_v5, %v2604_v38  ;;  %v2094_v41 = vpop.f32.mrb[81].mxu0  ;;  %v2606_v42 = vpop.f32.mrb[81].mxu1 }
 0x19e   :  { %v2095_v45 = vpop.f32.mrb[82].mxu0  ;;  %v2607_v46 = vpop.f32.mrb[82].mxu1 }
 0x19f   :  { %v2995_v49 = vmax.f32 %v2093_v39, 0.0  ;;  %v3123_v50 = vmax.f32 %v2605_v40, 0.0  ;;  %v2096_v51 = vadd.f32 %v6812_v5, %v2095_v45  ;;  %v2608_v52 = vadd.f32 %v6812_v5, %v2607_v46  ;;  %v2097_v53 = vpop.f32.mrb[83].mxu0  ;;  %v2609_v54 = vpop.f32.mrb[83].mxu1 }
 0x1a0   :  { %v5740_v53 = vld [vmem:[%s8071_s0 + $0x720] ss:$8 sps:$4 sm:$0xff]  }
 0x1a1   :  { %v5187_v55 = vpack.c.bf16 %v2995_v49, %v2995_v49  ;;  %v5315_v56 = vpack.c.bf16 %v3123_v50, %v3123_v50  ;;  %v2996_v57 = vmax.f32 %v2096_v51, 0.0  ;;  %v3124_v58 = vmax.f32 %v2608_v52, 0.0  ;;  %2307 = vmatmul.mubr.bf16.gmra.mrb[188].mxu0 %v5721_v43  ;;  %2819 = vmatmul.mubr.bf16.gmra.mrb[188].mxu1 %v5722_v44  ;;  %v5739_v52 = vld [vmem:[%s8071_s0 + $0x320] ss:$8 sps:$4 sm:$0xff]  }
 0x1a2   :  { %4811 = vmatprep.mubr.msk.bf16.mxu0 %vm1506_vm0, %v5723_v47  ;;  %4875 = vmatprep.mubr.msk.bf16.mxu1 %vm1506_vm0, %v5725_v48 }
 0x1a3   :  { %4276 = vst.msk [vmem:[%s8073_s3 + $0xa0] sm:$0xf] %vm4235_vm3, %v5187_v55  ;;  %4404 = vst.msk [vmem:[%s8073_s3 + $0x2a0] sm:$0xf] %vm4235_vm3, %v5315_v56  ;;  %v5188_v59 = vpack.c.bf16 %v2996_v57, %v2996_v57  ;;  %v5316_v60 = vpack.c.bf16 %v3124_v58, %v3124_v58  ;;  %v5741_v56 = vld [vmem:[%s8071_s0 + $0x334] ss:$8 sps:$4 sm:$0xff]  }
 0x1a4   :  { %v2100_v62 = vpop.f32.mrb[84].mxu0  ;;  %v2612_v63 = vpop.f32.mrb[84].mxu1  ;;  %v5743_v57 = vld [vmem:[%s8071_s0 + $0x734] ss:$8 sps:$4 sm:$0xff]  }
 0x1a5   :  { %4277 = vst.msk [vmem:[%s8073_s3 + $0xa4] sm:$0xf] %vm4235_vm3, %v5188_v59  ;;  %4405 = vst.msk [vmem:[%s8073_s3 + $0x2a4] sm:$0xf] %vm4235_vm3, %v5316_v60  ;;  %v2101_v0 = vadd.f32 %v6812_v5, %v2100_v62  ;;  %v2613_v1 = vadd.f32 %v6812_v5, %v2612_v63  ;;  %v2102_v61 = vpop.f32.mrb[85].mxu0  ;;  %v2614_v2 = vpop.f32.mrb[85].mxu1 }
 0x1a6   :  { %v2103_v6 = vpop.f32.mrb[86].mxu0  ;;  %v2615_v7 = vpop.f32.mrb[86].mxu1 }
 0x1a7   :  { %v2997_v10 = vmax.f32 %v2101_v0, 0.0  ;;  %v3125_v11 = vmax.f32 %v2613_v1, 0.0  ;;  %v2104_v12 = vadd.f32 %v6812_v5, %v2103_v6  ;;  %v2616_v13 = vadd.f32 %v6812_v5, %v2615_v7  ;;  %v2105_v14 = vpop.f32.mrb[87].mxu0  ;;  %v2617_v15 = vpop.f32.mrb[87].mxu1 }
 0x1a8   :  { %v5746_v14 = vld [vmem:[%s8071_s0 + $0x730] ss:$8 sps:$4 sm:$0xff]  }
 0x1a9   :  { %v5189_v16 = vpack.c.bf16 %v2997_v10, %v2997_v10  ;;  %v5317_v17 = vpack.c.bf16 %v3125_v11, %v3125_v11  ;;  %v2998_v18 = vmax.f32 %v2104_v12, 0.0  ;;  %v3126_v19 = vmax.f32 %v2616_v13, 0.0  ;;  %2315 = vmatmul.mubr.bf16.gmra.mrb[192].mxu0 %v5727_v3  ;;  %2827 = vmatmul.mubr.bf16.gmra.mrb[192].mxu1 %v5728_v4  ;;  %v5745_v13 = vld [vmem:[%s8071_s0 + $0x330] ss:$8 sps:$4 sm:$0xff]  }
 0x1aa   :  { %4812 = vmatprep.mubr.msk.bf16.mxu0 %vm1506_vm0, %v5729_v8  ;;  %4876 = vmatprep.mubr.msk.bf16.mxu1 %vm1506_vm0, %v5731_v9 }
 0x1ab   :  { %4278 = vst.msk [vmem:[%s8073_s3 + $0xa8] sm:$0xf] %vm4235_vm3, %v5189_v16  ;;  %4406 = vst.msk [vmem:[%s8073_s3 + $0x2a8] sm:$0xf] %vm4235_vm3, %v5317_v17  ;;  %v5190_v20 = vpack.c.bf16 %v2998_v18, %v2998_v18  ;;  %v5318_v21 = vpack.c.bf16 %v3126_v19, %v3126_v19  ;;  %v5747_v17 = vld [vmem:[%s8071_s0 + $0x344] ss:$8 sps:$4 sm:$0xff]  }
 0x1ac   :  { %v2108_v22 = vpop.f32.mrb[88].mxu0  ;;  %v2620_v23 = vpop.f32.mrb[88].mxu1  ;;  %v5749_v18 = vld [vmem:[%s8071_s0 + $0x744] ss:$8 sps:$4 sm:$0xff]  }
 0x1ad   :  { %4279 = vst.msk [vmem:[%s8073_s3 + $0xac] sm:$0xf] %vm4235_vm3, %v5190_v20  ;;  %4407 = vst.msk [vmem:[%s8073_s3 + $0x2ac] sm:$0xf] %vm4235_vm3, %v5318_v21  ;;  %v2109_v24 = vadd.f32 %v6812_v5, %v2108_v22  ;;  %v2621_v25 = vadd.f32 %v6812_v5, %v2620_v23  ;;  %v2110_v26 = vpop.f32.mrb[89].mxu0  ;;  %v2622_v27 = vpop.f32.mrb[89].mxu1 }
 0x1ae   :  { %v2111_v30 = vpop.f32.mrb[90].mxu0  ;;  %v2623_v31 = vpop.f32.mrb[90].mxu1 }
 0x1af   :  { %v2999_v34 = vmax.f32 %v2109_v24, 0.0  ;;  %v3127_v35 = vmax.f32 %v2621_v25, 0.0  ;;  %v2112_v36 = vadd.f32 %v6812_v5, %v2111_v30  ;;  %v2624_v37 = vadd.f32 %v6812_v5, %v2623_v31  ;;  %v2113_v38 = vpop.f32.mrb[91].mxu0  ;;  %v2625_v39 = vpop.f32.mrb[91].mxu1 }
 0x1b0   :  { %v5752_v38 = vld [vmem:[%s8071_s0 + $0x740] ss:$8 sps:$4 sm:$0xff]  }
 0x1b1   :  { %v5191_v40 = vpack.c.bf16 %v2999_v34, %v2999_v34  ;;  %v5319_v41 = vpack.c.bf16 %v3127_v35, %v3127_v35  ;;  %v3000_v42 = vmax.f32 %v2112_v36, 0.0  ;;  %v3128_v43 = vmax.f32 %v2624_v37, 0.0  ;;  %2323 = vmatmul.mubr.bf16.gmra.mrb[196].mxu0 %v5733_v28  ;;  %2835 = vmatmul.mubr.bf16.gmra.mrb[196].mxu1 %v5734_v29  ;;  %v5751_v37 = vld [vmem:[%s8071_s0 + $0x340] ss:$8 sps:$4 sm:$0xff]  }
 0x1b2   :  { %4813 = vmatprep.mubr.msk.bf16.mxu0 %vm1506_vm0, %v5735_v32  ;;  %4877 = vmatprep.mubr.msk.bf16.mxu1 %vm1506_vm0, %v5737_v33 }
 0x1b3   :  { %4280 = vst.msk [vmem:[%s8073_s3 + $0xb0] sm:$0xf] %vm4235_vm3, %v5191_v40  ;;  %4408 = vst.msk [vmem:[%s8073_s3 + $0x2b0] sm:$0xf] %vm4235_vm3, %v5319_v41  ;;  %v5192_v44 = vpack.c.bf16 %v3000_v42, %v3000_v42  ;;  %v5320_v45 = vpack.c.bf16 %v3128_v43, %v3128_v43  ;;  %v5753_v41 = vld [vmem:[%s8071_s0 + $0x354] ss:$8 sps:$4 sm:$0xff]  }
 0x1b4   :  { %v2116_v46 = vpop.f32.mrb[92].mxu0  ;;  %v2628_v47 = vpop.f32.mrb[92].mxu1  ;;  %v5755_v42 = vld [vmem:[%s8071_s0 + $0x754] ss:$8 sps:$4 sm:$0xff]  }
 0x1b5   :  { %4281 = vst.msk [vmem:[%s8073_s3 + $0xb4] sm:$0xf] %vm4235_vm3, %v5192_v44  ;;  %4409 = vst.msk [vmem:[%s8073_s3 + $0x2b4] sm:$0xf] %vm4235_vm3, %v5320_v45  ;;  %v2117_v48 = vadd.f32 %v6812_v5, %v2116_v46  ;;  %v2629_v49 = vadd.f32 %v6812_v5, %v2628_v47  ;;  %v2118_v50 = vpop.f32.mrb[93].mxu0  ;;  %v2630_v51 = vpop.f32.mrb[93].mxu1 }
 0x1b6   :  { %v2119_v54 = vpop.f32.mrb[94].mxu0  ;;  %v2631_v55 = vpop.f32.mrb[94].mxu1 }
 0x1b7   :  { %v3001_v58 = vmax.f32 %v2117_v48, 0.0  ;;  %v3129_v59 = vmax.f32 %v2629_v49, 0.0  ;;  %v2120_v60 = vadd.f32 %v6812_v5, %v2119_v54  ;;  %v2632_v62 = vadd.f32 %v6812_v5, %v2631_v55  ;;  %v2121_v63 = vpop.f32.mrb[95].mxu0  ;;  %v2633_v0 = vpop.f32.mrb[95].mxu1 }
 0x1b8   :  { %v5758_v63 = vld [vmem:[%s8071_s0 + $0x750] ss:$8 sps:$4 sm:$0xff]  }
 0x1b9   :  { %v5193_v1 = vpack.c.bf16 %v3001_v58, %v3001_v58  ;;  %v5321_v61 = vpack.c.bf16 %v3129_v59, %v3129_v59  ;;  %v3002_v2 = vmax.f32 %v2120_v60, 0.0  ;;  %v3130_v3 = vmax.f32 %v2632_v62, 0.0  ;;  %2331 = vmatmul.mubr.bf16.gmra.mrb[200].mxu0 %v5739_v52  ;;  %2843 = vmatmul.mubr.bf16.gmra.mrb[200].mxu1 %v5740_v53  ;;  %v5757_v62 = vld [vmem:[%s8071_s0 + $0x350] ss:$8 sps:$4 sm:$0xff]  }
 0x1ba   :  { %4814 = vmatprep.mubr.msk.bf16.mxu0 %vm1506_vm0, %v5741_v56  ;;  %4878 = vmatprep.mubr.msk.bf16.mxu1 %vm1506_vm0, %v5743_v57 }
 0x1bb   :  { %4282 = vst.msk [vmem:[%s8073_s3 + $0xb8] sm:$0xf] %vm4235_vm3, %v5193_v1  ;;  %4410 = vst.msk [vmem:[%s8073_s3 + $0x2b8] sm:$0xf] %vm4235_vm3, %v5321_v61  ;;  %v5194_v4 = vpack.c.bf16 %v3002_v2, %v3002_v2  ;;  %v5322_v6 = vpack.c.bf16 %v3130_v3, %v3130_v3  ;;  %v5759_v61 = vld [vmem:[%s8071_s0 + $0x364] ss:$8 sps:$4 sm:$0xff]  }
 0x1bc   :  { %v2124_v7 = vpop.f32.mrb[96].mxu0  ;;  %v2636_v8 = vpop.f32.mrb[96].mxu1  ;;  %v5761_v2 = vld [vmem:[%s8071_s0 + $0x764] ss:$8 sps:$4 sm:$0xff]  }
 0x1bd   :  { %4283 = vst.msk [vmem:[%s8073_s3 + $0xbc] sm:$0xf] %vm4235_vm3, %v5194_v4  ;;  %4411 = vst.msk [vmem:[%s8073_s3 + $0x2bc] sm:$0xf] %vm4235_vm3, %v5322_v6  ;;  %v2125_v9 = vadd.f32 %v6812_v5, %v2124_v7  ;;  %v2637_v10 = vadd.f32 %v6812_v5, %v2636_v8  ;;  %v2126_v11 = vpop.f32.mrb[97].mxu0  ;;  %v2638_v12 = vpop.f32.mrb[97].mxu1 }
 0x1be   :  { %v2127_v15 = vpop.f32.mrb[98].mxu0  ;;  %v2639_v16 = vpop.f32.mrb[98].mxu1 }
 0x1bf   :  { %v3003_v19 = vmax.f32 %v2125_v9, 0.0  ;;  %v3131_v20 = vmax.f32 %v2637_v10, 0.0  ;;  %v2128_v21 = vadd.f32 %v6812_v5, %v2127_v15  ;;  %v2640_v22 = vadd.f32 %v6812_v5, %v2639_v16  ;;  %v2129_v23 = vpop.f32.mrb[99].mxu0  ;;  %v2641_v24 = vpop.f32.mrb[99].mxu1 }
 0x1c0   :  { %v5764_v23 = vld [vmem:[%s8071_s0 + $0x760] ss:$8 sps:$4 sm:$0xff]  }
 0x1c1   :  { %v5195_v25 = vpack.c.bf16 %v3003_v19, %v3003_v19  ;;  %v5323_v26 = vpack.c.bf16 %v3131_v20, %v3131_v20  ;;  %v3004_v27 = vmax.f32 %v2128_v21, 0.0  ;;  %v3132_v28 = vmax.f32 %v2640_v22, 0.0  ;;  %2339 = vmatmul.mubr.bf16.gmra.mrb[204].mxu0 %v5745_v13  ;;  %2851 = vmatmul.mubr.bf16.gmra.mrb[204].mxu1 %v5746_v14  ;;  %v5763_v22 = vld [vmem:[%s8071_s0 + $0x360] ss:$8 sps:$4 sm:$0xff]  }
 0x1c2   :  { %4815 = vmatprep.mubr.msk.bf16.mxu0 %vm1506_vm0, %v5747_v17  ;;  %4879 = vmatprep.mubr.msk.bf16.mxu1 %vm1506_vm0, %v5749_v18 }
 0x1c3   :  { %4284 = vst.msk [vmem:[%s8073_s3 + $0xc0] sm:$0xf] %vm4235_vm3, %v5195_v25  ;;  %4412 = vst.msk [vmem:[%s8073_s3 + $0x2c0] sm:$0xf] %vm4235_vm3, %v5323_v26  ;;  %v5196_v29 = vpack.c.bf16 %v3004_v27, %v3004_v27  ;;  %v5324_v30 = vpack.c.bf16 %v3132_v28, %v3132_v28  ;;  %v5765_v26 = vld [vmem:[%s8071_s0 + $0x374] ss:$8 sps:$4 sm:$0xff]  }
 0x1c4   :  { %v2132_v31 = vpop.f32.mrb[100].mxu0  ;;  %v2644_v32 = vpop.f32.mrb[100].mxu1  ;;  %v5767_v27 = vld [vmem:[%s8071_s0 + $0x774] ss:$8 sps:$4 sm:$0xff]  }
 0x1c5   :  { %4285 = vst.msk [vmem:[%s8073_s3 + $0xc4] sm:$0xf] %vm4235_vm3, %v5196_v29  ;;  %4413 = vst.msk [vmem:[%s8073_s3 + $0x2c4] sm:$0xf] %vm4235_vm3, %v5324_v30  ;;  %v2133_v33 = vadd.f32 %v6812_v5, %v2132_v31  ;;  %v2645_v34 = vadd.f32 %v6812_v5, %v2644_v32  ;;  %v2134_v35 = vpop.f32.mrb[101].mxu0  ;;  %v2646_v36 = vpop.f32.mrb[101].mxu1 }
 0x1c6   :  { %v2135_v39 = vpop.f32.mrb[102].mxu0  ;;  %v2647_v40 = vpop.f32.mrb[102].mxu1 }
 0x1c7   :  { %v3005_v43 = vmax.f32 %v2133_v33, 0.0  ;;  %v3133_v44 = vmax.f32 %v2645_v34, 0.0  ;;  %v2136_v45 = vadd.f32 %v6812_v5, %v2135_v39  ;;  %v2648_v46 = vadd.f32 %v6812_v5, %v2647_v40  ;;  %v2137_v47 = vpop.f32.mrb[103].mxu0  ;;  %v2649_v48 = vpop.f32.mrb[103].mxu1 }
 0x1c8   :  { %v5770_v47 = vld [vmem:[%s8071_s0 + $0x770] ss:$8 sps:$4 sm:$0xff]  }
 0x1c9   :  { %v5197_v49 = vpack.c.bf16 %v3005_v43, %v3005_v43  ;;  %v5325_v50 = vpack.c.bf16 %v3133_v44, %v3133_v44  ;;  %v3006_v51 = vmax.f32 %v2136_v45, 0.0  ;;  %v3134_v52 = vmax.f32 %v2648_v46, 0.0  ;;  %2347 = vmatmul.mubr.bf16.gmra.mrb[208].mxu0 %v5751_v37  ;;  %2859 = vmatmul.mubr.bf16.gmra.mrb[208].mxu1 %v5752_v38  ;;  %v5769_v46 = vld [vmem:[%s8071_s0 + $0x370] ss:$8 sps:$4 sm:$0xff]  }
 0x1ca   :  { %4816 = vmatprep.mubr.msk.bf16.mxu0 %vm1506_vm0, %v5753_v41  ;;  %4880 = vmatprep.mubr.msk.bf16.mxu1 %vm1506_vm0, %v5755_v42 }
 0x1cb   :  { %4286 = vst.msk [vmem:[%s8073_s3 + $0xc8] sm:$0xf] %vm4235_vm3, %v5197_v49  ;;  %4414 = vst.msk [vmem:[%s8073_s3 + $0x2c8] sm:$0xf] %vm4235_vm3, %v5325_v50  ;;  %v5198_v53 = vpack.c.bf16 %v3006_v51, %v3006_v51  ;;  %v5326_v54 = vpack.c.bf16 %v3134_v52, %v3134_v52  ;;  %v5771_v50 = vld [vmem:[%s8071_s0 + $0x384] ss:$8 sps:$4 sm:$0xff]  }
 0x1cc   :  { %v2140_v55 = vpop.f32.mrb[104].mxu0  ;;  %v2652_v56 = vpop.f32.mrb[104].mxu1  ;;  %v5773_v51 = vld [vmem:[%s8071_s0 + $0x784] ss:$8 sps:$4 sm:$0xff]  }
 0x1cd   :  { %4287 = vst.msk [vmem:[%s8073_s3 + $0xcc] sm:$0xf] %vm4235_vm3, %v5198_v53  ;;  %4415 = vst.msk [vmem:[%s8073_s3 + $0x2cc] sm:$0xf] %vm4235_vm3, %v5326_v54  ;;  %v2141_v57 = vadd.f32 %v6812_v5, %v2140_v55  ;;  %v2653_v58 = vadd.f32 %v6812_v5, %v2652_v56  ;;  %v2142_v59 = vpop.f32.mrb[105].mxu0  ;;  %v2654_v60 = vpop.f32.mrb[105].mxu1 }
 0x1ce   :  { %v2143_v0 = vpop.f32.mrb[106].mxu0  ;;  %v2655_v1 = vpop.f32.mrb[106].mxu1 }
 0x1cf   :  { %v3007_v3 = vmax.f32 %v2141_v57, 0.0  ;;  %v3135_v4 = vmax.f32 %v2653_v58, 0.0  ;;  %v2144_v6 = vadd.f32 %v6812_v5, %v2143_v0  ;;  %v2656_v7 = vadd.f32 %v6812_v5, %v2655_v1  ;;  %v2145_v8 = vpop.f32.mrb[107].mxu0  ;;  %v2657_v9 = vpop.f32.mrb[107].mxu1 }
 0x1d0   :  { %v5776_v8 = vld [vmem:[%s8071_s0 + $0x780] ss:$8 sps:$4 sm:$0xff]  }
 0x1d1   :  { %v5199_v10 = vpack.c.bf16 %v3007_v3, %v3007_v3  ;;  %v5327_v11 = vpack.c.bf16 %v3135_v4, %v3135_v4  ;;  %v3008_v12 = vmax.f32 %v2144_v6, 0.0  ;;  %v3136_v13 = vmax.f32 %v2656_v7, 0.0  ;;  %2355 = vmatmul.mubr.bf16.gmra.mrb[212].mxu0 %v5757_v62  ;;  %2867 = vmatmul.mubr.bf16.gmra.mrb[212].mxu1 %v5758_v63  ;;  %v5775_v7 = vld [vmem:[%s8071_s0 + $0x380] ss:$8 sps:$4 sm:$0xff]  }
 0x1d2   :  { %4817 = vmatprep.mubr.msk.bf16.mxu0 %vm1506_vm0, %v5759_v61  ;;  %4881 = vmatprep.mubr.msk.bf16.mxu1 %vm1506_vm0, %v5761_v2 }
 0x1d3   :  { %4288 = vst.msk [vmem:[%s8073_s3 + $0xd0] sm:$0xf] %vm4235_vm3, %v5199_v10  ;;  %4416 = vst.msk [vmem:[%s8073_s3 + $0x2d0] sm:$0xf] %vm4235_vm3, %v5327_v11  ;;  %v5200_v14 = vpack.c.bf16 %v3008_v12, %v3008_v12  ;;  %v5328_v15 = vpack.c.bf16 %v3136_v13, %v3136_v13  ;;  %v5777_v11 = vld [vmem:[%s8071_s0 + $0x394] ss:$8 sps:$4 sm:$0xff]  }
 0x1d4   :  { %v2148_v16 = vpop.f32.mrb[108].mxu0  ;;  %v2660_v17 = vpop.f32.mrb[108].mxu1  ;;  %v5779_v12 = vld [vmem:[%s8071_s0 + $0x794] ss:$8 sps:$4 sm:$0xff]  }
 0x1d5   :  { %4289 = vst.msk [vmem:[%s8073_s3 + $0xd4] sm:$0xf] %vm4235_vm3, %v5200_v14  ;;  %4417 = vst.msk [vmem:[%s8073_s3 + $0x2d4] sm:$0xf] %vm4235_vm3, %v5328_v15  ;;  %v2149_v18 = vadd.f32 %v6812_v5, %v2148_v16  ;;  %v2661_v19 = vadd.f32 %v6812_v5, %v2660_v17  ;;  %v2150_v20 = vpop.f32.mrb[109].mxu0  ;;  %v2662_v21 = vpop.f32.mrb[109].mxu1 }
 0x1d6   :  { %v2151_v24 = vpop.f32.mrb[110].mxu0  ;;  %v2663_v25 = vpop.f32.mrb[110].mxu1 }
 0x1d7   :  { %v3009_v28 = vmax.f32 %v2149_v18, 0.0  ;;  %v3137_v29 = vmax.f32 %v2661_v19, 0.0  ;;  %v2152_v30 = vadd.f32 %v6812_v5, %v2151_v24  ;;  %v2664_v31 = vadd.f32 %v6812_v5, %v2663_v25  ;;  %v2153_v32 = vpop.f32.mrb[111].mxu0  ;;  %v2665_v33 = vpop.f32.mrb[111].mxu1 }
 0x1d8   :  { %v5782_v32 = vld [vmem:[%s8071_s0 + $0x790] ss:$8 sps:$4 sm:$0xff]  }
 0x1d9   :  { %v5201_v34 = vpack.c.bf16 %v3009_v28, %v3009_v28  ;;  %v5329_v35 = vpack.c.bf16 %v3137_v29, %v3137_v29  ;;  %v3010_v36 = vmax.f32 %v2152_v30, 0.0  ;;  %v3138_v37 = vmax.f32 %v2664_v31, 0.0  ;;  %2363 = vmatmul.mubr.bf16.gmra.mrb[216].mxu0 %v5763_v22  ;;  %2875 = vmatmul.mubr.bf16.gmra.mrb[216].mxu1 %v5764_v23  ;;  %v5781_v31 = vld [vmem:[%s8071_s0 + $0x390] ss:$8 sps:$4 sm:$0xff]  }
 0x1da   :  { %4818 = vmatprep.mubr.msk.bf16.mxu0 %vm1506_vm0, %v5765_v26  ;;  %4882 = vmatprep.mubr.msk.bf16.mxu1 %vm1506_vm0, %v5767_v27 }
 0x1db   :  { %4290 = vst.msk [vmem:[%s8073_s3 + $0xd8] sm:$0xf] %vm4235_vm3, %v5201_v34  ;;  %4418 = vst.msk [vmem:[%s8073_s3 + $0x2d8] sm:$0xf] %vm4235_vm3, %v5329_v35  ;;  %v5202_v38 = vpack.c.bf16 %v3010_v36, %v3010_v36  ;;  %v5330_v39 = vpack.c.bf16 %v3138_v37, %v3138_v37  ;;  %v5783_v35 = vld [vmem:[%s8071_s0 + $0x3a4] ss:$8 sps:$4 sm:$0xff]  }
 0x1dc   :  { %v2156_v40 = vpop.f32.mrb[112].mxu0  ;;  %v2668_v41 = vpop.f32.mrb[112].mxu1  ;;  %v5785_v36 = vld [vmem:[%s8071_s0 + $0x7a4] ss:$8 sps:$4 sm:$0xff]  }
 0x1dd   :  { %4291 = vst.msk [vmem:[%s8073_s3 + $0xdc] sm:$0xf] %vm4235_vm3, %v5202_v38  ;;  %4419 = vst.msk [vmem:[%s8073_s3 + $0x2dc] sm:$0xf] %vm4235_vm3, %v5330_v39  ;;  %v2157_v42 = vadd.f32 %v6812_v5, %v2156_v40  ;;  %v2669_v43 = vadd.f32 %v6812_v5, %v2668_v41  ;;  %v2158_v44 = vpop.f32.mrb[113].mxu0  ;;  %v2670_v45 = vpop.f32.mrb[113].mxu1 }
 0x1de   :  { %v2159_v48 = vpop.f32.mrb[114].mxu0  ;;  %v2671_v49 = vpop.f32.mrb[114].mxu1 }
 0x1df   :  { %v3011_v52 = vmax.f32 %v2157_v42, 0.0  ;;  %v3139_v53 = vmax.f32 %v2669_v43, 0.0  ;;  %v2160_v54 = vadd.f32 %v6812_v5, %v2159_v48  ;;  %v2672_v55 = vadd.f32 %v6812_v5, %v2671_v49  ;;  %v2161_v56 = vpop.f32.mrb[115].mxu0  ;;  %v2673_v57 = vpop.f32.mrb[115].mxu1 }
 0x1e0   :  { %v5788_v56 = vld [vmem:[%s8071_s0 + $0x7a0] ss:$8 sps:$4 sm:$0xff]  }
 0x1e1   :  { %v5203_v58 = vpack.c.bf16 %v3011_v52, %v3011_v52  ;;  %v5331_v59 = vpack.c.bf16 %v3139_v53, %v3139_v53  ;;  %v3012_v60 = vmax.f32 %v2160_v54, 0.0  ;;  %v3140_v62 = vmax.f32 %v2672_v55, 0.0  ;;  %2371 = vmatmul.mubr.bf16.gmra.mrb[220].mxu0 %v5769_v46  ;;  %2883 = vmatmul.mubr.bf16.gmra.mrb[220].mxu1 %v5770_v47  ;;  %v5787_v55 = vld [vmem:[%s8071_s0 + $0x3a0] ss:$8 sps:$4 sm:$0xff]  }
 0x1e2   :  { %4819 = vmatprep.mubr.msk.bf16.mxu0 %vm1506_vm0, %v5771_v50  ;;  %4883 = vmatprep.mubr.msk.bf16.mxu1 %vm1506_vm0, %v5773_v51 }
 0x1e3   :  { %4292 = vst.msk [vmem:[%s8073_s3 + $0xe0] sm:$0xf] %vm4235_vm3, %v5203_v58  ;;  %4420 = vst.msk [vmem:[%s8073_s3 + $0x2e0] sm:$0xf] %vm4235_vm3, %v5331_v59  ;;  %v5204_v63 = vpack.c.bf16 %v3012_v60, %v3012_v60  ;;  %v5332_v0 = vpack.c.bf16 %v3140_v62, %v3140_v62  ;;  %v5789_v59 = vld [vmem:[%s8071_s0 + $0x3b4] ss:$8 sps:$4 sm:$0xff]  }
 0x1e4   :  { %v2164_v1 = vpop.f32.mrb[116].mxu0  ;;  %v2676_v61 = vpop.f32.mrb[116].mxu1  ;;  %v5791_v60 = vld [vmem:[%s8071_s0 + $0x7b4] ss:$8 sps:$4 sm:$0xff]  }
 0x1e5   :  { %4293 = vst.msk [vmem:[%s8073_s3 + $0xe4] sm:$0xf] %vm4235_vm3, %v5204_v63  ;;  %4421 = vst.msk [vmem:[%s8073_s3 + $0x2e4] sm:$0xf] %vm4235_vm3, %v5332_v0  ;;  %v2165_v2 = vadd.f32 %v6812_v5, %v2164_v1  ;;  %v2677_v3 = vadd.f32 %v6812_v5, %v2676_v61  ;;  %v2166_v4 = vpop.f32.mrb[117].mxu0  ;;  %v2678_v6 = vpop.f32.mrb[117].mxu1 }
 0x1e6   :  { %v2167_v9 = vpop.f32.mrb[118].mxu0  ;;  %v2679_v10 = vpop.f32.mrb[118].mxu1 }
 0x1e7   :  { %v3013_v13 = vmax.f32 %v2165_v2, 0.0  ;;  %v3141_v14 = vmax.f32 %v2677_v3, 0.0  ;;  %v2168_v15 = vadd.f32 %v6812_v5, %v2167_v9  ;;  %v2680_v16 = vadd.f32 %v6812_v5, %v2679_v10  ;;  %v2169_v17 = vpop.f32.mrb[119].mxu0  ;;  %v2681_v18 = vpop.f32.mrb[119].mxu1 }
 0x1e8   :  { %v5794_v17 = vld [vmem:[%s8071_s0 + $0x7b0] ss:$8 sps:$4 sm:$0xff]  }
 0x1e9   :  { %v5205_v19 = vpack.c.bf16 %v3013_v13, %v3013_v13  ;;  %v5333_v20 = vpack.c.bf16 %v3141_v14, %v3141_v14  ;;  %v3014_v21 = vmax.f32 %v2168_v15, 0.0  ;;  %v3142_v22 = vmax.f32 %v2680_v16, 0.0  ;;  %2379 = vmatmul.mubr.bf16.gmra.mrb[224].mxu0 %v5775_v7  ;;  %2891 = vmatmul.mubr.bf16.gmra.mrb[224].mxu1 %v5776_v8  ;;  %v5793_v16 = vld [vmem:[%s8071_s0 + $0x3b0] ss:$8 sps:$4 sm:$0xff]  }
 0x1ea   :  { %4820 = vmatprep.mubr.msk.bf16.mxu0 %vm1506_vm0, %v5777_v11  ;;  %4884 = vmatprep.mubr.msk.bf16.mxu1 %vm1506_vm0, %v5779_v12  ;;  %v7361_v11 = vld [vmem:[%s8072_s2] ss:$0 sm:$0xff] }
 0x1eb   :  { %4294 = vst.msk [vmem:[%s8073_s3 + $0xe8] sm:$0xf] %vm4235_vm3, %v5205_v19  ;;  %4422 = vst.msk [vmem:[%s8073_s3 + $0x2e8] sm:$0xf] %vm4235_vm3, %v5333_v20  ;;  %v5206_v23 = vpack.c.bf16 %v3014_v21, %v3014_v21  ;;  %v5334_v24 = vpack.c.bf16 %v3142_v22, %v3142_v22  ;;  %v5795_v20 = vld [vmem:[%s8071_s0 + $0x3c4] ss:$8 sps:$4 sm:$0xff]  }
 0x1ec   :  { %v2172_v25 = vpop.f32.mrb[120].mxu0  ;;  %v2684_v26 = vpop.f32.mrb[120].mxu1  ;;  %v5797_v21 = vld [vmem:[%s8071_s0 + $0x7c4] ss:$8 sps:$4 sm:$0xff]  }
 0x1ed   :  { %4295 = vst.msk [vmem:[%s8073_s3 + $0xec] sm:$0xf] %vm4235_vm3, %v5206_v23  ;;  %4423 = vst.msk [vmem:[%s8073_s3 + $0x2ec] sm:$0xf] %vm4235_vm3, %v5334_v24  ;;  %v2173_v27 = vadd.f32 %v6812_v5, %v2172_v25  ;;  %v2685_v28 = vadd.f32 %v6812_v5, %v2684_v26  ;;  %v2174_v29 = vpop.f32.mrb[121].mxu0  ;;  %v2686_v30 = vpop.f32.mrb[121].mxu1 }
 0x1ee   :  { %v2175_v33 = vpop.f32.mrb[122].mxu0  ;;  %v2687_v34 = vpop.f32.mrb[122].mxu1 }
 0x1ef   :  { %v3015_v37 = vmax.f32 %v2173_v27, 0.0  ;;  %v3143_v38 = vmax.f32 %v2685_v28, 0.0  ;;  %v2176_v39 = vadd.f32 %v6812_v5, %v2175_v33  ;;  %v2688_v40 = vadd.f32 %v6812_v5, %v2687_v34  ;;  %v2177_v41 = vpop.f32.mrb[123].mxu0  ;;  %v2689_v42 = vpop.f32.mrb[123].mxu1 }
 0x1f0   :  { %v5800_v41 = vld [vmem:[%s8071_s0 + $0x7c0] ss:$8 sps:$4 sm:$0xff]  }
 0x1f1   :  { %v5207_v43 = vpack.c.bf16 %v3015_v37, %v3015_v37  ;;  %v5335_v44 = vpack.c.bf16 %v3143_v38, %v3143_v38  ;;  %v3016_v45 = vmax.f32 %v2176_v39, 0.0  ;;  %v3144_v46 = vmax.f32 %v2688_v40, 0.0  ;;  %2387 = vmatmul.mubr.bf16.gmra.mrb[228].mxu0 %v5781_v31  ;;  %2899 = vmatmul.mubr.bf16.gmra.mrb[228].mxu1 %v5782_v32  ;;  %v5799_v40 = vld [vmem:[%s8071_s0 + $0x3c0] ss:$8 sps:$4 sm:$0xff]  }
 0x1f2   :  { %4821 = vmatprep.mubr.msk.bf16.mxu0 %vm1506_vm0, %v5783_v35  ;;  %4885 = vmatprep.mubr.msk.bf16.mxu1 %vm1506_vm0, %v5785_v36 }
 0x1f3   :  { %4296 = vst.msk [vmem:[%s8073_s3 + $0xf0] sm:$0xf] %vm4235_vm3, %v5207_v43  ;;  %4424 = vst.msk [vmem:[%s8073_s3 + $0x2f0] sm:$0xf] %vm4235_vm3, %v5335_v44  ;;  %v5208_v47 = vpack.c.bf16 %v3016_v45, %v3016_v45  ;;  %v5336_v48 = vpack.c.bf16 %v3144_v46, %v3144_v46  ;;  %v5801_v44 = vld [vmem:[%s8071_s0 + $0x3d4] ss:$8 sps:$4 sm:$0xff]  }
 0x1f4   :  { %v2180_v49 = vpop.f32.mrb[124].mxu0  ;;  %v2692_v50 = vpop.f32.mrb[124].mxu1  ;;  %v5803_v45 = vld [vmem:[%s8071_s0 + $0x7d4] ss:$8 sps:$4 sm:$0xff]  }
 0x1f5   :  { %4297 = vst.msk [vmem:[%s8073_s3 + $0xf4] sm:$0xf] %vm4235_vm3, %v5208_v47  ;;  %4425 = vst.msk [vmem:[%s8073_s3 + $0x2f4] sm:$0xf] %vm4235_vm3, %v5336_v48  ;;  %v2181_v51 = vadd.f32 %v6812_v5, %v2180_v49  ;;  %v2693_v52 = vadd.f32 %v6812_v5, %v2692_v50  ;;  %v2182_v53 = vpop.f32.mrb[125].mxu0  ;;  %v2694_v54 = vpop.f32.mrb[125].mxu1 }
 0x1f6   :  { %v2183_v57 = vpop.f32.mrb[126].mxu0  ;;  %v2695_v58 = vpop.f32.mrb[126].mxu1 }
 0x1f7   :  { %v3017_v62 = vmax.f32 %v2181_v51, 0.0  ;;  %v3145_v63 = vmax.f32 %v2693_v52, 0.0  ;;  %v2184_v0 = vadd.f32 %v6812_v5, %v2183_v57  ;;  %v2696_v1 = vadd.f32 %v6812_v5, %v2695_v58  ;;  %v2185_v61 = vpop.f32.mrb[127].mxu0  ;;  %v2697_v2 = vpop.f32.mrb[127].mxu1 }
 0x1f8   :  { %v5806_v61 = vld [vmem:[%s8071_s0 + $0x7d0] ss:$8 sps:$4 sm:$0xff]  }
 0x1f9   :  { %v5209_v3 = vpack.c.bf16 %v3017_v62, %v3017_v62  ;;  %v5337_v4 = vpack.c.bf16 %v3145_v63, %v3145_v63  ;;  %v3018_v6 = vmax.f32 %v2184_v0, 0.0  ;;  %v3146_v7 = vmax.f32 %v2696_v1, 0.0  ;;  %2395 = vmatmul.mubr.bf16.gmra.mrb[232].mxu0 %v5787_v55  ;;  %2907 = vmatmul.mubr.bf16.gmra.mrb[232].mxu1 %v5788_v56  ;;  %v5805_v1 = vld [vmem:[%s8071_s0 + $0x3d0] ss:$8 sps:$4 sm:$0xff]  }
 0x1fa   :  { %4822 = vmatprep.mubr.msk.bf16.mxu0 %vm1506_vm0, %v5789_v59  ;;  %4886 = vmatprep.mubr.msk.bf16.mxu1 %vm1506_vm0, %v5791_v60 }
 0x1fb   :  { %4298 = vst.msk [vmem:[%s8073_s3 + $0xf8] sm:$0xf] %vm4235_vm3, %v5209_v3  ;;  %4426 = vst.msk [vmem:[%s8073_s3 + $0x2f8] sm:$0xf] %vm4235_vm3, %v5337_v4  ;;  %v5210_v5 = vpack.c.bf16 %v3018_v6, %v3018_v6  ;;  %v5338_v8 = vpack.c.bf16 %v3146_v7, %v3146_v7  ;;  %v5807_v4 = vld [vmem:[%s8071_s0 + $0x3e4] ss:$8 sps:$4 sm:$0xff]  }
 0x1fc   :  { %v2188_v9 = vpop.f32.mrb[128].mxu0  ;;  %v2700_v10 = vpop.f32.mrb[128].mxu1  ;;  %v5809_v6 = vld [vmem:[%s8071_s0 + $0x7e4] ss:$8 sps:$4 sm:$0xff]  }
 0x1fd   :  { %4299 = vst.msk [vmem:[%s8073_s3 + $0xfc] sm:$0xf] %vm4235_vm3, %v5210_v5  ;;  %4427 = vst.msk [vmem:[%s8073_s3 + $0x2fc] sm:$0xf] %vm4235_vm3, %v5338_v8  ;;  %v2189_v12 = vadd.f32 %v7361_v11, %v2188_v9  ;;  %v2701_v13 = vadd.f32 %v7361_v11, %v2700_v10  ;;  %v2190_v14 = vpop.f32.mrb[129].mxu0  ;;  %v2702_v15 = vpop.f32.mrb[129].mxu1 }
 0x1fe   :  { %v2191_v18 = vpop.f32.mrb[130].mxu0  ;;  %v2703_v19 = vpop.f32.mrb[130].mxu1 }
 0x1ff   :  { %v3019_v22 = vmax.f32 %v2189_v12, 0.0  ;;  %v3147_v23 = vmax.f32 %v2701_v13, 0.0  ;;  %v2192_v24 = vadd.f32 %v7361_v11, %v2191_v18  ;;  %v2704_v25 = vadd.f32 %v7361_v11, %v2703_v19  ;;  %v2193_v26 = vpop.f32.mrb[131].mxu0  ;;  %v2705_v27 = vpop.f32.mrb[131].mxu1 }
 0x200   :  { %v5812_v26 = vld [vmem:[%s8071_s0 + $0x7e0] ss:$8 sps:$4 sm:$0xff]  }
 0x201   :  { %v5211_v28 = vpack.c.bf16 %v3019_v22, %v3019_v22  ;;  %v5339_v29 = vpack.c.bf16 %v3147_v23, %v3147_v23  ;;  %v3020_v30 = vmax.f32 %v2192_v24, 0.0  ;;  %v3148_v31 = vmax.f32 %v2704_v25, 0.0  ;;  %2403 = vmatmul.mubr.bf16.gmra.mrb[236].mxu0 %v5793_v16  ;;  %2915 = vmatmul.mubr.bf16.gmra.mrb[236].mxu1 %v5794_v17  ;;  %v5811_v25 = vld [vmem:[%s8071_s0 + $0x3e0] ss:$8 sps:$4 sm:$0xff]  }
 0x202   :  { %4823 = vmatprep.mubr.msk.bf16.mxu0 %vm1506_vm0, %v5795_v20  ;;  %4887 = vmatprep.mubr.msk.bf16.mxu1 %vm1506_vm0, %v5797_v21 }
 0x203   :  { %4300 = vst.msk [vmem:[%s8073_s3 + $0x100] sm:$0xf] %vm4235_vm3, %v5211_v28  ;;  %4428 = vst.msk [vmem:[%s8073_s3 + $0x300] sm:$0xf] %vm4235_vm3, %v5339_v29  ;;  %v5212_v32 = vpack.c.bf16 %v3020_v30, %v3020_v30  ;;  %v5340_v33 = vpack.c.bf16 %v3148_v31, %v3148_v31  ;;  %v5813_v29 = vld [vmem:[%s8071_s0 + $0x3f4] ss:$8 sps:$4 sm:$0xff]  }
 0x204   :  { %v2196_v34 = vpop.f32.mrb[132].mxu0  ;;  %v2708_v35 = vpop.f32.mrb[132].mxu1  ;;  %v5815_v30 = vld [vmem:[%s8071_s0 + $0x7f4] ss:$8 sps:$4 sm:$0xff]  }
 0x205   :  { %4301 = vst.msk [vmem:[%s8073_s3 + $0x104] sm:$0xf] %vm4235_vm3, %v5212_v32  ;;  %4429 = vst.msk [vmem:[%s8073_s3 + $0x304] sm:$0xf] %vm4235_vm3, %v5340_v33  ;;  %v2197_v36 = vadd.f32 %v7361_v11, %v2196_v34  ;;  %v2709_v37 = vadd.f32 %v7361_v11, %v2708_v35  ;;  %v2198_v38 = vpop.f32.mrb[133].mxu0  ;;  %v2710_v39 = vpop.f32.mrb[133].mxu1 }
 0x206   :  { %v2199_v42 = vpop.f32.mrb[134].mxu0  ;;  %v2711_v43 = vpop.f32.mrb[134].mxu1 }
 0x207   :  { %v3021_v46 = vmax.f32 %v2197_v36, 0.0  ;;  %v3149_v47 = vmax.f32 %v2709_v37, 0.0  ;;  %v2200_v48 = vadd.f32 %v7361_v11, %v2199_v42  ;;  %v2712_v49 = vadd.f32 %v7361_v11, %v2711_v43  ;;  %v2201_v50 = vpop.f32.mrb[135].mxu0  ;;  %v2713_v51 = vpop.f32.mrb[135].mxu1 }
 0x208   :  { %v5818_v50 = vld [vmem:[%s8071_s0 + $0x7f0] ss:$8 sps:$4 sm:$0xff]  }
 0x209   :  { %v5213_v52 = vpack.c.bf16 %v3021_v46, %v3021_v46  ;;  %v5341_v53 = vpack.c.bf16 %v3149_v47, %v3149_v47  ;;  %v3022_v54 = vmax.f32 %v2200_v48, 0.0  ;;  %v3150_v55 = vmax.f32 %v2712_v49, 0.0  ;;  %2411 = vmatmul.mubr.bf16.gmra.mrb[240].mxu0 %v5799_v40  ;;  %2923 = vmatmul.mubr.bf16.gmra.mrb[240].mxu1 %v5800_v41  ;;  %v5817_v49 = vld [vmem:[%s8071_s0 + $0x3f0] ss:$8 sps:$4 sm:$0xff]  }
 0x20a   :  { %4824 = vmatprep.mubr.msk.bf16.mxu0 %vm1506_vm0, %v5801_v44  ;;  %4888 = vmatprep.mubr.msk.bf16.mxu1 %vm1506_vm0, %v5803_v45 }
 0x20b   :  { %4302 = vst.msk [vmem:[%s8073_s3 + $0x108] sm:$0xf] %vm4235_vm3, %v5213_v52  ;;  %4430 = vst.msk [vmem:[%s8073_s3 + $0x308] sm:$0xf] %vm4235_vm3, %v5341_v53  ;;  %v5214_v56 = vpack.c.bf16 %v3022_v54, %v3022_v54  ;;  %v5342_v57 = vpack.c.bf16 %v3150_v55, %v3150_v55 }
 0x20c   :  { %v2204_v58 = vpop.f32.mrb[136].mxu0  ;;  %v2716_v59 = vpop.f32.mrb[136].mxu1 }
 0x20d   :  { %4303 = vst.msk [vmem:[%s8073_s3 + $0x10c] sm:$0xf] %vm4235_vm3, %v5214_v56  ;;  %4431 = vst.msk [vmem:[%s8073_s3 + $0x30c] sm:$0xf] %vm4235_vm3, %v5342_v57  ;;  %v2205_v60 = vadd.f32 %v7361_v11, %v2204_v58  ;;  %v2717_v62 = vadd.f32 %v7361_v11, %v2716_v59  ;;  %v2206_v63 = vpop.f32.mrb[137].mxu0  ;;  %v2718_v0 = vpop.f32.mrb[137].mxu1 }
 0x20e   :  { %v2207_v2 = vpop.f32.mrb[138].mxu0  ;;  %v2719_v3 = vpop.f32.mrb[138].mxu1 }
 0x20f   :  { %v3023_v7 = vmax.f32 %v2205_v60, 0.0  ;;  %v3151_v5 = vmax.f32 %v2717_v62, 0.0  ;;  %v2208_v8 = vadd.f32 %v7361_v11, %v2207_v2  ;;  %v2720_v9 = vadd.f32 %v7361_v11, %v2719_v3  ;;  %v2209_v10 = vpop.f32.mrb[139].mxu0  ;;  %v2721_v12 = vpop.f32.mrb[139].mxu1 }
 0x211   :  { %v5215_v13 = vpack.c.bf16 %v3023_v7, %v3023_v7  ;;  %v5343_v14 = vpack.c.bf16 %v3151_v5, %v3151_v5  ;;  %v3024_v15 = vmax.f32 %v2208_v8, 0.0  ;;  %v3152_v16 = vmax.f32 %v2720_v9, 0.0  ;;  %2419 = vmatmul.mubr.bf16.gmra.mrb[244].mxu0 %v5805_v1  ;;  %2931 = vmatmul.mubr.bf16.gmra.mrb[244].mxu1 %v5806_v61 }
 0x212   :  { %4825 = vmatprep.mubr.msk.bf16.mxu0 %vm1506_vm0, %v5807_v4  ;;  %4889 = vmatprep.mubr.msk.bf16.mxu1 %vm1506_vm0, %v5809_v6 }
 0x213   :  { %4304 = vst.msk [vmem:[%s8073_s3 + $0x110] sm:$0xf] %vm4235_vm3, %v5215_v13  ;;  %4432 = vst.msk [vmem:[%s8073_s3 + $0x310] sm:$0xf] %vm4235_vm3, %v5343_v14  ;;  %v5216_v17 = vpack.c.bf16 %v3024_v15, %v3024_v15  ;;  %v5344_v18 = vpack.c.bf16 %v3152_v16, %v3152_v16 }
 0x214   :  { %v2212_v19 = vpop.f32.mrb[140].mxu0  ;;  %v2724_v20 = vpop.f32.mrb[140].mxu1 }
 0x215   :  { %4305 = vst.msk [vmem:[%s8073_s3 + $0x114] sm:$0xf] %vm4235_vm3, %v5216_v17  ;;  %4433 = vst.msk [vmem:[%s8073_s3 + $0x314] sm:$0xf] %vm4235_vm3, %v5344_v18  ;;  %v2213_v21 = vadd.f32 %v7361_v11, %v2212_v19  ;;  %v2725_v22 = vadd.f32 %v7361_v11, %v2724_v20  ;;  %v2214_v23 = vpop.f32.mrb[141].mxu0  ;;  %v2726_v24 = vpop.f32.mrb[141].mxu1 }
 0x216   :  { %v2215_v27 = vpop.f32.mrb[142].mxu0  ;;  %v2727_v28 = vpop.f32.mrb[142].mxu1 }
 0x217   :  { %v3025_v31 = vmax.f32 %v2213_v21, 0.0  ;;  %v3153_v32 = vmax.f32 %v2725_v22, 0.0  ;;  %v2216_v33 = vadd.f32 %v7361_v11, %v2215_v27  ;;  %v2728_v34 = vadd.f32 %v7361_v11, %v2727_v28  ;;  %v2217_v35 = vpop.f32.mrb[143].mxu0  ;;  %v2729_v36 = vpop.f32.mrb[143].mxu1 }
 0x219   :  { %v5217_v37 = vpack.c.bf16 %v3025_v31, %v3025_v31  ;;  %v5345_v38 = vpack.c.bf16 %v3153_v32, %v3153_v32  ;;  %v3026_v39 = vmax.f32 %v2216_v33, 0.0  ;;  %v3154_v40 = vmax.f32 %v2728_v34, 0.0  ;;  %2427 = vmatmul.mubr.bf16.gmra.mrb[248].mxu0 %v5811_v25  ;;  %2939 = vmatmul.mubr.bf16.gmra.mrb[248].mxu1 %v5812_v26 }
 0x21a   :  { %4826 = vmatprep.mubr.msk.bf16.mxu0 %vm1506_vm0, %v5813_v29  ;;  %4890 = vmatprep.mubr.msk.bf16.mxu1 %vm1506_vm0, %v5815_v30 }
 0x21b   :  { %4306 = vst.msk [vmem:[%s8073_s3 + $0x118] sm:$0xf] %vm4235_vm3, %v5217_v37  ;;  %4434 = vst.msk [vmem:[%s8073_s3 + $0x318] sm:$0xf] %vm4235_vm3, %v5345_v38  ;;  %v5218_v41 = vpack.c.bf16 %v3026_v39, %v3026_v39  ;;  %v5346_v42 = vpack.c.bf16 %v3154_v40, %v3154_v40 }
 0x21c   :  { %v2220_v43 = vpop.f32.mrb[144].mxu0  ;;  %v2732_v44 = vpop.f32.mrb[144].mxu1 }
 0x21d   :  { %4307 = vst.msk [vmem:[%s8073_s3 + $0x11c] sm:$0xf] %vm4235_vm3, %v5218_v41  ;;  %4435 = vst.msk [vmem:[%s8073_s3 + $0x31c] sm:$0xf] %vm4235_vm3, %v5346_v42  ;;  %v2221_v45 = vadd.f32 %v7361_v11, %v2220_v43  ;;  %v2733_v46 = vadd.f32 %v7361_v11, %v2732_v44  ;;  %v2222_v47 = vpop.f32.mrb[145].mxu0  ;;  %v2734_v48 = vpop.f32.mrb[145].mxu1 }
 0x21e   :  { %v2223_v51 = vpop.f32.mrb[146].mxu0  ;;  %v2735_v52 = vpop.f32.mrb[146].mxu1 }
 0x21f   :  { %v3027_v53 = vmax.f32 %v2221_v45, 0.0  ;;  %v3155_v54 = vmax.f32 %v2733_v46, 0.0  ;;  %v2224_v55 = vadd.f32 %v7361_v11, %v2223_v51  ;;  %v2736_v56 = vadd.f32 %v7361_v11, %v2735_v52  ;;  %v2225_v57 = vpop.f32.mrb[147].mxu0  ;;  %v2737_v58 = vpop.f32.mrb[147].mxu1 }
 0x221   :  { %v5219_v59 = vpack.c.bf16 %v3027_v53, %v3027_v53  ;;  %v5347_v60 = vpack.c.bf16 %v3155_v54, %v3155_v54  ;;  %v3028_v62 = vmax.f32 %v2224_v55, 0.0  ;;  %v3156_v63 = vmax.f32 %v2736_v56, 0.0  ;;  %2435 = vmatmul.mubr.bf16.gmra.mrb[252].mxu0 %v5817_v49  ;;  %2947 = vmatmul.mubr.bf16.gmra.mrb[252].mxu1 %v5818_v50 }
 0x223   :  { %4308 = vst.msk [vmem:[%s8073_s3 + $0x120] sm:$0xf] %vm4235_vm3, %v5219_v59  ;;  %4436 = vst.msk [vmem:[%s8073_s3 + $0x320] sm:$0xf] %vm4235_vm3, %v5347_v60  ;;  %v5220_v0 = vpack.c.bf16 %v3028_v62, %v3028_v62  ;;  %v5348_v1 = vpack.c.bf16 %v3156_v63, %v3156_v63 }
 0x224   :  { %v2228_v61 = vpop.f32.mrb[148].mxu0  ;;  %v2740_v2 = vpop.f32.mrb[148].mxu1 }
 0x225   :  { %4309 = vst.msk [vmem:[%s8073_s3 + $0x124] sm:$0xf] %vm4235_vm3, %v5220_v0  ;;  %4437 = vst.msk [vmem:[%s8073_s3 + $0x324] sm:$0xf] %vm4235_vm3, %v5348_v1  ;;  %v2229_v3 = vadd.f32 %v7361_v11, %v2228_v61  ;;  %v2741_v4 = vadd.f32 %v7361_v11, %v2740_v2  ;;  %v2230_v6 = vpop.f32.mrb[149].mxu0  ;;  %v2742_v7 = vpop.f32.mrb[149].mxu1 }
 0x226   :  { %v2231_v5 = vpop.f32.mrb[150].mxu0  ;;  %v2743_v8 = vpop.f32.mrb[150].mxu1 }
 0x227   :  { %v3029_v9 = vmax.f32 %v2229_v3, 0.0  ;;  %v3157_v10 = vmax.f32 %v2741_v4, 0.0  ;;  %v2232_v12 = vadd.f32 %v7361_v11, %v2231_v5  ;;  %v2744_v13 = vadd.f32 %v7361_v11, %v2743_v8  ;;  %v2233_v14 = vpop.f32.mrb[151].mxu0  ;;  %v2745_v15 = vpop.f32.mrb[151].mxu1 }
 0x229   :  { %v5221_v16 = vpack.c.bf16 %v3029_v9, %v3029_v9  ;;  %v5349_v17 = vpack.c.bf16 %v3157_v10, %v3157_v10  ;;  %v3030_v18 = vmax.f32 %v2232_v12, 0.0  ;;  %v3158_v19 = vmax.f32 %v2744_v13, 0.0 }
 0x22b   :  { %4310 = vst.msk [vmem:[%s8073_s3 + $0x128] sm:$0xf] %vm4235_vm3, %v5221_v16  ;;  %4438 = vst.msk [vmem:[%s8073_s3 + $0x328] sm:$0xf] %vm4235_vm3, %v5349_v17  ;;  %v5222_v20 = vpack.c.bf16 %v3030_v18, %v3030_v18  ;;  %v5350_v21 = vpack.c.bf16 %v3158_v19, %v3158_v19 }
 0x22c   :  { %v2236_v22 = vpop.f32.mrb[152].mxu0  ;;  %v2748_v23 = vpop.f32.mrb[152].mxu1 }
 0x22d   :  { %4311 = vst.msk [vmem:[%s8073_s3 + $0x12c] sm:$0xf] %vm4235_vm3, %v5222_v20  ;;  %4439 = vst.msk [vmem:[%s8073_s3 + $0x32c] sm:$0xf] %vm4235_vm3, %v5350_v21  ;;  %v2237_v24 = vadd.f32 %v7361_v11, %v2236_v22  ;;  %v2749_v25 = vadd.f32 %v7361_v11, %v2748_v23  ;;  %v2238_v26 = vpop.f32.mrb[153].mxu0  ;;  %v2750_v27 = vpop.f32.mrb[153].mxu1 }
 0x22e   :  { %v2239_v28 = vpop.f32.mrb[154].mxu0  ;;  %v2751_v29 = vpop.f32.mrb[154].mxu1 }
 0x22f   :  { %v3031_v30 = vmax.f32 %v2237_v24, 0.0  ;;  %v3159_v31 = vmax.f32 %v2749_v25, 0.0  ;;  %v2240_v32 = vadd.f32 %v7361_v11, %v2239_v28  ;;  %v2752_v33 = vadd.f32 %v7361_v11, %v2751_v29  ;;  %v2241_v34 = vpop.f32.mrb[155].mxu0  ;;  %v2753_v35 = vpop.f32.mrb[155].mxu1 }
 0x231   :  { %v5223_v36 = vpack.c.bf16 %v3031_v30, %v3031_v30  ;;  %v5351_v37 = vpack.c.bf16 %v3159_v31, %v3159_v31  ;;  %v3032_v38 = vmax.f32 %v2240_v32, 0.0  ;;  %v3160_v39 = vmax.f32 %v2752_v33, 0.0 }
 0x233   :  { %4312 = vst.msk [vmem:[%s8073_s3 + $0x130] sm:$0xf] %vm4235_vm3, %v5223_v36  ;;  %4440 = vst.msk [vmem:[%s8073_s3 + $0x330] sm:$0xf] %vm4235_vm3, %v5351_v37  ;;  %v5224_v40 = vpack.c.bf16 %v3032_v38, %v3032_v38  ;;  %v5352_v41 = vpack.c.bf16 %v3160_v39, %v3160_v39 }
 0x234   :  { %v2244_v42 = vpop.f32.mrb[156].mxu0  ;;  %v2756_v43 = vpop.f32.mrb[156].mxu1 }
 0x235   :  { %4313 = vst.msk [vmem:[%s8073_s3 + $0x134] sm:$0xf] %vm4235_vm3, %v5224_v40  ;;  %4441 = vst.msk [vmem:[%s8073_s3 + $0x334] sm:$0xf] %vm4235_vm3, %v5352_v41  ;;  %v2245_v44 = vadd.f32 %v7361_v11, %v2244_v42  ;;  %v2757_v45 = vadd.f32 %v7361_v11, %v2756_v43  ;;  %v2246_v46 = vpop.f32.mrb[157].mxu0  ;;  %v2758_v47 = vpop.f32.mrb[157].mxu1 }
 0x236   :  { %v2247_v48 = vpop.f32.mrb[158].mxu0  ;;  %v2759_v49 = vpop.f32.mrb[158].mxu1 }
 0x237   :  { %v3033_v50 = vmax.f32 %v2245_v44, 0.0  ;;  %v3161_v51 = vmax.f32 %v2757_v45, 0.0  ;;  %v2248_v52 = vadd.f32 %v7361_v11, %v2247_v48  ;;  %v2760_v53 = vadd.f32 %v7361_v11, %v2759_v49  ;;  %v2249_v54 = vpop.f32.mrb[159].mxu0  ;;  %v2761_v55 = vpop.f32.mrb[159].mxu1 }
 0x239   :  { %v5225_v56 = vpack.c.bf16 %v3033_v50, %v3033_v50  ;;  %v5353_v57 = vpack.c.bf16 %v3161_v51, %v3161_v51  ;;  %v3034_v58 = vmax.f32 %v2248_v52, 0.0  ;;  %v3162_v59 = vmax.f32 %v2760_v53, 0.0 }
 0x23b   :  { %4314 = vst.msk [vmem:[%s8073_s3 + $0x138] sm:$0xf] %vm4235_vm3, %v5225_v56  ;;  %4442 = vst.msk [vmem:[%s8073_s3 + $0x338] sm:$0xf] %vm4235_vm3, %v5353_v57  ;;  %v5226_v60 = vpack.c.bf16 %v3034_v58, %v3034_v58  ;;  %v5354_v62 = vpack.c.bf16 %v3162_v59, %v3162_v59 }
 0x23c   :  { %v2252_v63 = vpop.f32.mrb[160].mxu0  ;;  %v2764_v0 = vpop.f32.mrb[160].mxu1 }
 0x23d   :  { %4315 = vst.msk [vmem:[%s8073_s3 + $0x13c] sm:$0xf] %vm4235_vm3, %v5226_v60  ;;  %4443 = vst.msk [vmem:[%s8073_s3 + $0x33c] sm:$0xf] %vm4235_vm3, %v5354_v62  ;;  %v2253_v1 = vadd.f32 %v7361_v11, %v2252_v63  ;;  %v2765_v61 = vadd.f32 %v7361_v11, %v2764_v0  ;;  %v2254_v2 = vpop.f32.mrb[161].mxu0  ;;  %v2766_v3 = vpop.f32.mrb[161].mxu1 }
 0x23e   :  { %v2255_v4 = vpop.f32.mrb[162].mxu0  ;;  %v2767_v6 = vpop.f32.mrb[162].mxu1 }
 0x23f   :  { %v3035_v7 = vmax.f32 %v2253_v1, 0.0  ;;  %v3163_v5 = vmax.f32 %v2765_v61, 0.0  ;;  %v2256_v8 = vadd.f32 %v7361_v11, %v2255_v4  ;;  %v2768_v9 = vadd.f32 %v7361_v11, %v2767_v6  ;;  %v2257_v10 = vpop.f32.mrb[163].mxu0  ;;  %v2769_v12 = vpop.f32.mrb[163].mxu1 }
 0x241   :  { %v5227_v13 = vpack.c.bf16 %v3035_v7, %v3035_v7  ;;  %v5355_v14 = vpack.c.bf16 %v3163_v5, %v3163_v5  ;;  %v3036_v15 = vmax.f32 %v2256_v8, 0.0  ;;  %v3164_v16 = vmax.f32 %v2768_v9, 0.0 }
 0x243   :  { %4316 = vst.msk [vmem:[%s8073_s3 + $0x140] sm:$0xf] %vm4235_vm3, %v5227_v13  ;;  %4444 = vst.msk [vmem:[%s8073_s3 + $0x340] sm:$0xf] %vm4235_vm3, %v5355_v14  ;;  %v5228_v17 = vpack.c.bf16 %v3036_v15, %v3036_v15  ;;  %v5356_v18 = vpack.c.bf16 %v3164_v16, %v3164_v16 }
 0x244   :  { %v2260_v19 = vpop.f32.mrb[164].mxu0  ;;  %v2772_v20 = vpop.f32.mrb[164].mxu1 }
 0x245   :  { %4317 = vst.msk [vmem:[%s8073_s3 + $0x144] sm:$0xf] %vm4235_vm3, %v5228_v17  ;;  %4445 = vst.msk [vmem:[%s8073_s3 + $0x344] sm:$0xf] %vm4235_vm3, %v5356_v18  ;;  %v2261_v21 = vadd.f32 %v7361_v11, %v2260_v19  ;;  %v2773_v22 = vadd.f32 %v7361_v11, %v2772_v20  ;;  %v2262_v23 = vpop.f32.mrb[165].mxu0  ;;  %v2774_v24 = vpop.f32.mrb[165].mxu1 }
 0x246   :  { %v2263_v25 = vpop.f32.mrb[166].mxu0  ;;  %v2775_v26 = vpop.f32.mrb[166].mxu1 }
 0x247   :  { %v3037_v27 = vmax.f32 %v2261_v21, 0.0  ;;  %v3165_v28 = vmax.f32 %v2773_v22, 0.0  ;;  %v2264_v29 = vadd.f32 %v7361_v11, %v2263_v25  ;;  %v2776_v30 = vadd.f32 %v7361_v11, %v2775_v26  ;;  %v2265_v31 = vpop.f32.mrb[167].mxu0  ;;  %v2777_v32 = vpop.f32.mrb[167].mxu1 }
 0x249   :  { %v5229_v33 = vpack.c.bf16 %v3037_v27, %v3037_v27  ;;  %v5357_v34 = vpack.c.bf16 %v3165_v28, %v3165_v28  ;;  %v3038_v35 = vmax.f32 %v2264_v29, 0.0  ;;  %v3166_v36 = vmax.f32 %v2776_v30, 0.0 }
 0x24b   :  { %4318 = vst.msk [vmem:[%s8073_s3 + $0x148] sm:$0xf] %vm4235_vm3, %v5229_v33  ;;  %4446 = vst.msk [vmem:[%s8073_s3 + $0x348] sm:$0xf] %vm4235_vm3, %v5357_v34  ;;  %v5230_v37 = vpack.c.bf16 %v3038_v35, %v3038_v35  ;;  %v5358_v38 = vpack.c.bf16 %v3166_v36, %v3166_v36 }
 0x24c   :  { %v2268_v39 = vpop.f32.mrb[168].mxu0  ;;  %v2780_v40 = vpop.f32.mrb[168].mxu1 }
 0x24d   :  { %4319 = vst.msk [vmem:[%s8073_s3 + $0x14c] sm:$0xf] %vm4235_vm3, %v5230_v37  ;;  %4447 = vst.msk [vmem:[%s8073_s3 + $0x34c] sm:$0xf] %vm4235_vm3, %v5358_v38  ;;  %v2269_v41 = vadd.f32 %v7361_v11, %v2268_v39  ;;  %v2781_v42 = vadd.f32 %v7361_v11, %v2780_v40  ;;  %v2270_v43 = vpop.f32.mrb[169].mxu0  ;;  %v2782_v44 = vpop.f32.mrb[169].mxu1 }
 0x24e   :  { %v2271_v45 = vpop.f32.mrb[170].mxu0  ;;  %v2783_v46 = vpop.f32.mrb[170].mxu1 }
 0x24f   :  { %v3039_v47 = vmax.f32 %v2269_v41, 0.0  ;;  %v3167_v48 = vmax.f32 %v2781_v42, 0.0  ;;  %v2272_v49 = vadd.f32 %v7361_v11, %v2271_v45  ;;  %v2784_v50 = vadd.f32 %v7361_v11, %v2783_v46  ;;  %v2273_v51 = vpop.f32.mrb[171].mxu0  ;;  %v2785_v52 = vpop.f32.mrb[171].mxu1 }
 0x251   :  { %v5231_v53 = vpack.c.bf16 %v3039_v47, %v3039_v47  ;;  %v5359_v54 = vpack.c.bf16 %v3167_v48, %v3167_v48  ;;  %v3040_v55 = vmax.f32 %v2272_v49, 0.0  ;;  %v3168_v56 = vmax.f32 %v2784_v50, 0.0 }
 0x253   :  { %4320 = vst.msk [vmem:[%s8073_s3 + $0x150] sm:$0xf] %vm4235_vm3, %v5231_v53  ;;  %4448 = vst.msk [vmem:[%s8073_s3 + $0x350] sm:$0xf] %vm4235_vm3, %v5359_v54  ;;  %v5232_v57 = vpack.c.bf16 %v3040_v55, %v3040_v55  ;;  %v5360_v58 = vpack.c.bf16 %v3168_v56, %v3168_v56 }
 0x254   :  { %v2276_v59 = vpop.f32.mrb[172].mxu0  ;;  %v2788_v60 = vpop.f32.mrb[172].mxu1 }
 0x255   :  { %4321 = vst.msk [vmem:[%s8073_s3 + $0x154] sm:$0xf] %vm4235_vm3, %v5232_v57  ;;  %4449 = vst.msk [vmem:[%s8073_s3 + $0x354] sm:$0xf] %vm4235_vm3, %v5360_v58  ;;  %v2277_v62 = vadd.f32 %v7361_v11, %v2276_v59  ;;  %v2789_v63 = vadd.f32 %v7361_v11, %v2788_v60  ;;  %v2278_v0 = vpop.f32.mrb[173].mxu0  ;;  %v2790_v1 = vpop.f32.mrb[173].mxu1 }
 0x256   :  { %v2279_v61 = vpop.f32.mrb[174].mxu0  ;;  %v2791_v2 = vpop.f32.mrb[174].mxu1 }
 0x257   :  { %v3041_v3 = vmax.f32 %v2277_v62, 0.0  ;;  %v3169_v4 = vmax.f32 %v2789_v63, 0.0  ;;  %v2280_v6 = vadd.f32 %v7361_v11, %v2279_v61  ;;  %v2792_v7 = vadd.f32 %v7361_v11, %v2791_v2  ;;  %v2281_v5 = vpop.f32.mrb[175].mxu0  ;;  %v2793_v8 = vpop.f32.mrb[175].mxu1 }
 0x259   :  { %v5233_v9 = vpack.c.bf16 %v3041_v3, %v3041_v3  ;;  %v5361_v10 = vpack.c.bf16 %v3169_v4, %v3169_v4  ;;  %v3042_v12 = vmax.f32 %v2280_v6, 0.0  ;;  %v3170_v13 = vmax.f32 %v2792_v7, 0.0 }
 0x25b   :  { %4322 = vst.msk [vmem:[%s8073_s3 + $0x158] sm:$0xf] %vm4235_vm3, %v5233_v9  ;;  %4450 = vst.msk [vmem:[%s8073_s3 + $0x358] sm:$0xf] %vm4235_vm3, %v5361_v10  ;;  %v5234_v14 = vpack.c.bf16 %v3042_v12, %v3042_v12  ;;  %v5362_v15 = vpack.c.bf16 %v3170_v13, %v3170_v13 }
 0x25c   :  { %v2284_v16 = vpop.f32.mrb[176].mxu0  ;;  %v2796_v17 = vpop.f32.mrb[176].mxu1 }
 0x25d   :  { %4323 = vst.msk [vmem:[%s8073_s3 + $0x15c] sm:$0xf] %vm4235_vm3, %v5234_v14  ;;  %4451 = vst.msk [vmem:[%s8073_s3 + $0x35c] sm:$0xf] %vm4235_vm3, %v5362_v15  ;;  %v2285_v18 = vadd.f32 %v7361_v11, %v2284_v16  ;;  %v2797_v19 = vadd.f32 %v7361_v11, %v2796_v17  ;;  %v2286_v20 = vpop.f32.mrb[177].mxu0  ;;  %v2798_v21 = vpop.f32.mrb[177].mxu1 }
 0x25e   :  { %v2287_v22 = vpop.f32.mrb[178].mxu0  ;;  %v2799_v23 = vpop.f32.mrb[178].mxu1 }
 0x25f   :  { %v3043_v24 = vmax.f32 %v2285_v18, 0.0  ;;  %v3171_v25 = vmax.f32 %v2797_v19, 0.0  ;;  %v2288_v26 = vadd.f32 %v7361_v11, %v2287_v22  ;;  %v2800_v27 = vadd.f32 %v7361_v11, %v2799_v23  ;;  %v2289_v28 = vpop.f32.mrb[179].mxu0  ;;  %v2801_v29 = vpop.f32.mrb[179].mxu1 }
 0x261   :  { %v5235_v30 = vpack.c.bf16 %v3043_v24, %v3043_v24  ;;  %v5363_v31 = vpack.c.bf16 %v3171_v25, %v3171_v25  ;;  %v3044_v32 = vmax.f32 %v2288_v26, 0.0  ;;  %v3172_v33 = vmax.f32 %v2800_v27, 0.0 }
 0x263   :  { %4324 = vst.msk [vmem:[%s8073_s3 + $0x160] sm:$0xf] %vm4235_vm3, %v5235_v30  ;;  %4452 = vst.msk [vmem:[%s8073_s3 + $0x360] sm:$0xf] %vm4235_vm3, %v5363_v31  ;;  %v5236_v34 = vpack.c.bf16 %v3044_v32, %v3044_v32  ;;  %v5364_v35 = vpack.c.bf16 %v3172_v33, %v3172_v33 }
 0x264   :  { %v2292_v36 = vpop.f32.mrb[180].mxu0  ;;  %v2804_v37 = vpop.f32.mrb[180].mxu1 }
 0x265   :  { %4325 = vst.msk [vmem:[%s8073_s3 + $0x164] sm:$0xf] %vm4235_vm3, %v5236_v34  ;;  %4453 = vst.msk [vmem:[%s8073_s3 + $0x364] sm:$0xf] %vm4235_vm3, %v5364_v35  ;;  %v2293_v38 = vadd.f32 %v7361_v11, %v2292_v36  ;;  %v2805_v39 = vadd.f32 %v7361_v11, %v2804_v37  ;;  %v2294_v40 = vpop.f32.mrb[181].mxu0  ;;  %v2806_v41 = vpop.f32.mrb[181].mxu1 }
 0x266   :  { %v2295_v42 = vpop.f32.mrb[182].mxu0  ;;  %v2807_v43 = vpop.f32.mrb[182].mxu1 }
 0x267   :  { %v3045_v44 = vmax.f32 %v2293_v38, 0.0  ;;  %v3173_v45 = vmax.f32 %v2805_v39, 0.0  ;;  %v2296_v46 = vadd.f32 %v7361_v11, %v2295_v42  ;;  %v2808_v47 = vadd.f32 %v7361_v11, %v2807_v43  ;;  %v2297_v48 = vpop.f32.mrb[183].mxu0  ;;  %v2809_v49 = vpop.f32.mrb[183].mxu1 }
 0x269   :  { %v5237_v50 = vpack.c.bf16 %v3045_v44, %v3045_v44  ;;  %v5365_v51 = vpack.c.bf16 %v3173_v45, %v3173_v45  ;;  %v3046_v52 = vmax.f32 %v2296_v46, 0.0  ;;  %v3174_v53 = vmax.f32 %v2808_v47, 0.0 }
 0x26b   :  { %4326 = vst.msk [vmem:[%s8073_s3 + $0x168] sm:$0xf] %vm4235_vm3, %v5237_v50  ;;  %4454 = vst.msk [vmem:[%s8073_s3 + $0x368] sm:$0xf] %vm4235_vm3, %v5365_v51  ;;  %v5238_v54 = vpack.c.bf16 %v3046_v52, %v3046_v52  ;;  %v5366_v55 = vpack.c.bf16 %v3174_v53, %v3174_v53 }
 0x26c   :  { %v2300_v56 = vpop.f32.mrb[184].mxu0  ;;  %v2812_v57 = vpop.f32.mrb[184].mxu1 }
 0x26d   :  { %4327 = vst.msk [vmem:[%s8073_s3 + $0x16c] sm:$0xf] %vm4235_vm3, %v5238_v54  ;;  %4455 = vst.msk [vmem:[%s8073_s3 + $0x36c] sm:$0xf] %vm4235_vm3, %v5366_v55  ;;  %v2301_v58 = vadd.f32 %v7361_v11, %v2300_v56  ;;  %v2813_v59 = vadd.f32 %v7361_v11, %v2812_v57  ;;  %v2302_v60 = vpop.f32.mrb[185].mxu0  ;;  %v2814_v62 = vpop.f32.mrb[185].mxu1 }
 0x26e   :  { %v2303_v63 = vpop.f32.mrb[186].mxu0  ;;  %v2815_v0 = vpop.f32.mrb[186].mxu1 }
 0x26f   :  { %v3047_v1 = vmax.f32 %v2301_v58, 0.0  ;;  %v3175_v61 = vmax.f32 %v2813_v59, 0.0  ;;  %v2304_v2 = vadd.f32 %v7361_v11, %v2303_v63  ;;  %v2816_v3 = vadd.f32 %v7361_v11, %v2815_v0  ;;  %v2305_v4 = vpop.f32.mrb[187].mxu0  ;;  %v2817_v6 = vpop.f32.mrb[187].mxu1 }
 0x271   :  { %v5239_v7 = vpack.c.bf16 %v3047_v1, %v3047_v1  ;;  %v5367_v5 = vpack.c.bf16 %v3175_v61, %v3175_v61  ;;  %v3048_v8 = vmax.f32 %v2304_v2, 0.0  ;;  %v3176_v9 = vmax.f32 %v2816_v3, 0.0 }
 0x273   :  { %4328 = vst.msk [vmem:[%s8073_s3 + $0x170] sm:$0xf] %vm4235_vm3, %v5239_v7  ;;  %4456 = vst.msk [vmem:[%s8073_s3 + $0x370] sm:$0xf] %vm4235_vm3, %v5367_v5  ;;  %v5240_v10 = vpack.c.bf16 %v3048_v8, %v3048_v8  ;;  %v5368_v12 = vpack.c.bf16 %v3176_v9, %v3176_v9 }
 0x274   :  { %v2308_v13 = vpop.f32.mrb[188].mxu0  ;;  %v2820_v14 = vpop.f32.mrb[188].mxu1 }
 0x275   :  { %4329 = vst.msk [vmem:[%s8073_s3 + $0x174] sm:$0xf] %vm4235_vm3, %v5240_v10  ;;  %4457 = vst.msk [vmem:[%s8073_s3 + $0x374] sm:$0xf] %vm4235_vm3, %v5368_v12  ;;  %v2309_v15 = vadd.f32 %v7361_v11, %v2308_v13  ;;  %v2821_v16 = vadd.f32 %v7361_v11, %v2820_v14  ;;  %v2310_v17 = vpop.f32.mrb[189].mxu0  ;;  %v2822_v18 = vpop.f32.mrb[189].mxu1 }
 0x276   :  { %v2311_v19 = vpop.f32.mrb[190].mxu0  ;;  %v2823_v20 = vpop.f32.mrb[190].mxu1 }
 0x277   :  { %v3049_v21 = vmax.f32 %v2309_v15, 0.0  ;;  %v3177_v22 = vmax.f32 %v2821_v16, 0.0  ;;  %v2312_v23 = vadd.f32 %v7361_v11, %v2311_v19  ;;  %v2824_v24 = vadd.f32 %v7361_v11, %v2823_v20  ;;  %v2313_v25 = vpop.f32.mrb[191].mxu0  ;;  %v2825_v26 = vpop.f32.mrb[191].mxu1 }
 0x279   :  { %v5241_v27 = vpack.c.bf16 %v3049_v21, %v3049_v21  ;;  %v5369_v28 = vpack.c.bf16 %v3177_v22, %v3177_v22  ;;  %v3050_v29 = vmax.f32 %v2312_v23, 0.0  ;;  %v3178_v30 = vmax.f32 %v2824_v24, 0.0 }
 0x27b   :  { %4330 = vst.msk [vmem:[%s8073_s3 + $0x178] sm:$0xf] %vm4235_vm3, %v5241_v27  ;;  %4458 = vst.msk [vmem:[%s8073_s3 + $0x378] sm:$0xf] %vm4235_vm3, %v5369_v28  ;;  %v5242_v31 = vpack.c.bf16 %v3050_v29, %v3050_v29  ;;  %v5370_v32 = vpack.c.bf16 %v3178_v30, %v3178_v30 }
 0x27c   :  { %v2316_v33 = vpop.f32.mrb[192].mxu0  ;;  %v2828_v34 = vpop.f32.mrb[192].mxu1 }
 0x27d   :  { %4331 = vst.msk [vmem:[%s8073_s3 + $0x17c] sm:$0xf] %vm4235_vm3, %v5242_v31  ;;  %4459 = vst.msk [vmem:[%s8073_s3 + $0x37c] sm:$0xf] %vm4235_vm3, %v5370_v32  ;;  %v2317_v35 = vadd.f32 %v7361_v11, %v2316_v33  ;;  %v2829_v36 = vadd.f32 %v7361_v11, %v2828_v34  ;;  %v2318_v37 = vpop.f32.mrb[193].mxu0  ;;  %v2830_v38 = vpop.f32.mrb[193].mxu1 }
 0x27e   :  { %v2319_v39 = vpop.f32.mrb[194].mxu0  ;;  %v2831_v40 = vpop.f32.mrb[194].mxu1 }
 0x27f   :  { %v3051_v41 = vmax.f32 %v2317_v35, 0.0  ;;  %v3179_v42 = vmax.f32 %v2829_v36, 0.0  ;;  %v2320_v43 = vadd.f32 %v7361_v11, %v2319_v39  ;;  %v2832_v44 = vadd.f32 %v7361_v11, %v2831_v40  ;;  %v2321_v45 = vpop.f32.mrb[195].mxu0  ;;  %v2833_v46 = vpop.f32.mrb[195].mxu1 }
 0x281   :  { %v5243_v47 = vpack.c.bf16 %v3051_v41, %v3051_v41  ;;  %v5371_v48 = vpack.c.bf16 %v3179_v42, %v3179_v42  ;;  %v3052_v49 = vmax.f32 %v2320_v43, 0.0  ;;  %v3180_v50 = vmax.f32 %v2832_v44, 0.0 }
 0x283   :  { %4332 = vst.msk [vmem:[%s8073_s3 + $0x180] sm:$0xf] %vm4235_vm3, %v5243_v47  ;;  %4460 = vst.msk [vmem:[%s8073_s3 + $0x380] sm:$0xf] %vm4235_vm3, %v5371_v48  ;;  %v5244_v51 = vpack.c.bf16 %v3052_v49, %v3052_v49  ;;  %v5372_v52 = vpack.c.bf16 %v3180_v50, %v3180_v50 }
 0x284   :  { %v2324_v53 = vpop.f32.mrb[196].mxu0  ;;  %v2836_v54 = vpop.f32.mrb[196].mxu1 }
 0x285   :  { %4333 = vst.msk [vmem:[%s8073_s3 + $0x184] sm:$0xf] %vm4235_vm3, %v5244_v51  ;;  %4461 = vst.msk [vmem:[%s8073_s3 + $0x384] sm:$0xf] %vm4235_vm3, %v5372_v52  ;;  %v2325_v55 = vadd.f32 %v7361_v11, %v2324_v53  ;;  %v2837_v56 = vadd.f32 %v7361_v11, %v2836_v54  ;;  %v2326_v57 = vpop.f32.mrb[197].mxu0  ;;  %v2838_v58 = vpop.f32.mrb[197].mxu1 }
 0x286   :  { %v2327_v59 = vpop.f32.mrb[198].mxu0  ;;  %v2839_v60 = vpop.f32.mrb[198].mxu1  ;;  %v7828_v51 = vld [vmem:[%s8072_s2] ss:$0 sm:$0xff] }
 0x287   :  { %v3053_v62 = vmax.f32 %v2325_v55, 0.0  ;;  %v3181_v63 = vmax.f32 %v2837_v56, 0.0  ;;  %v2328_v0 = vadd.f32 %v7361_v11, %v2327_v59  ;;  %v2840_v1 = vadd.f32 %v7361_v11, %v2839_v60  ;;  %v2329_v61 = vpop.f32.mrb[199].mxu0  ;;  %v2841_v2 = vpop.f32.mrb[199].mxu1 }
 0x289   :  { %v5245_v3 = vpack.c.bf16 %v3053_v62, %v3053_v62  ;;  %v5373_v4 = vpack.c.bf16 %v3181_v63, %v3181_v63  ;;  %v3054_v6 = vmax.f32 %v2328_v0, 0.0  ;;  %v3182_v7 = vmax.f32 %v2840_v1, 0.0 }
 0x28b   :  { %4334 = vst.msk [vmem:[%s8073_s3 + $0x188] sm:$0xf] %vm4235_vm3, %v5245_v3  ;;  %4462 = vst.msk [vmem:[%s8073_s3 + $0x388] sm:$0xf] %vm4235_vm3, %v5373_v4  ;;  %v5246_v5 = vpack.c.bf16 %v3054_v6, %v3054_v6  ;;  %v5374_v8 = vpack.c.bf16 %v3182_v7, %v3182_v7 }
 0x28c   :  { %v2332_v9 = vpop.f32.mrb[200].mxu0  ;;  %v2844_v10 = vpop.f32.mrb[200].mxu1 }
 0x28d   :  { %4335 = vst.msk [vmem:[%s8073_s3 + $0x18c] sm:$0xf] %vm4235_vm3, %v5246_v5  ;;  %4463 = vst.msk [vmem:[%s8073_s3 + $0x38c] sm:$0xf] %vm4235_vm3, %v5374_v8  ;;  %v2333_v12 = vadd.f32 %v7361_v11, %v2332_v9  ;;  %v2845_v13 = vadd.f32 %v7361_v11, %v2844_v10  ;;  %v2334_v14 = vpop.f32.mrb[201].mxu0  ;;  %v2846_v15 = vpop.f32.mrb[201].mxu1 }
 0x28e   :  { %v2335_v16 = vpop.f32.mrb[202].mxu0  ;;  %v2847_v17 = vpop.f32.mrb[202].mxu1 }
 0x28f   :  { %v3055_v18 = vmax.f32 %v2333_v12, 0.0  ;;  %v3183_v19 = vmax.f32 %v2845_v13, 0.0  ;;  %v2336_v20 = vadd.f32 %v7361_v11, %v2335_v16  ;;  %v2848_v21 = vadd.f32 %v7361_v11, %v2847_v17  ;;  %v2337_v22 = vpop.f32.mrb[203].mxu0  ;;  %v2849_v23 = vpop.f32.mrb[203].mxu1 }
 0x291   :  { %v5247_v24 = vpack.c.bf16 %v3055_v18, %v3055_v18  ;;  %v5375_v25 = vpack.c.bf16 %v3183_v19, %v3183_v19  ;;  %v3056_v26 = vmax.f32 %v2336_v20, 0.0  ;;  %v3184_v27 = vmax.f32 %v2848_v21, 0.0 }
 0x293   :  { %4336 = vst.msk [vmem:[%s8073_s3 + $0x190] sm:$0xf] %vm4235_vm3, %v5247_v24  ;;  %4464 = vst.msk [vmem:[%s8073_s3 + $0x390] sm:$0xf] %vm4235_vm3, %v5375_v25  ;;  %v5248_v28 = vpack.c.bf16 %v3056_v26, %v3056_v26  ;;  %v5376_v29 = vpack.c.bf16 %v3184_v27, %v3184_v27 }
 0x294   :  { %v2340_v30 = vpop.f32.mrb[204].mxu0  ;;  %v2852_v31 = vpop.f32.mrb[204].mxu1 }
 0x295   :  { %4337 = vst.msk [vmem:[%s8073_s3 + $0x194] sm:$0xf] %vm4235_vm3, %v5248_v28  ;;  %4465 = vst.msk [vmem:[%s8073_s3 + $0x394] sm:$0xf] %vm4235_vm3, %v5376_v29  ;;  %v2341_v32 = vadd.f32 %v7361_v11, %v2340_v30  ;;  %v2853_v33 = vadd.f32 %v7361_v11, %v2852_v31  ;;  %v2342_v34 = vpop.f32.mrb[205].mxu0  ;;  %v2854_v35 = vpop.f32.mrb[205].mxu1 }
 0x296   :  { %v2343_v36 = vpop.f32.mrb[206].mxu0  ;;  %v2855_v37 = vpop.f32.mrb[206].mxu1 }
 0x297   :  { %v3057_v38 = vmax.f32 %v2341_v32, 0.0  ;;  %v3185_v39 = vmax.f32 %v2853_v33, 0.0  ;;  %v2344_v40 = vadd.f32 %v7361_v11, %v2343_v36  ;;  %v2856_v41 = vadd.f32 %v7361_v11, %v2855_v37  ;;  %v2345_v42 = vpop.f32.mrb[207].mxu0  ;;  %v2857_v43 = vpop.f32.mrb[207].mxu1 }
 0x299   :  { %v5249_v44 = vpack.c.bf16 %v3057_v38, %v3057_v38  ;;  %v5377_v45 = vpack.c.bf16 %v3185_v39, %v3185_v39  ;;  %v3058_v46 = vmax.f32 %v2344_v40, 0.0  ;;  %v3186_v47 = vmax.f32 %v2856_v41, 0.0 }
 0x29b   :  { %4338 = vst.msk [vmem:[%s8073_s3 + $0x198] sm:$0xf] %vm4235_vm3, %v5249_v44  ;;  %4466 = vst.msk [vmem:[%s8073_s3 + $0x398] sm:$0xf] %vm4235_vm3, %v5377_v45  ;;  %v5250_v48 = vpack.c.bf16 %v3058_v46, %v3058_v46  ;;  %v5378_v49 = vpack.c.bf16 %v3186_v47, %v3186_v47 }
 0x29c   :  { %v2348_v50 = vpop.f32.mrb[208].mxu0  ;;  %v2860_v11 = vpop.f32.mrb[208].mxu1 }
 0x29d   :  { %4339 = vst.msk [vmem:[%s8073_s3 + $0x19c] sm:$0xf] %vm4235_vm3, %v5250_v48  ;;  %4467 = vst.msk [vmem:[%s8073_s3 + $0x39c] sm:$0xf] %vm4235_vm3, %v5378_v49  ;;  %v2349_v52 = vadd.f32 %v7828_v51, %v2348_v50  ;;  %v2861_v53 = vadd.f32 %v7828_v51, %v2860_v11  ;;  %v2350_v54 = vpop.f32.mrb[209].mxu0  ;;  %v2862_v55 = vpop.f32.mrb[209].mxu1 }
 0x29e   :  { %v2351_v56 = vpop.f32.mrb[210].mxu0  ;;  %v2863_v57 = vpop.f32.mrb[210].mxu1 }
 0x29f   :  { %v3059_v58 = vmax.f32 %v2349_v52, 0.0  ;;  %v3187_v59 = vmax.f32 %v2861_v53, 0.0  ;;  %v2352_v60 = vadd.f32 %v7828_v51, %v2351_v56  ;;  %v2864_v62 = vadd.f32 %v7828_v51, %v2863_v57  ;;  %v2353_v63 = vpop.f32.mrb[211].mxu0  ;;  %v2865_v0 = vpop.f32.mrb[211].mxu1 }
 0x2a1   :  { %v5251_v1 = vpack.c.bf16 %v3059_v58, %v3059_v58  ;;  %v5379_v61 = vpack.c.bf16 %v3187_v59, %v3187_v59  ;;  %v3060_v2 = vmax.f32 %v2352_v60, 0.0  ;;  %v3188_v3 = vmax.f32 %v2864_v62, 0.0 }
 0x2a3   :  { %4340 = vst.msk [vmem:[%s8073_s3 + $0x1a0] sm:$0xf] %vm4235_vm3, %v5251_v1  ;;  %4468 = vst.msk [vmem:[%s8073_s3 + $0x3a0] sm:$0xf] %vm4235_vm3, %v5379_v61  ;;  %v5252_v4 = vpack.c.bf16 %v3060_v2, %v3060_v2  ;;  %v5380_v6 = vpack.c.bf16 %v3188_v3, %v3188_v3 }
 0x2a4   :  { %v2356_v7 = vpop.f32.mrb[212].mxu0  ;;  %v2868_v5 = vpop.f32.mrb[212].mxu1 }
 0x2a5   :  { %4341 = vst.msk [vmem:[%s8073_s3 + $0x1a4] sm:$0xf] %vm4235_vm3, %v5252_v4  ;;  %4469 = vst.msk [vmem:[%s8073_s3 + $0x3a4] sm:$0xf] %vm4235_vm3, %v5380_v6  ;;  %v2357_v8 = vadd.f32 %v7828_v51, %v2356_v7  ;;  %v2869_v9 = vadd.f32 %v7828_v51, %v2868_v5  ;;  %v2358_v10 = vpop.f32.mrb[213].mxu0  ;;  %v2870_v12 = vpop.f32.mrb[213].mxu1 }
 0x2a6   :  { %v2359_v13 = vpop.f32.mrb[214].mxu0  ;;  %v2871_v14 = vpop.f32.mrb[214].mxu1 }
 0x2a7   :  { %v3061_v15 = vmax.f32 %v2357_v8, 0.0  ;;  %v3189_v16 = vmax.f32 %v2869_v9, 0.0  ;;  %v2360_v17 = vadd.f32 %v7828_v51, %v2359_v13  ;;  %v2872_v18 = vadd.f32 %v7828_v51, %v2871_v14  ;;  %v2361_v19 = vpop.f32.mrb[215].mxu0  ;;  %v2873_v20 = vpop.f32.mrb[215].mxu1 }
 0x2a9   :  { %v5253_v21 = vpack.c.bf16 %v3061_v15, %v3061_v15  ;;  %v5381_v22 = vpack.c.bf16 %v3189_v16, %v3189_v16  ;;  %v3062_v23 = vmax.f32 %v2360_v17, 0.0  ;;  %v3190_v24 = vmax.f32 %v2872_v18, 0.0 }
 0x2ab   :  { %4342 = vst.msk [vmem:[%s8073_s3 + $0x1a8] sm:$0xf] %vm4235_vm3, %v5253_v21  ;;  %4470 = vst.msk [vmem:[%s8073_s3 + $0x3a8] sm:$0xf] %vm4235_vm3, %v5381_v22  ;;  %v5254_v25 = vpack.c.bf16 %v3062_v23, %v3062_v23  ;;  %v5382_v26 = vpack.c.bf16 %v3190_v24, %v3190_v24 }
 0x2ac   :  { %v2364_v27 = vpop.f32.mrb[216].mxu0  ;;  %v2876_v28 = vpop.f32.mrb[216].mxu1 }
 0x2ad   :  { %4343 = vst.msk [vmem:[%s8073_s3 + $0x1ac] sm:$0xf] %vm4235_vm3, %v5254_v25  ;;  %4471 = vst.msk [vmem:[%s8073_s3 + $0x3ac] sm:$0xf] %vm4235_vm3, %v5382_v26  ;;  %v2365_v29 = vadd.f32 %v7828_v51, %v2364_v27  ;;  %v2877_v30 = vadd.f32 %v7828_v51, %v2876_v28  ;;  %v2366_v31 = vpop.f32.mrb[217].mxu0  ;;  %v2878_v32 = vpop.f32.mrb[217].mxu1 }
 0x2ae   :  { %v2367_v33 = vpop.f32.mrb[218].mxu0  ;;  %v2879_v34 = vpop.f32.mrb[218].mxu1 }
 0x2af   :  { %v3063_v35 = vmax.f32 %v2365_v29, 0.0  ;;  %v3191_v36 = vmax.f32 %v2877_v30, 0.0  ;;  %v2368_v37 = vadd.f32 %v7828_v51, %v2367_v33  ;;  %v2880_v38 = vadd.f32 %v7828_v51, %v2879_v34  ;;  %v2369_v39 = vpop.f32.mrb[219].mxu0  ;;  %v2881_v40 = vpop.f32.mrb[219].mxu1 }
 0x2b1   :  { %v5255_v41 = vpack.c.bf16 %v3063_v35, %v3063_v35  ;;  %v5383_v42 = vpack.c.bf16 %v3191_v36, %v3191_v36  ;;  %v3064_v43 = vmax.f32 %v2368_v37, 0.0  ;;  %v3192_v44 = vmax.f32 %v2880_v38, 0.0 }
 0x2b3   :  { %4344 = vst.msk [vmem:[%s8073_s3 + $0x1b0] sm:$0xf] %vm4235_vm3, %v5255_v41  ;;  %4472 = vst.msk [vmem:[%s8073_s3 + $0x3b0] sm:$0xf] %vm4235_vm3, %v5383_v42  ;;  %v5256_v45 = vpack.c.bf16 %v3064_v43, %v3064_v43  ;;  %v5384_v46 = vpack.c.bf16 %v3192_v44, %v3192_v44 }
 0x2b4   :  { %v2372_v47 = vpop.f32.mrb[220].mxu0  ;;  %v2884_v48 = vpop.f32.mrb[220].mxu1 }
 0x2b5   :  { %4345 = vst.msk [vmem:[%s8073_s3 + $0x1b4] sm:$0xf] %vm4235_vm3, %v5256_v45  ;;  %4473 = vst.msk [vmem:[%s8073_s3 + $0x3b4] sm:$0xf] %vm4235_vm3, %v5384_v46  ;;  %v2373_v49 = vadd.f32 %v7828_v51, %v2372_v47  ;;  %v2885_v50 = vadd.f32 %v7828_v51, %v2884_v48  ;;  %v2374_v11 = vpop.f32.mrb[221].mxu0  ;;  %v2886_v52 = vpop.f32.mrb[221].mxu1 }
 0x2b6   :  { %v2375_v53 = vpop.f32.mrb[222].mxu0  ;;  %v2887_v54 = vpop.f32.mrb[222].mxu1 }
 0x2b7   :  { %v3065_v55 = vmax.f32 %v2373_v49, 0.0  ;;  %v3193_v56 = vmax.f32 %v2885_v50, 0.0  ;;  %v2376_v57 = vadd.f32 %v7828_v51, %v2375_v53  ;;  %v2888_v58 = vadd.f32 %v7828_v51, %v2887_v54  ;;  %v2377_v59 = vpop.f32.mrb[223].mxu0  ;;  %v2889_v60 = vpop.f32.mrb[223].mxu1 }
 0x2b9   :  { %v5257_v62 = vpack.c.bf16 %v3065_v55, %v3065_v55  ;;  %v5385_v63 = vpack.c.bf16 %v3193_v56, %v3193_v56  ;;  %v3066_v0 = vmax.f32 %v2376_v57, 0.0  ;;  %v3194_v1 = vmax.f32 %v2888_v58, 0.0 }
 0x2bb   :  { %4346 = vst.msk [vmem:[%s8073_s3 + $0x1b8] sm:$0xf] %vm4235_vm3, %v5257_v62  ;;  %4474 = vst.msk [vmem:[%s8073_s3 + $0x3b8] sm:$0xf] %vm4235_vm3, %v5385_v63  ;;  %v5258_v61 = vpack.c.bf16 %v3066_v0, %v3066_v0  ;;  %v5386_v2 = vpack.c.bf16 %v3194_v1, %v3194_v1 }
 0x2bc   :  { %v2380_v3 = vpop.f32.mrb[224].mxu0  ;;  %v2892_v4 = vpop.f32.mrb[224].mxu1 }
 0x2bd   :  { %4347 = vst.msk [vmem:[%s8073_s3 + $0x1bc] sm:$0xf] %vm4235_vm3, %v5258_v61  ;;  %4475 = vst.msk [vmem:[%s8073_s3 + $0x3bc] sm:$0xf] %vm4235_vm3, %v5386_v2  ;;  %v2381_v6 = vadd.f32 %v7828_v51, %v2380_v3  ;;  %v2893_v7 = vadd.f32 %v7828_v51, %v2892_v4  ;;  %v2382_v5 = vpop.f32.mrb[225].mxu0  ;;  %v2894_v8 = vpop.f32.mrb[225].mxu1 }
 0x2be   :  { %v2383_v9 = vpop.f32.mrb[226].mxu0  ;;  %v2895_v10 = vpop.f32.mrb[226].mxu1 }
 0x2bf   :  { %v3067_v12 = vmax.f32 %v2381_v6, 0.0  ;;  %v3195_v13 = vmax.f32 %v2893_v7, 0.0  ;;  %v2384_v14 = vadd.f32 %v7828_v51, %v2383_v9  ;;  %v2896_v15 = vadd.f32 %v7828_v51, %v2895_v10  ;;  %v2385_v16 = vpop.f32.mrb[227].mxu0  ;;  %v2897_v17 = vpop.f32.mrb[227].mxu1 }
 0x2c1   :  { %v5259_v18 = vpack.c.bf16 %v3067_v12, %v3067_v12  ;;  %v5387_v19 = vpack.c.bf16 %v3195_v13, %v3195_v13  ;;  %v3068_v20 = vmax.f32 %v2384_v14, 0.0  ;;  %v3196_v21 = vmax.f32 %v2896_v15, 0.0 }
 0x2c3   :  { %4348 = vst.msk [vmem:[%s8073_s3 + $0x1c0] sm:$0xf] %vm4235_vm3, %v5259_v18  ;;  %4476 = vst.msk [vmem:[%s8073_s3 + $0x3c0] sm:$0xf] %vm4235_vm3, %v5387_v19  ;;  %v5260_v22 = vpack.c.bf16 %v3068_v20, %v3068_v20  ;;  %v5388_v23 = vpack.c.bf16 %v3196_v21, %v3196_v21 }
 0x2c4   :  { %v2388_v24 = vpop.f32.mrb[228].mxu0  ;;  %v2900_v25 = vpop.f32.mrb[228].mxu1 }
 0x2c5   :  { %4349 = vst.msk [vmem:[%s8073_s3 + $0x1c4] sm:$0xf] %vm4235_vm3, %v5260_v22  ;;  %4477 = vst.msk [vmem:[%s8073_s3 + $0x3c4] sm:$0xf] %vm4235_vm3, %v5388_v23  ;;  %v2389_v26 = vadd.f32 %v7828_v51, %v2388_v24  ;;  %v2901_v27 = vadd.f32 %v7828_v51, %v2900_v25  ;;  %v2390_v28 = vpop.f32.mrb[229].mxu0  ;;  %v2902_v29 = vpop.f32.mrb[229].mxu1 }
 0x2c6   :  { %v2391_v30 = vpop.f32.mrb[230].mxu0  ;;  %v2903_v31 = vpop.f32.mrb[230].mxu1 }
 0x2c7   :  { %v3069_v32 = vmax.f32 %v2389_v26, 0.0  ;;  %v3197_v33 = vmax.f32 %v2901_v27, 0.0  ;;  %v2392_v34 = vadd.f32 %v7828_v51, %v2391_v30  ;;  %v2904_v35 = vadd.f32 %v7828_v51, %v2903_v31  ;;  %v2393_v36 = vpop.f32.mrb[231].mxu0  ;;  %v2905_v37 = vpop.f32.mrb[231].mxu1 }
 0x2c9   :  { %v5261_v38 = vpack.c.bf16 %v3069_v32, %v3069_v32  ;;  %v5389_v39 = vpack.c.bf16 %v3197_v33, %v3197_v33  ;;  %v3070_v40 = vmax.f32 %v2392_v34, 0.0  ;;  %v3198_v41 = vmax.f32 %v2904_v35, 0.0 }
 0x2cb   :  { %4350 = vst.msk [vmem:[%s8073_s3 + $0x1c8] sm:$0xf] %vm4235_vm3, %v5261_v38  ;;  %4478 = vst.msk [vmem:[%s8073_s3 + $0x3c8] sm:$0xf] %vm4235_vm3, %v5389_v39  ;;  %v5262_v42 = vpack.c.bf16 %v3070_v40, %v3070_v40  ;;  %v5390_v43 = vpack.c.bf16 %v3198_v41, %v3198_v41 }
 0x2cc   :  { %v2396_v44 = vpop.f32.mrb[232].mxu0  ;;  %v2908_v45 = vpop.f32.mrb[232].mxu1 }
 0x2cd   :  { %4351 = vst.msk [vmem:[%s8073_s3 + $0x1cc] sm:$0xf] %vm4235_vm3, %v5262_v42  ;;  %4479 = vst.msk [vmem:[%s8073_s3 + $0x3cc] sm:$0xf] %vm4235_vm3, %v5390_v43  ;;  %v2397_v46 = vadd.f32 %v7828_v51, %v2396_v44  ;;  %v2909_v47 = vadd.f32 %v7828_v51, %v2908_v45  ;;  %v2398_v48 = vpop.f32.mrb[233].mxu0  ;;  %v2910_v49 = vpop.f32.mrb[233].mxu1 }
 0x2ce   :  { %v2399_v50 = vpop.f32.mrb[234].mxu0  ;;  %v2911_v11 = vpop.f32.mrb[234].mxu1 }
 0x2cf   :  { %v3071_v52 = vmax.f32 %v2397_v46, 0.0  ;;  %v3199_v53 = vmax.f32 %v2909_v47, 0.0  ;;  %v2400_v54 = vadd.f32 %v7828_v51, %v2399_v50  ;;  %v2912_v55 = vadd.f32 %v7828_v51, %v2911_v11  ;;  %v2401_v56 = vpop.f32.mrb[235].mxu0  ;;  %v2913_v57 = vpop.f32.mrb[235].mxu1 }
 0x2d1   :  { %v5263_v58 = vpack.c.bf16 %v3071_v52, %v3071_v52  ;;  %v5391_v59 = vpack.c.bf16 %v3199_v53, %v3199_v53  ;;  %v3072_v60 = vmax.f32 %v2400_v54, 0.0  ;;  %v3200_v62 = vmax.f32 %v2912_v55, 0.0 }
 0x2d3   :  { %4352 = vst.msk [vmem:[%s8073_s3 + $0x1d0] sm:$0xf] %vm4235_vm3, %v5263_v58  ;;  %4480 = vst.msk [vmem:[%s8073_s3 + $0x3d0] sm:$0xf] %vm4235_vm3, %v5391_v59  ;;  %v5264_v63 = vpack.c.bf16 %v3072_v60, %v3072_v60  ;;  %v5392_v0 = vpack.c.bf16 %v3200_v62, %v3200_v62 }
 0x2d4   :  { %v2404_v1 = vpop.f32.mrb[236].mxu0  ;;  %v2916_v61 = vpop.f32.mrb[236].mxu1 }
 0x2d5   :  { %4353 = vst.msk [vmem:[%s8073_s3 + $0x1d4] sm:$0xf] %vm4235_vm3, %v5264_v63  ;;  %4481 = vst.msk [vmem:[%s8073_s3 + $0x3d4] sm:$0xf] %vm4235_vm3, %v5392_v0  ;;  %v2405_v2 = vadd.f32 %v7828_v51, %v2404_v1  ;;  %v2917_v3 = vadd.f32 %v7828_v51, %v2916_v61  ;;  %v2406_v4 = vpop.f32.mrb[237].mxu0  ;;  %v2918_v6 = vpop.f32.mrb[237].mxu1 }
 0x2d6   :  { %v2407_v7 = vpop.f32.mrb[238].mxu0  ;;  %v2919_v5 = vpop.f32.mrb[238].mxu1 }
 0x2d7   :  { %v3073_v8 = vmax.f32 %v2405_v2, 0.0  ;;  %v3201_v9 = vmax.f32 %v2917_v3, 0.0  ;;  %v2408_v10 = vadd.f32 %v7828_v51, %v2407_v7  ;;  %v2920_v12 = vadd.f32 %v7828_v51, %v2919_v5  ;;  %v2409_v13 = vpop.f32.mrb[239].mxu0  ;;  %v2921_v14 = vpop.f32.mrb[239].mxu1 }
 0x2d9   :  { %v5265_v15 = vpack.c.bf16 %v3073_v8, %v3073_v8  ;;  %v5393_v16 = vpack.c.bf16 %v3201_v9, %v3201_v9  ;;  %v3074_v17 = vmax.f32 %v2408_v10, 0.0  ;;  %v3202_v18 = vmax.f32 %v2920_v12, 0.0 }
 0x2db   :  { %4354 = vst.msk [vmem:[%s8073_s3 + $0x1d8] sm:$0xf] %vm4235_vm3, %v5265_v15  ;;  %4482 = vst.msk [vmem:[%s8073_s3 + $0x3d8] sm:$0xf] %vm4235_vm3, %v5393_v16  ;;  %v5266_v19 = vpack.c.bf16 %v3074_v17, %v3074_v17  ;;  %v5394_v20 = vpack.c.bf16 %v3202_v18, %v3202_v18 }
 0x2dc   :  { %v2412_v21 = vpop.f32.mrb[240].mxu0  ;;  %v2924_v22 = vpop.f32.mrb[240].mxu1 }
 0x2dd   :  { %4355 = vst.msk [vmem:[%s8073_s3 + $0x1dc] sm:$0xf] %vm4235_vm3, %v5266_v19  ;;  %4483 = vst.msk [vmem:[%s8073_s3 + $0x3dc] sm:$0xf] %vm4235_vm3, %v5394_v20  ;;  %v2413_v23 = vadd.f32 %v7828_v51, %v2412_v21  ;;  %v2925_v24 = vadd.f32 %v7828_v51, %v2924_v22  ;;  %v2414_v25 = vpop.f32.mrb[241].mxu0  ;;  %v2926_v26 = vpop.f32.mrb[241].mxu1 }
 0x2de   :  { %v2415_v27 = vpop.f32.mrb[242].mxu0  ;;  %v2927_v28 = vpop.f32.mrb[242].mxu1 }
 0x2df   :  { %v3075_v29 = vmax.f32 %v2413_v23, 0.0  ;;  %v3203_v30 = vmax.f32 %v2925_v24, 0.0  ;;  %v2416_v31 = vadd.f32 %v7828_v51, %v2415_v27  ;;  %v2928_v32 = vadd.f32 %v7828_v51, %v2927_v28  ;;  %v2417_v33 = vpop.f32.mrb[243].mxu0  ;;  %v2929_v34 = vpop.f32.mrb[243].mxu1 }
 0x2e1   :  { %v5267_v35 = vpack.c.bf16 %v3075_v29, %v3075_v29  ;;  %v5395_v36 = vpack.c.bf16 %v3203_v30, %v3203_v30  ;;  %v3076_v37 = vmax.f32 %v2416_v31, 0.0  ;;  %v3204_v38 = vmax.f32 %v2928_v32, 0.0 }
 0x2e3   :  { %4356 = vst.msk [vmem:[%s8073_s3 + $0x1e0] sm:$0xf] %vm4235_vm3, %v5267_v35  ;;  %4484 = vst.msk [vmem:[%s8073_s3 + $0x3e0] sm:$0xf] %vm4235_vm3, %v5395_v36  ;;  %v5268_v39 = vpack.c.bf16 %v3076_v37, %v3076_v37  ;;  %v5396_v40 = vpack.c.bf16 %v3204_v38, %v3204_v38 }
 0x2e4   :  { %v2420_v41 = vpop.f32.mrb[244].mxu0  ;;  %v2932_v42 = vpop.f32.mrb[244].mxu1 }
 0x2e5   :  { %4357 = vst.msk [vmem:[%s8073_s3 + $0x1e4] sm:$0xf] %vm4235_vm3, %v5268_v39  ;;  %4485 = vst.msk [vmem:[%s8073_s3 + $0x3e4] sm:$0xf] %vm4235_vm3, %v5396_v40  ;;  %v2421_v43 = vadd.f32 %v7828_v51, %v2420_v41  ;;  %v2933_v44 = vadd.f32 %v7828_v51, %v2932_v42  ;;  %v2422_v45 = vpop.f32.mrb[245].mxu0  ;;  %v2934_v46 = vpop.f32.mrb[245].mxu1 }
 0x2e6   :  { %v2423_v47 = vpop.f32.mrb[246].mxu0  ;;  %v2935_v48 = vpop.f32.mrb[246].mxu1 }
 0x2e7   :  { %v3077_v49 = vmax.f32 %v2421_v43, 0.0  ;;  %v3205_v50 = vmax.f32 %v2933_v44, 0.0  ;;  %v2424_v11 = vadd.f32 %v7828_v51, %v2423_v47  ;;  %v2936_v52 = vadd.f32 %v7828_v51, %v2935_v48  ;;  %v2425_v53 = vpop.f32.mrb[247].mxu0  ;;  %v2937_v54 = vpop.f32.mrb[247].mxu1 }
 0x2e9   :  { %v5269_v55 = vpack.c.bf16 %v3077_v49, %v3077_v49  ;;  %v5397_v56 = vpack.c.bf16 %v3205_v50, %v3205_v50  ;;  %v3078_v57 = vmax.f32 %v2424_v11, 0.0  ;;  %v3206_v58 = vmax.f32 %v2936_v52, 0.0 }
 0x2eb   :  { %4358 = vst.msk [vmem:[%s8073_s3 + $0x1e8] sm:$0xf] %vm4235_vm3, %v5269_v55  ;;  %4486 = vst.msk [vmem:[%s8073_s3 + $0x3e8] sm:$0xf] %vm4235_vm3, %v5397_v56  ;;  %v5270_v59 = vpack.c.bf16 %v3078_v57, %v3078_v57  ;;  %v5398_v60 = vpack.c.bf16 %v3206_v58, %v3206_v58 }
 0x2ec   :  { %v2428_v62 = vpop.f32.mrb[248].mxu0  ;;  %v2940_v63 = vpop.f32.mrb[248].mxu1 }
 0x2ed   :  { %4359 = vst.msk [vmem:[%s8073_s3 + $0x1ec] sm:$0xf] %vm4235_vm3, %v5270_v59  ;;  %4487 = vst.msk [vmem:[%s8073_s3 + $0x3ec] sm:$0xf] %vm4235_vm3, %v5398_v60  ;;  %v2429_v0 = vadd.f32 %v7828_v51, %v2428_v62  ;;  %v2941_v1 = vadd.f32 %v7828_v51, %v2940_v63  ;;  %v2430_v61 = vpop.f32.mrb[249].mxu0  ;;  %v2942_v2 = vpop.f32.mrb[249].mxu1 }
 0x2ee   :  { %v2431_v3 = vpop.f32.mrb[250].mxu0  ;;  %v2943_v4 = vpop.f32.mrb[250].mxu1 }
 0x2ef   :  { %v3079_v6 = vmax.f32 %v2429_v0, 0.0  ;;  %v3207_v7 = vmax.f32 %v2941_v1, 0.0  ;;  %v2432_v5 = vadd.f32 %v7828_v51, %v2431_v3  ;;  %v2944_v8 = vadd.f32 %v7828_v51, %v2943_v4  ;;  %v2433_v9 = vpop.f32.mrb[251].mxu0  ;;  %v2945_v10 = vpop.f32.mrb[251].mxu1 }
 0x2f1   :  { %v5271_v12 = vpack.c.bf16 %v3079_v6, %v3079_v6  ;;  %v5399_v13 = vpack.c.bf16 %v3207_v7, %v3207_v7  ;;  %v3080_v14 = vmax.f32 %v2432_v5, 0.0  ;;  %v3208_v15 = vmax.f32 %v2944_v8, 0.0 }
 0x2f3   :  { %4360 = vst.msk [vmem:[%s8073_s3 + $0x1f0] sm:$0xf] %vm4235_vm3, %v5271_v12  ;;  %4488 = vst.msk [vmem:[%s8073_s3 + $0x3f0] sm:$0xf] %vm4235_vm3, %v5399_v13  ;;  %v5272_v16 = vpack.c.bf16 %v3080_v14, %v3080_v14  ;;  %v5400_v17 = vpack.c.bf16 %v3208_v15, %v3208_v15 }
 0x2f4   :  { %v2436_v18 = vpop.f32.mrb[252].mxu0  ;;  %v2948_v19 = vpop.f32.mrb[252].mxu1 }
 0x2f5   :  { %4361 = vst.msk [vmem:[%s8073_s3 + $0x1f4] sm:$0xf] %vm4235_vm3, %v5272_v16  ;;  %4489 = vst.msk [vmem:[%s8073_s3 + $0x3f4] sm:$0xf] %vm4235_vm3, %v5400_v17  ;;  %v2437_v20 = vadd.f32 %v7828_v51, %v2436_v18  ;;  %v2949_v21 = vadd.f32 %v7828_v51, %v2948_v19  ;;  %v2438_v22 = vpop.f32.mrb[253].mxu0  ;;  %v2950_v23 = vpop.f32.mrb[253].mxu1 }
 0x2f6   :  { %v2439_v24 = vpop.f32.mrb[254].mxu0  ;;  %v2951_v25 = vpop.f32.mrb[254].mxu1 }
 0x2f7   :  { %v3081_v26 = vmax.f32 %v2437_v20, 0.0  ;;  %v3209_v27 = vmax.f32 %v2949_v21, 0.0  ;;  %v2440_v28 = vadd.f32 %v7828_v51, %v2439_v24  ;;  %v2952_v29 = vadd.f32 %v7828_v51, %v2951_v25  ;;  %v2441_v30 = vpop.f32.mrb[255].mxu0  ;;  %v2953_v31 = vpop.f32.mrb[255].mxu1 }
 0x2f9   :  { %v5273_v32 = vpack.c.bf16 %v3081_v26, %v3081_v26  ;;  %v5401_v33 = vpack.c.bf16 %v3209_v27, %v3209_v27  ;;  %v3082_v34 = vmax.f32 %v2440_v28, 0.0  ;;  %v3210_v35 = vmax.f32 %v2952_v29, 0.0 }
 0x2fb   :  { %4362 = vst.msk [vmem:[%s8073_s3 + $0x1f8] sm:$0xf] %vm4235_vm3, %v5273_v32  ;;  %4490 = vst.msk [vmem:[%s8073_s3 + $0x3f8] sm:$0xf] %vm4235_vm3, %v5401_v33  ;;  %v5274_v36 = vpack.c.bf16 %v3082_v34, %v3082_v34  ;;  %v5402_v37 = vpack.c.bf16 %v3210_v35, %v3210_v35 }
 0x2fd   :  { %4363 = vst.msk [vmem:[%s8073_s3 + $0x1fc] sm:$0xf] %vm4235_vm3, %v5274_v36  ;;  %4491 = vst.msk [vmem:[%s8073_s3 + $0x3fc] sm:$0xf] %vm4235_vm3, %v5402_v37 }

</bundles_post_ra>
